<compile_context>
chip_gen: v7x
topology: tpu7x:2x2x1
jax: 0.10.0
libtpu: 0.0.40
codegen_flags: <defaults>
</compile_context>

<pallas_src>
import numpy as np
import jax
import jax.numpy as jnp
from jax.experimental import pallas as pl
from jax.experimental.pallas import tpu as pltpu

# ---------------- small synthetic config (consistent with the module) ------
IMAGE_SIZE = 16
PATCH_SIZE = 4
EMBED_DIM = 32
NUM_ENC_LAYERS = 2
NUM_ENC_HEADS = 2
NUM_DEC_LAYERS = 1
NUM_DEC_HEADS = 2
MASK_RATIO = 0.75
BATCH = 2
MLP_RATIO = 4

NUM_PATCHES = (IMAGE_SIZE // PATCH_SIZE) ** 2            # 16
PATCH_DIM = 3 * PATCH_SIZE * PATCH_SIZE                  # 48
N_KEEP = int(NUM_PATCHES * (1 - MASK_RATIO))             # 4 visible patches
T_ENC = N_KEEP + 1                                       # 5  (cls + visible)
T_DEC = NUM_PATCHES + 1                                  # 17 (cls + all patches)
HIDDEN = MLP_RATIO * EMBED_DIM                           # 128
WA = 3 * EMBED_DIM + EMBED_DIM + HIDDEN                  # 256: [Wqkv | Wproj | Wfc1]
OUT_PAD = 128                                            # lane-dense output width
LN_EPS_BLOCK = 1e-6
LN_EPS_FINAL = 1e-5
MXU_DTYPE = jnp.bfloat16                                 # MXU-boundary dtype


# ---------------- in-kernel helpers -----------------------------------------
def _mdot(a, b):
    """Matmul with bf16 operands at the MXU boundary, f32 accumulation."""
    return jnp.dot(a.astype(MXU_DTYPE), b.astype(MXU_DTYPE),
                   preferred_element_type=jnp.float32)


def _mdot_nt(a, b):
    """a @ b.T (contraction on the last dim of both), bf16 in / f32 out."""
    return jax.lax.dot_general(a.astype(MXU_DTYPE), b.astype(MXU_DTYPE),
                               (((1,), (1,)), ((), ())),
                               preferred_element_type=jnp.float32)


def _layer_norm(x, g, b, eps):
    mu = jnp.mean(x, axis=-1, keepdims=True)
    var = jnp.mean((x - mu) ** 2, axis=-1, keepdims=True)
    return (x - mu) * jax.lax.rsqrt(var + eps) * g + b


def _run_blocks(x, wa_ref, vb_ref, wb_ref, *, num_layers, num_heads):
    """Pre-norm ViT blocks on one batch's tokens x: (T, C)."""
    T, C = x.shape
    H = num_heads
    D = C // H
    scale = float(D) ** -0.5

    for l in range(num_layers):                       # static unroll (L <= 2)
        wa = wa_ref[l]                                # (C, WA) packed weights
        vb = vb_ref[l]                                # (8, WA) packed bias/LN
        wqkv = wa[:, :3 * C]
        wproj = wa[:, 3 * C:4 * C]
        wfc1 = wa[:, 4 * C:]
        wfc2 = wb_ref[l]                              # (HIDDEN, C)
        bqkv = vb[0:1, :3 * C]
        bproj = vb[0:1, 3 * C:4 * C]
        bfc1 = vb[0:1, 4 * C:]
        bfc2 = vb[1:2, :C]
        ln1g, ln1b = vb[2:3, :C], vb[3:4, :C]
        ln2g, ln2b = vb[4:5, :C], vb[5:6, :C]

        # --- attention (fused QKV matmul, heads sliced from the result) ---
        h = _layer_norm(x, ln1g, ln1b, LN_EPS_BLOCK)
        qkv = _mdot(h, wqkv) + bqkv                   # (T, 3C)
        attn = bproj                                  # proj bias added once
        for hh in range(H):                           # static unroll (H = 2)
            q = qkv[:, hh * D:(hh + 1) * D] * scale
            k = qkv[:, C + hh * D:C + (hh + 1) * D]
            v = qkv[:, 2 * C + hh * D:2 * C + (hh + 1) * D]
            s = _mdot_nt(q, k)                        # (T, T) per-batch scores
            s = s - jnp.max(s, axis=-1, keepdims=True)
            p = jnp.exp(s)
            inv = pl.reciprocal(jnp.sum(p, axis=-1, keepdims=True), approx=True)
            o = _mdot(p, v) * inv                     # normalize the small (T, D)
            # fused "concat heads + proj": accumulate o @ Wproj[rows of head hh]
            attn = attn + _mdot(o, wproj[hh * D:(hh + 1) * D, :])
        x = x + attn

        # --- MLP ---
        h2 = _layer_norm(x, ln2g, ln2b, LN_EPS_BLOCK)
        h2 = _mdot(h2, wfc1) + bfc1
        # TODO(synk): torch.nn.GELU defaults to exact erf; tanh approximation used here.
        h2 = jax.nn.gelu(h2, approximate=True)
        x = x + _mdot(h2, wfc2) + bfc2
    return x


# ---------------- fused MAE kernel (encoder + decoder, one batch/step) ------
def _mae_kernel(fwd_ref, bwd_ref,                     # scalar prefetch (SMEM)
                xcol_ref, patch_w_ref, enc_pos_ref, misc_ref,
                e_wa_ref, e_vb_ref, e_wb_ref,
                dec_pos_ref, d_wa_ref, d_vb_ref, d_wb_ref,
                head_ref,
                out_ref,
                pat_s, fext_s):
    b = pl.program_id(0)
    C = EMBED_DIM

    misc = misc_ref[...]                              # (8, C) packed vectors
    patch_b, cls_tok = misc[0:1, :], misc[1:2, :]
    enc_ln_g, enc_ln_b = misc[2:3, :], misc[3:4, :]
    mask_tok = misc[4:5, :]

    # ---- encoder: patchify conv (im2col matmul) + positional embedding ----
    pat_s[...] = (_mdot(xcol_ref[0], patch_w_ref[...])
                  + patch_b + enc_pos_ref[...])       # (Np, C)

    # ---- PatchShuffle keep-gather (dynamic row reads) + cls concat ----
    rows = [cls_tok]
    for j in range(N_KEEP):                           # static unroll (4)
        rows.append(pat_s[pl.ds(fwd_ref[b, j], 1), :])
    tok = jnp.concatenate(rows, axis=0)               # (T_ENC, C)

    tok = _run_blocks(tok, e_wa_ref, e_vb_ref, e_wb_ref,
                      num_layers=NUM_ENC_LAYERS, num_heads=NUM_ENC_HEADS)
    feat = _layer_norm(tok, enc_ln_g, enc_ln_b, LN_EPS_FINAL)   # (T_ENC, C)

    # ---- decoder: un-shuffle gather over [features ; mask tokens] + pos ----
    fext_s[...] = jnp.concatenate(
        [feat, jnp.broadcast_to(mask_tok, (T_DEC - T_ENC, C))], axis=0)
    drows = [fext_s[pl.ds(bwd_ref[b, t], 1), :] for t in range(T_DEC)]
    dtok = jnp.concatenate(drows, axis=0) + dec_pos_ref[...]    # (T_DEC, C)

    dtok = _run_blocks(dtok, d_wa_ref, d_vb_ref, d_wb_ref,
                       num_layers=NUM_DEC_LAYERS, num_heads=NUM_DEC_HEADS)

    # ---- drop cls token + prediction head (lane-padded to 128 lanes) ----
    head = head_ref[...]                              # (C+1, OUT_PAD): [W ; b]
    out_ref[0] = _mdot(dtok[1:, :], head[:C, :]) + head[C:C + 1, :]


# ---------------- pallas_call wrapper ----------------------------------------
def _rep_spec(a):
    zeros = (0,) * a.ndim
    return pl.BlockSpec(a.shape, lambda b, fwd, bwd, _z=zeros: _z)


def run_mae(fwd_keep, bwd_ext, xcol, ep, dp):
    B = xcol.shape[0]
    weights = (ep['patch_w'], ep['pos_embedding'], ep['misc'],
               ep['w_a'], ep['vb'], ep['w_b'],
               dp['pos_embedding'], dp['w_a'], dp['vb'], dp['w_b'],
               dp['head'])
    in_specs = [pl.BlockSpec((1, NUM_PATCHES, PATCH_DIM),
                             lambda b, fwd, bwd: (b, 0, 0))]
    in_specs += [_rep_spec(a) for a in weights]

    grid_spec = pltpu.PrefetchScalarGridSpec(
        num_scalar_prefetch=2, grid=(B,),
        in_specs=in_specs,
        out_specs=pl.BlockSpec((1, NUM_PATCHES, OUT_PAD),
                               lambda b, fwd, bwd: (b, 0, 0)),
        scratch_shapes=[pltpu.VMEM((NUM_PATCHES, EMBED_DIM), jnp.float32),
                        pltpu.VMEM((T_DEC, EMBED_DIM), jnp.float32)])

    return pl.pallas_call(
        _mae_kernel,
        out_shape=jax.ShapeDtypeStruct((B, NUM_PATCHES, OUT_PAD), jnp.float32),
        grid_spec=grid_spec,
        compiler_params=pltpu.CompilerParams(dimension_semantics=("parallel",)),
    )(fwd_keep, bwd_ext, xcol, *weights)


# ---------------- host glue (index math / reshapes only) ---------------------
def patch2img(patches):
    """(B, Np, c*p1*p2) -> (B, c, H, W)  ==  '(h w) b (c p1 p2) -> b c (h p1) (w p2)'."""
    B = patches.shape[0]
    Hp = IMAGE_SIZE // PATCH_SIZE
    x = patches.reshape(B, Hp, Hp, 3, PATCH_SIZE, PATCH_SIZE)
    x = x.transpose(0, 3, 1, 4, 2, 5)
    return x.reshape(B, 3, IMAGE_SIZE, IMAGE_SIZE)


def mae_vit_forward(img, enc_params, dec_params):
    B = img.shape[0]
    p = PATCH_SIZE
    Hp = IMAGE_SIZE // p

    # im2col for the patchify conv (kernel == stride == patch): (B, Np, 3*p*p)
    xcol = img.reshape(B, 3, Hp, p, Hp, p).transpose(0, 2, 4, 1, 3, 5)
    xcol = xcol.reshape(B, NUM_PATCHES, PATCH_DIM)

    # PatchShuffle permutations: host numpy RNG, exactly like the reference.
    fwd_list, bwd_list = [], []
    for _ in range(B):
        f = np.random.permutation(NUM_PATCHES)
        fwd_list.append(f)
        bwd_list.append(np.argsort(f))
    fwd = np.stack(fwd_list, axis=0).astype(np.int32)            # (B, Np)
    bwd = np.stack(bwd_list, axis=0).astype(np.int32)            # (B, Np)
    fwd_keep = jnp.asarray(fwd[:, :N_KEEP])                      # (B, N_KEEP)
    bwd_ext = np.concatenate([np.zeros((B, 1), np.int32), bwd + 1], axis=1)

    out = run_mae(fwd_keep, jnp.asarray(bwd_ext), xcol, enc_params, dec_params)
    predicted_img = patch2img(out[:, :, :PATCH_DIM])             # strip lane padding

    # mask: pure index math, replicates the reference exactly
    #   mask_in[r] = 1 iff r >= T_ENC;  mask_out[i] = mask_in[backward[i]]
    mask_flag = (bwd >= T_ENC).astype(np.float32)                # (B, Np)
    mask_patches = np.broadcast_to(mask_flag[:, :, None],
                                   (B, NUM_PATCHES, PATCH_DIM))
    mask = patch2img(jnp.asarray(mask_patches))
    return predicted_img, mask


# ---------------- parameter init ---------------------------------------------
def init_params(key):
    keys = jax.random.split(key, 16)
    ki = iter(keys)

    def nrm(shape, std=0.02):
        return std * jax.random.normal(next(ki), shape, dtype=jnp.float32)

    C = EMBED_DIM

    def block_slabs(num_layers):
        L = num_layers
        w_a = jnp.concatenate([nrm((L, C, 3 * C)),        # Wqkv
                               nrm((L, C, C)),            # Wproj
                               nrm((L, C, HIDDEN))],      # Wfc1
                              axis=-1)                     # (L, C, WA)
        w_b = nrm((L, HIDDEN, C))                          # Wfc2
        vb = np.zeros((L, 8, WA), np.float32)              # biases + LN params
        vb[:, 2, :C] = 1.0                                 # ln1 gamma
        vb[:, 4, :C] = 1.0                                 # ln2 gamma
        return w_a, jnp.asarray(vb), w_b

    e_wa, e_vb, e_wb = block_slabs(NUM_ENC_LAYERS)
    d_wa, d_vb, d_wb = block_slabs(NUM_DEC_LAYERS)

    misc = np.zeros((8, C), np.float32)
    misc[1] = np.asarray(nrm((C,)))                        # cls token
    misc[2] = 1.0                                          # encoder final LN gamma
    misc[4] = np.asarray(nrm((C,)))                        # mask token
    # row 0: patchify bias (zeros); row 3: final LN beta (zeros); rows 5-7 pad

    head = np.zeros((C + 1, OUT_PAD), np.float32)          # [W ; b], lane-padded
    head[:C, :PATCH_DIM] = np.asarray(nrm((C, PATCH_DIM)))

    enc = dict(patch_w=nrm((PATCH_DIM, C)),                # Conv2d(3,C,k=p,s=p) as matmul
               pos_embedding=nrm((NUM_PATCHES, C)),
               misc=jnp.asarray(misc),
               w_a=e_wa, vb=e_vb, w_b=e_wb)
    dec = dict(pos_embedding=nrm((T_DEC, C)),
               w_a=d_wa, vb=d_vb, w_b=d_wb,
               head=jnp.asarray(head))
    return enc, dec


if __name__ == "__main__":
    np.random.seed(0)                     # deterministic PatchShuffle permutations
    key = jax.random.PRNGKey(0)
    k_img, k_par = jax.random.split(key)
    img = jax.random.normal(k_img, (BATCH, 3, IMAGE_SIZE, IMAGE_SIZE),
                            dtype=jnp.float32)
    enc_params, dec_params = init_params(k_par)

    predicted_img, mask = mae_vit_forward(img, enc_params, dec_params)
    jax.block_until_ready((predicted_img, mask))

    assert predicted_img.shape == (BATCH, 3, IMAGE_SIZE, IMAGE_SIZE)
    assert mask.shape == (BATCH, 3, IMAGE_SIZE, IMAGE_SIZE)
    assert predicted_img.dtype == jnp.float32 and mask.dtype == jnp.float32
    assert bool(jnp.all(jnp.isfinite(predicted_img))) and bool(jnp.all(jnp.isfinite(mask)))
    print("KERNEL_OK")
</pallas_src>

<mosaic_0001>
module attributes {stable_mosaic.version = 11 : i64} {
  func.func @_mae_kernel(%arg0: i32, %arg1: memref<2x4xi32, #tpu.memory_space<smem>>, %arg2: memref<2x17xi32, #tpu.memory_space<smem>>, %arg3: memref<1x16x48xf32, #tpu.memory_space<vmem>>, %arg4: memref<48x32xf32, #tpu.memory_space<vmem>>, %arg5: memref<16x32xf32, #tpu.memory_space<vmem>>, %arg6: memref<8x32xf32, #tpu.memory_space<vmem>>, %arg7: memref<2x32x256xf32, #tpu.memory_space<vmem>>, %arg8: memref<2x8x256xf32, #tpu.memory_space<vmem>>, %arg9: memref<2x128x32xf32, #tpu.memory_space<vmem>>, %arg10: memref<17x32xf32, #tpu.memory_space<vmem>>, %arg11: memref<1x32x256xf32, #tpu.memory_space<vmem>>, %arg12: memref<1x8x256xf32, #tpu.memory_space<vmem>>, %arg13: memref<1x128x32xf32, #tpu.memory_space<vmem>>, %arg14: memref<33x128xf32, #tpu.memory_space<vmem>>, %arg15: memref<1x16x128xf32, #tpu.memory_space<vmem>>, %arg16: memref<16x32xf32, #tpu.memory_space<vmem>>, %arg17: memref<17x32xf32, #tpu.memory_space<vmem>>) attributes {dimension_semantics = [#tpu.dimension_semantics<parallel>], iteration_bounds = array<i64: 2>, scalar_prefetch = 2 : i64, scratch_operands = 2 : i64, tpu.core_type = #tpu.core_type<tc>, window_params = [{transform_indices = @transform_0, window_bounds = array<i64: 1, 16, 48>}, {pipeline_mode = #tpu.pipeline_mode<synchronous>, transform_indices = @transform_1, window_bounds = array<i64: 48, 32>}, {pipeline_mode = #tpu.pipeline_mode<synchronous>, transform_indices = @transform_2, window_bounds = array<i64: 16, 32>}, {pipeline_mode = #tpu.pipeline_mode<synchronous>, transform_indices = @transform_3, window_bounds = array<i64: 8, 32>}, {pipeline_mode = #tpu.pipeline_mode<synchronous>, transform_indices = @transform_4, window_bounds = array<i64: 2, 32, 256>}, {pipeline_mode = #tpu.pipeline_mode<synchronous>, transform_indices = @transform_5, window_bounds = array<i64: 2, 8, 256>}, {pipeline_mode = #tpu.pipeline_mode<synchronous>, transform_indices = @transform_6, window_bounds = array<i64: 2, 128, 32>}, {pipeline_mode = #tpu.pipeline_mode<synchronous>, transform_indices = @transform_7, window_bounds = array<i64: 17, 32>}, {pipeline_mode = #tpu.pipeline_mode<synchronous>, transform_indices = @transform_8, window_bounds = array<i64: 1, 32, 256>}, {pipeline_mode = #tpu.pipeline_mode<synchronous>, transform_indices = @transform_9, window_bounds = array<i64: 1, 8, 256>}, {pipeline_mode = #tpu.pipeline_mode<synchronous>, transform_indices = @transform_10, window_bounds = array<i64: 1, 128, 32>}, {pipeline_mode = #tpu.pipeline_mode<synchronous>, transform_indices = @transform_11, window_bounds = array<i64: 33, 128>}, {transform_indices = @transform_12, window_bounds = array<i64: 1, 16, 128>}]} {
    %c0 = arith.constant 0 : index
    %c0_0 = arith.constant 0 : index
    %0 = vector.load %arg6[%c0, %c0_0] : memref<8x32xf32, #tpu.memory_space<vmem>>, vector<8x32xf32>
    %1 = vector.extract_strided_slice %0 {offsets = [0, 0], sizes = [1, 32], strides = [1, 1]} : vector<8x32xf32> to vector<1x32xf32>
    %2 = vector.extract_strided_slice %0 {offsets = [1, 0], sizes = [1, 32], strides = [1, 1]} : vector<8x32xf32> to vector<1x32xf32>
    %3 = vector.extract_strided_slice %0 {offsets = [2, 0], sizes = [1, 32], strides = [1, 1]} : vector<8x32xf32> to vector<1x32xf32>
    %4 = vector.extract_strided_slice %0 {offsets = [3, 0], sizes = [1, 32], strides = [1, 1]} : vector<8x32xf32> to vector<1x32xf32>
    %5 = vector.extract_strided_slice %0 {offsets = [4, 0], sizes = [1, 32], strides = [1, 1]} : vector<8x32xf32> to vector<1x32xf32>
    %c0_1 = arith.constant 0 : index
    %c0_2 = arith.constant 0 : index
    %c0_3 = arith.constant 0 : index
    %6 = vector.load %arg3[%c0_1, %c0_2, %c0_3] : memref<1x16x48xf32, #tpu.memory_space<vmem>>, vector<1x16x48xf32>
    %7 = vector.shape_cast %6 : vector<1x16x48xf32> to vector<16x48xf32>
    %c0_4 = arith.constant 0 : index
    %c0_5 = arith.constant 0 : index
    %8 = vector.load %arg4[%c0_4, %c0_5] : memref<48x32xf32, #tpu.memory_space<vmem>>, vector<48x32xf32>
    %9 = arith.truncf %7 : vector<16x48xf32> to vector<16x48xbf16>
    %10 = arith.truncf %8 : vector<48x32xf32> to vector<48x32xbf16>
    %cst = arith.constant dense<0.000000e+00> : vector<16x32xf32>
    %11 = tpu.matmul %9, %10, %cst {dimension_numbers = #tpu.dot_dimension_numbers<[1], [0], [0], [1], [0, 0, 1, 1], [], []>} : vector<16x48xbf16>, vector<48x32xbf16>, vector<16x32xf32> -> vector<16x32xf32>
    %12 = vector.broadcast %1 : vector<1x32xf32> to vector<16x32xf32>
    %13 = arith.addf %11, %12 : vector<16x32xf32>
    %c0_6 = arith.constant 0 : index
    %c0_7 = arith.constant 0 : index
    %14 = vector.load %arg5[%c0_6, %c0_7] : memref<16x32xf32, #tpu.memory_space<vmem>>, vector<16x32xf32>
    %15 = arith.addf %13, %14 : vector<16x32xf32>
    %c0_8 = arith.constant 0 : index
    %c0_9 = arith.constant 0 : index
    %16 = vector.load %arg16[%c0_8, %c0_9] : memref<16x32xf32, #tpu.memory_space<vmem>>, vector<16x32xf32>
    tpu.vector_store %arg16[%c0_8, %c0_9], %15 {strides = array<i32>} : memref<16x32xf32, #tpu.memory_space<vmem>>, vector<16x32xf32>,
    %17 = arith.index_cast %arg0 : i32 to index
    %c0_10 = arith.constant 0 : index
    %18 = memref.load %arg1[%17, %c0_10] : memref<2x4xi32, #tpu.memory_space<smem>>
    %19 = arith.index_cast %18 : i32 to index
    %c0_11 = arith.constant 0 : index
    %20 = vector.load %arg16[%19, %c0_11] : memref<16x32xf32, #tpu.memory_space<vmem>>, vector<1x32xf32>
    %21 = arith.index_cast %arg0 : i32 to index
    %c1 = arith.constant 1 : index
    %22 = memref.load %arg1[%21, %c1] : memref<2x4xi32, #tpu.memory_space<smem>>
    %23 = arith.index_cast %22 : i32 to index
    %c0_12 = arith.constant 0 : index
    %24 = vector.load %arg16[%23, %c0_12] : memref<16x32xf32, #tpu.memory_space<vmem>>, vector<1x32xf32>
    %25 = arith.index_cast %arg0 : i32 to index
    %c2 = arith.constant 2 : index
    %26 = memref.load %arg1[%25, %c2] : memref<2x4xi32, #tpu.memory_space<smem>>
    %27 = arith.index_cast %26 : i32 to index
    %c0_13 = arith.constant 0 : index
    %28 = vector.load %arg16[%27, %c0_13] : memref<16x32xf32, #tpu.memory_space<vmem>>, vector<1x32xf32>
    %29 = arith.index_cast %arg0 : i32 to index
    %c3 = arith.constant 3 : index
    %30 = memref.load %arg1[%29, %c3] : memref<2x4xi32, #tpu.memory_space<smem>>
    %31 = arith.index_cast %30 : i32 to index
    %c0_14 = arith.constant 0 : index
    %32 = vector.load %arg16[%31, %c0_14] : memref<16x32xf32, #tpu.memory_space<vmem>>, vector<1x32xf32>
    %33 = tpu.concatenate %2, %20, %24, %28, %32 in 0 : vector<1x32xf32>, vector<1x32xf32>, vector<1x32xf32>, vector<1x32xf32>, vector<1x32xf32> -> vector<5x32xf32>
    %c0_15 = arith.constant 0 : index
    %c0_16 = arith.constant 0 : index
    %c0_17 = arith.constant 0 : index
    %34 = vector.load %arg7[%c0_15, %c0_16, %c0_17] : memref<2x32x256xf32, #tpu.memory_space<vmem>>, vector<1x32x256xf32>
    %35 = vector.shape_cast %34 : vector<1x32x256xf32> to vector<32x256xf32>
    %c0_18 = arith.constant 0 : index
    %c0_19 = arith.constant 0 : index
    %c0_20 = arith.constant 0 : index
    %36 = vector.load %arg8[%c0_18, %c0_19, %c0_20] : memref<2x8x256xf32, #tpu.memory_space<vmem>>, vector<1x8x256xf32>
    %37 = vector.shape_cast %36 : vector<1x8x256xf32> to vector<8x256xf32>
    %38 = vector.extract_strided_slice %35 {offsets = [0, 0], sizes = [32, 96], strides = [1, 1]} : vector<32x256xf32> to vector<32x96xf32>
    %39 = vector.extract_strided_slice %35 {offsets = [0, 96], sizes = [32, 32], strides = [1, 1]} : vector<32x256xf32> to vector<32x32xf32>
    %40 = vector.extract_strided_slice %35 {offsets = [0, 128], sizes = [32, 128], strides = [1, 1]} : vector<32x256xf32> to vector<32x128xf32>
    %c0_21 = arith.constant 0 : index
    %c0_22 = arith.constant 0 : index
    %c0_23 = arith.constant 0 : index
    %41 = vector.load %arg9[%c0_21, %c0_22, %c0_23] : memref<2x128x32xf32, #tpu.memory_space<vmem>>, vector<1x128x32xf32>
    %42 = vector.shape_cast %41 : vector<1x128x32xf32> to vector<128x32xf32>
    %43 = vector.extract_strided_slice %37 {offsets = [0, 0], sizes = [1, 96], strides = [1, 1]} : vector<8x256xf32> to vector<1x96xf32>
    %44 = vector.extract_strided_slice %37 {offsets = [0, 96], sizes = [1, 32], strides = [1, 1]} : vector<8x256xf32> to vector<1x32xf32>
    %45 = vector.extract_strided_slice %37 {offsets = [0, 128], sizes = [1, 128], strides = [1, 1]} : vector<8x256xf32> to vector<1x128xf32>
    %46 = vector.extract_strided_slice %37 {offsets = [1, 0], sizes = [1, 32], strides = [1, 1]} : vector<8x256xf32> to vector<1x32xf32>
    %47 = vector.extract_strided_slice %37 {offsets = [2, 0], sizes = [1, 32], strides = [1, 1]} : vector<8x256xf32> to vector<1x32xf32>
    %48 = vector.extract_strided_slice %37 {offsets = [3, 0], sizes = [1, 32], strides = [1, 1]} : vector<8x256xf32> to vector<1x32xf32>
    %49 = vector.extract_strided_slice %37 {offsets = [4, 0], sizes = [1, 32], strides = [1, 1]} : vector<8x256xf32> to vector<1x32xf32>
    %50 = vector.extract_strided_slice %37 {offsets = [5, 0], sizes = [1, 32], strides = [1, 1]} : vector<8x256xf32> to vector<1x32xf32>
    %cst_24 = arith.constant dense<0.000000e+00> : vector<5xf32>
    %51 = vector.multi_reduction <add>, %33, %cst_24 [1] : vector<5x32xf32> to vector<5xf32>
    %52 = vector.shape_cast %51 : vector<5xf32> to vector<5x1xf32>
    %cst_25 = arith.constant 3.200000e+01 : f32
    %53 = vector.broadcast %cst_25 : f32 to vector<5x1xf32>
    %54 = arith.divf %52, %53 : vector<5x1xf32>
    %55 = vector.broadcast %54 : vector<5x1xf32> to vector<5x32xf32>
    %56 = arith.subf %33, %55 : vector<5x32xf32>
    %57 = arith.mulf %56, %56 : vector<5x32xf32>
    %cst_26 = arith.constant dense<0.000000e+00> : vector<5xf32>
    %58 = vector.multi_reduction <add>, %57, %cst_26 [1] : vector<5x32xf32> to vector<5xf32>
    %59 = vector.shape_cast %58 : vector<5xf32> to vector<5x1xf32>
    %cst_27 = arith.constant 3.200000e+01 : f32
    %60 = vector.broadcast %cst_27 : f32 to vector<5x1xf32>
    %61 = arith.divf %59, %60 : vector<5x1xf32>
    %62 = vector.broadcast %54 : vector<5x1xf32> to vector<5x32xf32>
    %63 = arith.subf %33, %62 : vector<5x32xf32>
    %cst_28 = arith.constant 9.99999997E-7 : f32
    %64 = vector.broadcast %cst_28 : f32 to vector<5x1xf32>
    %65 = arith.addf %61, %64 : vector<5x1xf32>
    %66 = math.rsqrt %65 : vector<5x1xf32>
    %67 = vector.broadcast %66 : vector<5x1xf32> to vector<5x32xf32>
    %68 = arith.mulf %63, %67 : vector<5x32xf32>
    %69 = vector.broadcast %47 : vector<1x32xf32> to vector<5x32xf32>
    %70 = arith.mulf %68, %69 : vector<5x32xf32>
    %71 = vector.broadcast %48 : vector<1x32xf32> to vector<5x32xf32>
    %72 = arith.addf %70, %71 : vector<5x32xf32>
    %73 = arith.truncf %72 : vector<5x32xf32> to vector<5x32xbf16>
    %74 = arith.truncf %38 : vector<32x96xf32> to vector<32x96xbf16>
    %cst_29 = arith.constant dense<0.000000e+00> : vector<5x96xf32>
    %75 = tpu.matmul %73, %74, %cst_29 {dimension_numbers = #tpu.dot_dimension_numbers<[1], [0], [0], [1], [0, 0, 1, 1], [], []>} : vector<5x32xbf16>, vector<32x96xbf16>, vector<5x96xf32> -> vector<5x96xf32>
    %76 = vector.broadcast %43 : vector<1x96xf32> to vector<5x96xf32>
    %77 = arith.addf %75, %76 : vector<5x96xf32>
    %78 = vector.extract_strided_slice %77 {offsets = [0, 0], sizes = [5, 16], strides = [1, 1]} : vector<5x96xf32> to vector<5x16xf32>
    %cst_30 = arith.constant 2.500000e-01 : f32
    %79 = vector.broadcast %cst_30 : f32 to vector<5x16xf32>
    %80 = arith.mulf %78, %79 : vector<5x16xf32>
    %81 = vector.extract_strided_slice %77 {offsets = [0, 32], sizes = [5, 16], strides = [1, 1]} : vector<5x96xf32> to vector<5x16xf32>
    %82 = vector.extract_strided_slice %77 {offsets = [0, 64], sizes = [5, 16], strides = [1, 1]} : vector<5x96xf32> to vector<5x16xf32>
    %83 = arith.truncf %80 : vector<5x16xf32> to vector<5x16xbf16>
    %84 = arith.truncf %81 : vector<5x16xf32> to vector<5x16xbf16>
    %cst_31 = arith.constant dense<0.000000e+00> : vector<5x5xf32>
    %85 = tpu.matmul %83, %84, %cst_31 {dimension_numbers = #tpu.dot_dimension_numbers<[1], [1], [0], [0], [0, 0, 1, 0], [], []>} : vector<5x16xbf16>, vector<5x16xbf16>, vector<5x5xf32> -> vector<5x5xf32>
    %cst_32 = arith.constant dense<0xFF800000> : vector<5xf32>
    %86 = vector.multi_reduction <maximumf>, %85, %cst_32 [1] : vector<5x5xf32> to vector<5xf32>
    %87 = vector.shape_cast %86 : vector<5xf32> to vector<5x1xf32>
    %88 = vector.broadcast %87 : vector<5x1xf32> to vector<5x5xf32>
    %89 = arith.subf %85, %88 : vector<5x5xf32>
    %90 = math.exp %89 : vector<5x5xf32>
    %cst_33 = arith.constant dense<0.000000e+00> : vector<5xf32>
    %91 = vector.multi_reduction <add>, %90, %cst_33 [1] : vector<5x5xf32> to vector<5xf32>
    %92 = vector.shape_cast %91 : vector<5xf32> to vector<5x1xf32>
    %93 = tpu.reciprocal %92 {approx = true} : vector<5x1xf32> -> vector<5x1xf32>
    %94 = arith.truncf %90 : vector<5x5xf32> to vector<5x5xbf16>
    %95 = arith.truncf %82 : vector<5x16xf32> to vector<5x16xbf16>
    %cst_34 = arith.constant dense<0.000000e+00> : vector<5x16xf32>
    %96 = tpu.matmul %94, %95, %cst_34 {dimension_numbers = #tpu.dot_dimension_numbers<[1], [0], [0], [1], [0, 0, 1, 1], [], []>} : vector<5x5xbf16>, vector<5x16xbf16>, vector<5x16xf32> -> vector<5x16xf32>
    %97 = vector.broadcast %93 : vector<5x1xf32> to vector<5x16xf32>
    %98 = arith.mulf %96, %97 : vector<5x16xf32>
    %99 = vector.extract_strided_slice %39 {offsets = [0, 0], sizes = [16, 32], strides = [1, 1]} : vector<32x32xf32> to vector<16x32xf32>
    %100 = arith.truncf %98 : vector<5x16xf32> to vector<5x16xbf16>
    %101 = arith.truncf %99 : vector<16x32xf32> to vector<16x32xbf16>
    %cst_35 = arith.constant dense<0.000000e+00> : vector<5x32xf32>
    %102 = tpu.matmul %100, %101, %cst_35 {dimension_numbers = #tpu.dot_dimension_numbers<[1], [0], [0], [1], [0, 0, 1, 1], [], []>} : vector<5x16xbf16>, vector<16x32xbf16>, vector<5x32xf32> -> vector<5x32xf32>
    %103 = vector.broadcast %44 : vector<1x32xf32> to vector<5x32xf32>
    %104 = arith.addf %103, %102 : vector<5x32xf32>
    %105 = vector.extract_strided_slice %77 {offsets = [0, 16], sizes = [5, 16], strides = [1, 1]} : vector<5x96xf32> to vector<5x16xf32>
    %cst_36 = arith.constant 2.500000e-01 : f32
    %106 = vector.broadcast %cst_36 : f32 to vector<5x16xf32>
    %107 = arith.mulf %105, %106 : vector<5x16xf32>
    %108 = vector.extract_strided_slice %77 {offsets = [0, 48], sizes = [5, 16], strides = [1, 1]} : vector<5x96xf32> to vector<5x16xf32>
    %109 = vector.extract_strided_slice %77 {offsets = [0, 80], sizes = [5, 16], strides = [1, 1]} : vector<5x96xf32> to vector<5x16xf32>
    %110 = arith.truncf %107 : vector<5x16xf32> to vector<5x16xbf16>
    %111 = arith.truncf %108 : vector<5x16xf32> to vector<5x16xbf16>
    %cst_37 = arith.constant dense<0.000000e+00> : vector<5x5xf32>
    %112 = tpu.matmul %110, %111, %cst_37 {dimension_numbers = #tpu.dot_dimension_numbers<[1], [1], [0], [0], [0, 0, 1, 0], [], []>} : vector<5x16xbf16>, vector<5x16xbf16>, vector<5x5xf32> -> vector<5x5xf32>
    %cst_38 = arith.constant dense<0xFF800000> : vector<5xf32>
    %113 = vector.multi_reduction <maximumf>, %112, %cst_38 [1] : vector<5x5xf32> to vector<5xf32>
    %114 = vector.shape_cast %113 : vector<5xf32> to vector<5x1xf32>
    %115 = vector.broadcast %114 : vector<5x1xf32> to vector<5x5xf32>
    %116 = arith.subf %112, %115 : vector<5x5xf32>
    %117 = math.exp %116 : vector<5x5xf32>
    %cst_39 = arith.constant dense<0.000000e+00> : vector<5xf32>
    %118 = vector.multi_reduction <add>, %117, %cst_39 [1] : vector<5x5xf32> to vector<5xf32>
    %119 = vector.shape_cast %118 : vector<5xf32> to vector<5x1xf32>
    %120 = tpu.reciprocal %119 {approx = true} : vector<5x1xf32> -> vector<5x1xf32>
    %121 = arith.truncf %117 : vector<5x5xf32> to vector<5x5xbf16>
    %122 = arith.truncf %109 : vector<5x16xf32> to vector<5x16xbf16>
    %cst_40 = arith.constant dense<0.000000e+00> : vector<5x16xf32>
    %123 = tpu.matmul %121, %122, %cst_40 {dimension_numbers = #tpu.dot_dimension_numbers<[1], [0], [0], [1], [0, 0, 1, 1], [], []>} : vector<5x5xbf16>, vector<5x16xbf16>, vector<5x16xf32> -> vector<5x16xf32>
    %124 = vector.broadcast %120 : vector<5x1xf32> to vector<5x16xf32>
    %125 = arith.mulf %123, %124 : vector<5x16xf32>
    %126 = vector.extract_strided_slice %39 {offsets = [16, 0], sizes = [16, 32], strides = [1, 1]} : vector<32x32xf32> to vector<16x32xf32>
    %127 = arith.truncf %125 : vector<5x16xf32> to vector<5x16xbf16>
    %128 = arith.truncf %126 : vector<16x32xf32> to vector<16x32xbf16>
    %cst_41 = arith.constant dense<0.000000e+00> : vector<5x32xf32>
    %129 = tpu.matmul %127, %128, %cst_41 {dimension_numbers = #tpu.dot_dimension_numbers<[1], [0], [0], [1], [0, 0, 1, 1], [], []>} : vector<5x16xbf16>, vector<16x32xbf16>, vector<5x32xf32> -> vector<5x32xf32>
    %130 = arith.addf %104, %129 : vector<5x32xf32>
    %131 = arith.addf %33, %130 : vector<5x32xf32>
    %cst_42 = arith.constant dense<0.000000e+00> : vector<5xf32>
    %132 = vector.multi_reduction <add>, %131, %cst_42 [1] : vector<5x32xf32> to vector<5xf32>
    %133 = vector.shape_cast %132 : vector<5xf32> to vector<5x1xf32>
    %cst_43 = arith.constant 3.200000e+01 : f32
    %134 = vector.broadcast %cst_43 : f32 to vector<5x1xf32>
    %135 = arith.divf %133, %134 : vector<5x1xf32>
    %136 = vector.broadcast %135 : vector<5x1xf32> to vector<5x32xf32>
    %137 = arith.subf %131, %136 : vector<5x32xf32>
    %138 = arith.mulf %137, %137 : vector<5x32xf32>
    %cst_44 = arith.constant dense<0.000000e+00> : vector<5xf32>
    %139 = vector.multi_reduction <add>, %138, %cst_44 [1] : vector<5x32xf32> to vector<5xf32>
    %140 = vector.shape_cast %139 : vector<5xf32> to vector<5x1xf32>
    %cst_45 = arith.constant 3.200000e+01 : f32
    %141 = vector.broadcast %cst_45 : f32 to vector<5x1xf32>
    %142 = arith.divf %140, %141 : vector<5x1xf32>
    %143 = vector.broadcast %135 : vector<5x1xf32> to vector<5x32xf32>
    %144 = arith.subf %131, %143 : vector<5x32xf32>
    %cst_46 = arith.constant 9.99999997E-7 : f32
    %145 = vector.broadcast %cst_46 : f32 to vector<5x1xf32>
    %146 = arith.addf %142, %145 : vector<5x1xf32>
    %147 = math.rsqrt %146 : vector<5x1xf32>
    %148 = vector.broadcast %147 : vector<5x1xf32> to vector<5x32xf32>
    %149 = arith.mulf %144, %148 : vector<5x32xf32>
    %150 = vector.broadcast %49 : vector<1x32xf32> to vector<5x32xf32>
    %151 = arith.mulf %149, %150 : vector<5x32xf32>
    %152 = vector.broadcast %50 : vector<1x32xf32> to vector<5x32xf32>
    %153 = arith.addf %151, %152 : vector<5x32xf32>
    %154 = arith.truncf %153 : vector<5x32xf32> to vector<5x32xbf16>
    %155 = arith.truncf %40 : vector<32x128xf32> to vector<32x128xbf16>
    %cst_47 = arith.constant dense<0.000000e+00> : vector<5x128xf32>
    %156 = tpu.matmul %154, %155, %cst_47 {dimension_numbers = #tpu.dot_dimension_numbers<[1], [0], [0], [1], [0, 0, 1, 1], [], []>} : vector<5x32xbf16>, vector<32x128xbf16>, vector<5x128xf32> -> vector<5x128xf32>
    %157 = vector.broadcast %45 : vector<1x128xf32> to vector<5x128xf32>
    %158 = arith.addf %156, %157 : vector<5x128xf32>
    %159 = arith.mulf %158, %158 : vector<5x128xf32>
    %160 = arith.mulf %158, %159 : vector<5x128xf32>
    %cst_48 = arith.constant 4.471500e-02 : f32
    %161 = vector.broadcast %cst_48 : f32 to vector<5x128xf32>
    %162 = arith.mulf %161, %160 : vector<5x128xf32>
    %163 = arith.addf %158, %162 : vector<5x128xf32>
    %cst_49 = arith.constant 0.797884583 : f32
    %164 = vector.broadcast %cst_49 : f32 to vector<5x128xf32>
    %165 = arith.mulf %164, %163 : vector<5x128xf32>
    %166 = math.tanh %165 : vector<5x128xf32>
    %cst_50 = arith.constant 1.000000e+00 : f32
    %167 = vector.broadcast %cst_50 : f32 to vector<5x128xf32>
    %168 = arith.addf %167, %166 : vector<5x128xf32>
    %cst_51 = arith.constant 5.000000e-01 : f32
    %169 = vector.broadcast %cst_51 : f32 to vector<5x128xf32>
    %170 = arith.mulf %169, %168 : vector<5x128xf32>
    %171 = arith.mulf %158, %170 : vector<5x128xf32>
    %172 = arith.truncf %171 : vector<5x128xf32> to vector<5x128xbf16>
    %173 = arith.truncf %42 : vector<128x32xf32> to vector<128x32xbf16>
    %cst_52 = arith.constant dense<0.000000e+00> : vector<5x32xf32>
    %174 = tpu.matmul %172, %173, %cst_52 {dimension_numbers = #tpu.dot_dimension_numbers<[1], [0], [0], [1], [0, 0, 1, 1], [], []>} : vector<5x128xbf16>, vector<128x32xbf16>, vector<5x32xf32> -> vector<5x32xf32>
    %175 = arith.addf %131, %174 : vector<5x32xf32>
    %176 = vector.broadcast %46 : vector<1x32xf32> to vector<5x32xf32>
    %177 = arith.addf %175, %176 : vector<5x32xf32>
    %c1_53 = arith.constant 1 : index
    %c0_54 = arith.constant 0 : index
    %c0_55 = arith.constant 0 : index
    %178 = vector.load %arg7[%c1_53, %c0_54, %c0_55] : memref<2x32x256xf32, #tpu.memory_space<vmem>>, vector<1x32x256xf32>
    %179 = vector.shape_cast %178 : vector<1x32x256xf32> to vector<32x256xf32>
    %c1_56 = arith.constant 1 : index
    %c0_57 = arith.constant 0 : index
    %c0_58 = arith.constant 0 : index
    %180 = vector.load %arg8[%c1_56, %c0_57, %c0_58] : memref<2x8x256xf32, #tpu.memory_space<vmem>>, vector<1x8x256xf32>
    %181 = vector.shape_cast %180 : vector<1x8x256xf32> to vector<8x256xf32>
    %182 = vector.extract_strided_slice %179 {offsets = [0, 0], sizes = [32, 96], strides = [1, 1]} : vector<32x256xf32> to vector<32x96xf32>
    %183 = vector.extract_strided_slice %179 {offsets = [0, 96], sizes = [32, 32], strides = [1, 1]} : vector<32x256xf32> to vector<32x32xf32>
    %184 = vector.extract_strided_slice %179 {offsets = [0, 128], sizes = [32, 128], strides = [1, 1]} : vector<32x256xf32> to vector<32x128xf32>
    %c1_59 = arith.constant 1 : index
    %c0_60 = arith.constant 0 : index
    %c0_61 = arith.constant 0 : index
    %185 = vector.load %arg9[%c1_59, %c0_60, %c0_61] : memref<2x128x32xf32, #tpu.memory_space<vmem>>, vector<1x128x32xf32>
    %186 = vector.shape_cast %185 : vector<1x128x32xf32> to vector<128x32xf32>
    %187 = vector.extract_strided_slice %181 {offsets = [0, 0], sizes = [1, 96], strides = [1, 1]} : vector<8x256xf32> to vector<1x96xf32>
    %188 = vector.extract_strided_slice %181 {offsets = [0, 96], sizes = [1, 32], strides = [1, 1]} : vector<8x256xf32> to vector<1x32xf32>
    %189 = vector.extract_strided_slice %181 {offsets = [0, 128], sizes = [1, 128], strides = [1, 1]} : vector<8x256xf32> to vector<1x128xf32>
    %190 = vector.extract_strided_slice %181 {offsets = [1, 0], sizes = [1, 32], strides = [1, 1]} : vector<8x256xf32> to vector<1x32xf32>
    %191 = vector.extract_strided_slice %181 {offsets = [2, 0], sizes = [1, 32], strides = [1, 1]} : vector<8x256xf32> to vector<1x32xf32>
    %192 = vector.extract_strided_slice %181 {offsets = [3, 0], sizes = [1, 32], strides = [1, 1]} : vector<8x256xf32> to vector<1x32xf32>
    %193 = vector.extract_strided_slice %181 {offsets = [4, 0], sizes = [1, 32], strides = [1, 1]} : vector<8x256xf32> to vector<1x32xf32>
    %194 = vector.extract_strided_slice %181 {offsets = [5, 0], sizes = [1, 32], strides = [1, 1]} : vector<8x256xf32> to vector<1x32xf32>
    %cst_62 = arith.constant dense<0.000000e+00> : vector<5xf32>
    %195 = vector.multi_reduction <add>, %177, %cst_62 [1] : vector<5x32xf32> to vector<5xf32>
    %196 = vector.shape_cast %195 : vector<5xf32> to vector<5x1xf32>
    %cst_63 = arith.constant 3.200000e+01 : f32
    %197 = vector.broadcast %cst_63 : f32 to vector<5x1xf32>
    %198 = arith.divf %196, %197 : vector<5x1xf32>
    %199 = vector.broadcast %198 : vector<5x1xf32> to vector<5x32xf32>
    %200 = arith.subf %177, %199 : vector<5x32xf32>
    %201 = arith.mulf %200, %200 : vector<5x32xf32>
    %cst_64 = arith.constant dense<0.000000e+00> : vector<5xf32>
    %202 = vector.multi_reduction <add>, %201, %cst_64 [1] : vector<5x32xf32> to vector<5xf32>
    %203 = vector.shape_cast %202 : vector<5xf32> to vector<5x1xf32>
    %cst_65 = arith.constant 3.200000e+01 : f32
    %204 = vector.broadcast %cst_65 : f32 to vector<5x1xf32>
    %205 = arith.divf %203, %204 : vector<5x1xf32>
    %206 = vector.broadcast %198 : vector<5x1xf32> to vector<5x32xf32>
    %207 = arith.subf %177, %206 : vector<5x32xf32>
    %cst_66 = arith.constant 9.99999997E-7 : f32
    %208 = vector.broadcast %cst_66 : f32 to vector<5x1xf32>
    %209 = arith.addf %205, %208 : vector<5x1xf32>
    %210 = math.rsqrt %209 : vector<5x1xf32>
    %211 = vector.broadcast %210 : vector<5x1xf32> to vector<5x32xf32>
    %212 = arith.mulf %207, %211 : vector<5x32xf32>
    %213 = vector.broadcast %191 : vector<1x32xf32> to vector<5x32xf32>
    %214 = arith.mulf %212, %213 : vector<5x32xf32>
    %215 = vector.broadcast %192 : vector<1x32xf32> to vector<5x32xf32>
    %216 = arith.addf %214, %215 : vector<5x32xf32>
    %217 = arith.truncf %216 : vector<5x32xf32> to vector<5x32xbf16>
    %218 = arith.truncf %182 : vector<32x96xf32> to vector<32x96xbf16>
    %cst_67 = arith.constant dense<0.000000e+00> : vector<5x96xf32>
    %219 = tpu.matmul %217, %218, %cst_67 {dimension_numbers = #tpu.dot_dimension_numbers<[1], [0], [0], [1], [0, 0, 1, 1], [], []>} : vector<5x32xbf16>, vector<32x96xbf16>, vector<5x96xf32> -> vector<5x96xf32>
    %220 = vector.broadcast %187 : vector<1x96xf32> to vector<5x96xf32>
    %221 = arith.addf %219, %220 : vector<5x96xf32>
    %222 = vector.extract_strided_slice %221 {offsets = [0, 0], sizes = [5, 16], strides = [1, 1]} : vector<5x96xf32> to vector<5x16xf32>
    %cst_68 = arith.constant 2.500000e-01 : f32
    %223 = vector.broadcast %cst_68 : f32 to vector<5x16xf32>
    %224 = arith.mulf %222, %223 : vector<5x16xf32>
    %225 = vector.extract_strided_slice %221 {offsets = [0, 32], sizes = [5, 16], strides = [1, 1]} : vector<5x96xf32> to vector<5x16xf32>
    %226 = vector.extract_strided_slice %221 {offsets = [0, 64], sizes = [5, 16], strides = [1, 1]} : vector<5x96xf32> to vector<5x16xf32>
    %227 = arith.truncf %224 : vector<5x16xf32> to vector<5x16xbf16>
    %228 = arith.truncf %225 : vector<5x16xf32> to vector<5x16xbf16>
    %cst_69 = arith.constant dense<0.000000e+00> : vector<5x5xf32>
    %229 = tpu.matmul %227, %228, %cst_69 {dimension_numbers = #tpu.dot_dimension_numbers<[1], [1], [0], [0], [0, 0, 1, 0], [], []>} : vector<5x16xbf16>, vector<5x16xbf16>, vector<5x5xf32> -> vector<5x5xf32>
    %cst_70 = arith.constant dense<0xFF800000> : vector<5xf32>
    %230 = vector.multi_reduction <maximumf>, %229, %cst_70 [1] : vector<5x5xf32> to vector<5xf32>
    %231 = vector.shape_cast %230 : vector<5xf32> to vector<5x1xf32>
    %232 = vector.broadcast %231 : vector<5x1xf32> to vector<5x5xf32>
    %233 = arith.subf %229, %232 : vector<5x5xf32>
    %234 = math.exp %233 : vector<5x5xf32>
    %cst_71 = arith.constant dense<0.000000e+00> : vector<5xf32>
    %235 = vector.multi_reduction <add>, %234, %cst_71 [1] : vector<5x5xf32> to vector<5xf32>
    %236 = vector.shape_cast %235 : vector<5xf32> to vector<5x1xf32>
    %237 = tpu.reciprocal %236 {approx = true} : vector<5x1xf32> -> vector<5x1xf32>
    %238 = arith.truncf %234 : vector<5x5xf32> to vector<5x5xbf16>
    %239 = arith.truncf %226 : vector<5x16xf32> to vector<5x16xbf16>
    %cst_72 = arith.constant dense<0.000000e+00> : vector<5x16xf32>
    %240 = tpu.matmul %238, %239, %cst_72 {dimension_numbers = #tpu.dot_dimension_numbers<[1], [0], [0], [1], [0, 0, 1, 1], [], []>} : vector<5x5xbf16>, vector<5x16xbf16>, vector<5x16xf32> -> vector<5x16xf32>
    %241 = vector.broadcast %237 : vector<5x1xf32> to vector<5x16xf32>
    %242 = arith.mulf %240, %241 : vector<5x16xf32>
    %243 = vector.extract_strided_slice %183 {offsets = [0, 0], sizes = [16, 32], strides = [1, 1]} : vector<32x32xf32> to vector<16x32xf32>
    %244 = arith.truncf %242 : vector<5x16xf32> to vector<5x16xbf16>
    %245 = arith.truncf %243 : vector<16x32xf32> to vector<16x32xbf16>
    %cst_73 = arith.constant dense<0.000000e+00> : vector<5x32xf32>
    %246 = tpu.matmul %244, %245, %cst_73 {dimension_numbers = #tpu.dot_dimension_numbers<[1], [0], [0], [1], [0, 0, 1, 1], [], []>} : vector<5x16xbf16>, vector<16x32xbf16>, vector<5x32xf32> -> vector<5x32xf32>
    %247 = vector.broadcast %188 : vector<1x32xf32> to vector<5x32xf32>
    %248 = arith.addf %247, %246 : vector<5x32xf32>
    %249 = vector.extract_strided_slice %221 {offsets = [0, 16], sizes = [5, 16], strides = [1, 1]} : vector<5x96xf32> to vector<5x16xf32>
    %cst_74 = arith.constant 2.500000e-01 : f32
    %250 = vector.broadcast %cst_74 : f32 to vector<5x16xf32>
    %251 = arith.mulf %249, %250 : vector<5x16xf32>
    %252 = vector.extract_strided_slice %221 {offsets = [0, 48], sizes = [5, 16], strides = [1, 1]} : vector<5x96xf32> to vector<5x16xf32>
    %253 = vector.extract_strided_slice %221 {offsets = [0, 80], sizes = [5, 16], strides = [1, 1]} : vector<5x96xf32> to vector<5x16xf32>
    %254 = arith.truncf %251 : vector<5x16xf32> to vector<5x16xbf16>
    %255 = arith.truncf %252 : vector<5x16xf32> to vector<5x16xbf16>
    %cst_75 = arith.constant dense<0.000000e+00> : vector<5x5xf32>
    %256 = tpu.matmul %254, %255, %cst_75 {dimension_numbers = #tpu.dot_dimension_numbers<[1], [1], [0], [0], [0, 0, 1, 0], [], []>} : vector<5x16xbf16>, vector<5x16xbf16>, vector<5x5xf32> -> vector<5x5xf32>
    %cst_76 = arith.constant dense<0xFF800000> : vector<5xf32>
    %257 = vector.multi_reduction <maximumf>, %256, %cst_76 [1] : vector<5x5xf32> to vector<5xf32>
    %258 = vector.shape_cast %257 : vector<5xf32> to vector<5x1xf32>
    %259 = vector.broadcast %258 : vector<5x1xf32> to vector<5x5xf32>
    %260 = arith.subf %256, %259 : vector<5x5xf32>
    %261 = math.exp %260 : vector<5x5xf32>
    %cst_77 = arith.constant dense<0.000000e+00> : vector<5xf32>
    %262 = vector.multi_reduction <add>, %261, %cst_77 [1] : vector<5x5xf32> to vector<5xf32>
    %263 = vector.shape_cast %262 : vector<5xf32> to vector<5x1xf32>
    %264 = tpu.reciprocal %263 {approx = true} : vector<5x1xf32> -> vector<5x1xf32>
    %265 = arith.truncf %261 : vector<5x5xf32> to vector<5x5xbf16>
    %266 = arith.truncf %253 : vector<5x16xf32> to vector<5x16xbf16>
    %cst_78 = arith.constant dense<0.000000e+00> : vector<5x16xf32>
    %267 = tpu.matmul %265, %266, %cst_78 {dimension_numbers = #tpu.dot_dimension_numbers<[1], [0], [0], [1], [0, 0, 1, 1], [], []>} : vector<5x5xbf16>, vector<5x16xbf16>, vector<5x16xf32> -> vector<5x16xf32>
    %268 = vector.broadcast %264 : vector<5x1xf32> to vector<5x16xf32>
    %269 = arith.mulf %267, %268 : vector<5x16xf32>
    %270 = vector.extract_strided_slice %183 {offsets = [16, 0], sizes = [16, 32], strides = [1, 1]} : vector<32x32xf32> to vector<16x32xf32>
    %271 = arith.truncf %269 : vector<5x16xf32> to vector<5x16xbf16>
    %272 = arith.truncf %270 : vector<16x32xf32> to vector<16x32xbf16>
    %cst_79 = arith.constant dense<0.000000e+00> : vector<5x32xf32>
    %273 = tpu.matmul %271, %272, %cst_79 {dimension_numbers = #tpu.dot_dimension_numbers<[1], [0], [0], [1], [0, 0, 1, 1], [], []>} : vector<5x16xbf16>, vector<16x32xbf16>, vector<5x32xf32> -> vector<5x32xf32>
    %274 = arith.addf %248, %273 : vector<5x32xf32>
    %275 = arith.addf %177, %274 : vector<5x32xf32>
    %cst_80 = arith.constant dense<0.000000e+00> : vector<5xf32>
    %276 = vector.multi_reduction <add>, %275, %cst_80 [1] : vector<5x32xf32> to vector<5xf32>
    %277 = vector.shape_cast %276 : vector<5xf32> to vector<5x1xf32>
    %cst_81 = arith.constant 3.200000e+01 : f32
    %278 = vector.broadcast %cst_81 : f32 to vector<5x1xf32>
    %279 = arith.divf %277, %278 : vector<5x1xf32>
    %280 = vector.broadcast %279 : vector<5x1xf32> to vector<5x32xf32>
    %281 = arith.subf %275, %280 : vector<5x32xf32>
    %282 = arith.mulf %281, %281 : vector<5x32xf32>
    %cst_82 = arith.constant dense<0.000000e+00> : vector<5xf32>
    %283 = vector.multi_reduction <add>, %282, %cst_82 [1] : vector<5x32xf32> to vector<5xf32>
    %284 = vector.shape_cast %283 : vector<5xf32> to vector<5x1xf32>
    %cst_83 = arith.constant 3.200000e+01 : f32
    %285 = vector.broadcast %cst_83 : f32 to vector<5x1xf32>
    %286 = arith.divf %284, %285 : vector<5x1xf32>
    %287 = vector.broadcast %279 : vector<5x1xf32> to vector<5x32xf32>
    %288 = arith.subf %275, %287 : vector<5x32xf32>
    %cst_84 = arith.constant 9.99999997E-7 : f32
    %289 = vector.broadcast %cst_84 : f32 to vector<5x1xf32>
    %290 = arith.addf %286, %289 : vector<5x1xf32>
    %291 = math.rsqrt %290 : vector<5x1xf32>
    %292 = vector.broadcast %291 : vector<5x1xf32> to vector<5x32xf32>
    %293 = arith.mulf %288, %292 : vector<5x32xf32>
    %294 = vector.broadcast %193 : vector<1x32xf32> to vector<5x32xf32>
    %295 = arith.mulf %293, %294 : vector<5x32xf32>
    %296 = vector.broadcast %194 : vector<1x32xf32> to vector<5x32xf32>
    %297 = arith.addf %295, %296 : vector<5x32xf32>
    %298 = arith.truncf %297 : vector<5x32xf32> to vector<5x32xbf16>
    %299 = arith.truncf %184 : vector<32x128xf32> to vector<32x128xbf16>
    %cst_85 = arith.constant dense<0.000000e+00> : vector<5x128xf32>
    %300 = tpu.matmul %298, %299, %cst_85 {dimension_numbers = #tpu.dot_dimension_numbers<[1], [0], [0], [1], [0, 0, 1, 1], [], []>} : vector<5x32xbf16>, vector<32x128xbf16>, vector<5x128xf32> -> vector<5x128xf32>
    %301 = vector.broadcast %189 : vector<1x128xf32> to vector<5x128xf32>
    %302 = arith.addf %300, %301 : vector<5x128xf32>
    %303 = arith.mulf %302, %302 : vector<5x128xf32>
    %304 = arith.mulf %302, %303 : vector<5x128xf32>
    %cst_86 = arith.constant 4.471500e-02 : f32
    %305 = vector.broadcast %cst_86 : f32 to vector<5x128xf32>
    %306 = arith.mulf %305, %304 : vector<5x128xf32>
    %307 = arith.addf %302, %306 : vector<5x128xf32>
    %cst_87 = arith.constant 0.797884583 : f32
    %308 = vector.broadcast %cst_87 : f32 to vector<5x128xf32>
    %309 = arith.mulf %308, %307 : vector<5x128xf32>
    %310 = math.tanh %309 : vector<5x128xf32>
    %cst_88 = arith.constant 1.000000e+00 : f32
    %311 = vector.broadcast %cst_88 : f32 to vector<5x128xf32>
    %312 = arith.addf %311, %310 : vector<5x128xf32>
    %cst_89 = arith.constant 5.000000e-01 : f32
    %313 = vector.broadcast %cst_89 : f32 to vector<5x128xf32>
    %314 = arith.mulf %313, %312 : vector<5x128xf32>
    %315 = arith.mulf %302, %314 : vector<5x128xf32>
    %316 = arith.truncf %315 : vector<5x128xf32> to vector<5x128xbf16>
    %317 = arith.truncf %186 : vector<128x32xf32> to vector<128x32xbf16>
    %cst_90 = arith.constant dense<0.000000e+00> : vector<5x32xf32>
    %318 = tpu.matmul %316, %317, %cst_90 {dimension_numbers = #tpu.dot_dimension_numbers<[1], [0], [0], [1], [0, 0, 1, 1], [], []>} : vector<5x128xbf16>, vector<128x32xbf16>, vector<5x32xf32> -> vector<5x32xf32>
    %319 = arith.addf %275, %318 : vector<5x32xf32>
    %320 = vector.broadcast %190 : vector<1x32xf32> to vector<5x32xf32>
    %321 = arith.addf %319, %320 : vector<5x32xf32>
    %cst_91 = arith.constant dense<0.000000e+00> : vector<5xf32>
    %322 = vector.multi_reduction <add>, %321, %cst_91 [1] : vector<5x32xf32> to vector<5xf32>
    %323 = vector.shape_cast %322 : vector<5xf32> to vector<5x1xf32>
    %cst_92 = arith.constant 3.200000e+01 : f32
    %324 = vector.broadcast %cst_92 : f32 to vector<5x1xf32>
    %325 = arith.divf %323, %324 : vector<5x1xf32>
    %326 = vector.broadcast %325 : vector<5x1xf32> to vector<5x32xf32>
    %327 = arith.subf %321, %326 : vector<5x32xf32>
    %328 = arith.mulf %327, %327 : vector<5x32xf32>
    %cst_93 = arith.constant dense<0.000000e+00> : vector<5xf32>
    %329 = vector.multi_reduction <add>, %328, %cst_93 [1] : vector<5x32xf32> to vector<5xf32>
    %330 = vector.shape_cast %329 : vector<5xf32> to vector<5x1xf32>
    %cst_94 = arith.constant 3.200000e+01 : f32
    %331 = vector.broadcast %cst_94 : f32 to vector<5x1xf32>
    %332 = arith.divf %330, %331 : vector<5x1xf32>
    %333 = vector.broadcast %325 : vector<5x1xf32> to vector<5x32xf32>
    %334 = arith.subf %321, %333 : vector<5x32xf32>
    %cst_95 = arith.constant 9.99999974E-6 : f32
    %335 = vector.broadcast %cst_95 : f32 to vector<5x1xf32>
    %336 = arith.addf %332, %335 : vector<5x1xf32>
    %337 = math.rsqrt %336 : vector<5x1xf32>
    %338 = vector.broadcast %337 : vector<5x1xf32> to vector<5x32xf32>
    %339 = arith.mulf %334, %338 : vector<5x32xf32>
    %340 = vector.broadcast %3 : vector<1x32xf32> to vector<5x32xf32>
    %341 = arith.mulf %339, %340 : vector<5x32xf32>
    %342 = vector.broadcast %4 : vector<1x32xf32> to vector<5x32xf32>
    %343 = arith.addf %341, %342 : vector<5x32xf32>
    %344 = vector.shape_cast %5 : vector<1x32xf32> to vector<1x32xf32>
    %345 = vector.broadcast %344 : vector<1x32xf32> to vector<12x32xf32>
    %346 = tpu.concatenate %343, %345 in 0 : vector<5x32xf32>, vector<12x32xf32> -> vector<17x32xf32>
    %c0_96 = arith.constant 0 : index
    %c0_97 = arith.constant 0 : index
    %347 = vector.load %arg17[%c0_96, %c0_97] : memref<17x32xf32, #tpu.memory_space<vmem>>, vector<17x32xf32>
    tpu.vector_store %arg17[%c0_96, %c0_97], %346 {strides = array<i32>} : memref<17x32xf32, #tpu.memory_space<vmem>>, vector<17x32xf32>,
    %348 = arith.index_cast %arg0 : i32 to index
    %c0_98 = arith.constant 0 : index
    %349 = memref.load %arg2[%348, %c0_98] : memref<2x17xi32, #tpu.memory_space<smem>>
    %350 = arith.index_cast %349 : i32 to index
    %c0_99 = arith.constant 0 : index
    %351 = vector.load %arg17[%350, %c0_99] : memref<17x32xf32, #tpu.memory_space<vmem>>, vector<1x32xf32>
    %352 = arith.index_cast %arg0 : i32 to index
    %c1_100 = arith.constant 1 : index
    %353 = memref.load %arg2[%352, %c1_100] : memref<2x17xi32, #tpu.memory_space<smem>>
    %354 = arith.index_cast %353 : i32 to index
    %c0_101 = arith.constant 0 : index
    %355 = vector.load %arg17[%354, %c0_101] : memref<17x32xf32, #tpu.memory_space<vmem>>, vector<1x32xf32>
    %356 = arith.index_cast %arg0 : i32 to index
    %c2_102 = arith.constant 2 : index
    %357 = memref.load %arg2[%356, %c2_102] : memref<2x17xi32, #tpu.memory_space<smem>>
    %358 = arith.index_cast %357 : i32 to index
    %c0_103 = arith.constant 0 : index
    %359 = vector.load %arg17[%358, %c0_103] : memref<17x32xf32, #tpu.memory_space<vmem>>, vector<1x32xf32>
    %360 = arith.index_cast %arg0 : i32 to index
    %c3_104 = arith.constant 3 : index
    %361 = memref.load %arg2[%360, %c3_104] : memref<2x17xi32, #tpu.memory_space<smem>>
    %362 = arith.index_cast %361 : i32 to index
    %c0_105 = arith.constant 0 : index
    %363 = vector.load %arg17[%362, %c0_105] : memref<17x32xf32, #tpu.memory_space<vmem>>, vector<1x32xf32>
    %364 = arith.index_cast %arg0 : i32 to index
    %c4 = arith.constant 4 : index
    %365 = memref.load %arg2[%364, %c4] : memref<2x17xi32, #tpu.memory_space<smem>>
    %366 = arith.index_cast %365 : i32 to index
    %c0_106 = arith.constant 0 : index
    %367 = vector.load %arg17[%366, %c0_106] : memref<17x32xf32, #tpu.memory_space<vmem>>, vector<1x32xf32>
    %368 = arith.index_cast %arg0 : i32 to index
    %c5 = arith.constant 5 : index
    %369 = memref.load %arg2[%368, %c5] : memref<2x17xi32, #tpu.memory_space<smem>>
    %370 = arith.index_cast %369 : i32 to index
    %c0_107 = arith.constant 0 : index
    %371 = vector.load %arg17[%370, %c0_107] : memref<17x32xf32, #tpu.memory_space<vmem>>, vector<1x32xf32>
    %372 = arith.index_cast %arg0 : i32 to index
    %c6 = arith.constant 6 : index
    %373 = memref.load %arg2[%372, %c6] : memref<2x17xi32, #tpu.memory_space<smem>>
    %374 = arith.index_cast %373 : i32 to index
    %c0_108 = arith.constant 0 : index
    %375 = vector.load %arg17[%374, %c0_108] : memref<17x32xf32, #tpu.memory_space<vmem>>, vector<1x32xf32>
    %376 = arith.index_cast %arg0 : i32 to index
    %c7 = arith.constant 7 : index
    %377 = memref.load %arg2[%376, %c7] : memref<2x17xi32, #tpu.memory_space<smem>>
    %378 = arith.index_cast %377 : i32 to index
    %c0_109 = arith.constant 0 : index
    %379 = vector.load %arg17[%378, %c0_109] : memref<17x32xf32, #tpu.memory_space<vmem>>, vector<1x32xf32>
    %380 = arith.index_cast %arg0 : i32 to index
    %c8 = arith.constant 8 : index
    %381 = memref.load %arg2[%380, %c8] : memref<2x17xi32, #tpu.memory_space<smem>>
    %382 = arith.index_cast %381 : i32 to index
    %c0_110 = arith.constant 0 : index
    %383 = vector.load %arg17[%382, %c0_110] : memref<17x32xf32, #tpu.memory_space<vmem>>, vector<1x32xf32>
    %384 = arith.index_cast %arg0 : i32 to index
    %c9 = arith.constant 9 : index
    %385 = memref.load %arg2[%384, %c9] : memref<2x17xi32, #tpu.memory_space<smem>>
    %386 = arith.index_cast %385 : i32 to index
    %c0_111 = arith.constant 0 : index
    %387 = vector.load %arg17[%386, %c0_111] : memref<17x32xf32, #tpu.memory_space<vmem>>, vector<1x32xf32>
    %388 = arith.index_cast %arg0 : i32 to index
    %c10 = arith.constant 10 : index
    %389 = memref.load %arg2[%388, %c10] : memref<2x17xi32, #tpu.memory_space<smem>>
    %390 = arith.index_cast %389 : i32 to index
    %c0_112 = arith.constant 0 : index
    %391 = vector.load %arg17[%390, %c0_112] : memref<17x32xf32, #tpu.memory_space<vmem>>, vector<1x32xf32>
    %392 = arith.index_cast %arg0 : i32 to index
    %c11 = arith.constant 11 : index
    %393 = memref.load %arg2[%392, %c11] : memref<2x17xi32, #tpu.memory_space<smem>>
    %394 = arith.index_cast %393 : i32 to index
    %c0_113 = arith.constant 0 : index
    %395 = vector.load %arg17[%394, %c0_113] : memref<17x32xf32, #tpu.memory_space<vmem>>, vector<1x32xf32>
    %396 = arith.index_cast %arg0 : i32 to index
    %c12 = arith.constant 12 : index
    %397 = memref.load %arg2[%396, %c12] : memref<2x17xi32, #tpu.memory_space<smem>>
    %398 = arith.index_cast %397 : i32 to index
    %c0_114 = arith.constant 0 : index
    %399 = vector.load %arg17[%398, %c0_114] : memref<17x32xf32, #tpu.memory_space<vmem>>, vector<1x32xf32>
    %400 = arith.index_cast %arg0 : i32 to index
    %c13 = arith.constant 13 : index
    %401 = memref.load %arg2[%400, %c13] : memref<2x17xi32, #tpu.memory_space<smem>>
    %402 = arith.index_cast %401 : i32 to index
    %c0_115 = arith.constant 0 : index
    %403 = vector.load %arg17[%402, %c0_115] : memref<17x32xf32, #tpu.memory_space<vmem>>, vector<1x32xf32>
    %404 = arith.index_cast %arg0 : i32 to index
    %c14 = arith.constant 14 : index
    %405 = memref.load %arg2[%404, %c14] : memref<2x17xi32, #tpu.memory_space<smem>>
    %406 = arith.index_cast %405 : i32 to index
    %c0_116 = arith.constant 0 : index
    %407 = vector.load %arg17[%406, %c0_116] : memref<17x32xf32, #tpu.memory_space<vmem>>, vector<1x32xf32>
    %408 = arith.index_cast %arg0 : i32 to index
    %c15 = arith.constant 15 : index
    %409 = memref.load %arg2[%408, %c15] : memref<2x17xi32, #tpu.memory_space<smem>>
    %410 = arith.index_cast %409 : i32 to index
    %c0_117 = arith.constant 0 : index
    %411 = vector.load %arg17[%410, %c0_117] : memref<17x32xf32, #tpu.memory_space<vmem>>, vector<1x32xf32>
    %412 = arith.index_cast %arg0 : i32 to index
    %c16 = arith.constant 16 : index
    %413 = memref.load %arg2[%412, %c16] : memref<2x17xi32, #tpu.memory_space<smem>>
    %414 = arith.index_cast %413 : i32 to index
    %c0_118 = arith.constant 0 : index
    %415 = vector.load %arg17[%414, %c0_118] : memref<17x32xf32, #tpu.memory_space<vmem>>, vector<1x32xf32>
    %416 = tpu.concatenate %351, %355, %359, %363, %367, %371, %375, %379, %383, %387, %391, %395, %399, %403, %407, %411 in 0 : vector<1x32xf32>, vector<1x32xf32>, vector<1x32xf32>, vector<1x32xf32>, vector<1x32xf32>, vector<1x32xf32>, vector<1x32xf32>, vector<1x32xf32>, vector<1x32xf32>, vector<1x32xf32>, vector<1x32xf32>, vector<1x32xf32>, vector<1x32xf32>, vector<1x32xf32>, vector<1x32xf32>, vector<1x32xf32> -> vector<16x32xf32>
    %417 = tpu.concatenate %416, %415 in 0 : vector<16x32xf32>, vector<1x32xf32> -> vector<17x32xf32>
    %c0_119 = arith.constant 0 : index
    %c0_120 = arith.constant 0 : index
    %418 = vector.load %arg10[%c0_119, %c0_120] : memref<17x32xf32, #tpu.memory_space<vmem>>, vector<17x32xf32>
    %419 = arith.addf %417, %418 : vector<17x32xf32>
    %c0_121 = arith.constant 0 : index
    %c0_122 = arith.constant 0 : index
    %c0_123 = arith.constant 0 : index
    %420 = vector.load %arg11[%c0_121, %c0_122, %c0_123] : memref<1x32x256xf32, #tpu.memory_space<vmem>>, vector<1x32x256xf32>
    %421 = vector.shape_cast %420 : vector<1x32x256xf32> to vector<32x256xf32>
    %c0_124 = arith.constant 0 : index
    %c0_125 = arith.constant 0 : index
    %c0_126 = arith.constant 0 : index
    %422 = vector.load %arg12[%c0_124, %c0_125, %c0_126] : memref<1x8x256xf32, #tpu.memory_space<vmem>>, vector<1x8x256xf32>
    %423 = vector.shape_cast %422 : vector<1x8x256xf32> to vector<8x256xf32>
    %424 = vector.extract_strided_slice %421 {offsets = [0, 0], sizes = [32, 96], strides = [1, 1]} : vector<32x256xf32> to vector<32x96xf32>
    %425 = vector.extract_strided_slice %421 {offsets = [0, 96], sizes = [32, 32], strides = [1, 1]} : vector<32x256xf32> to vector<32x32xf32>
    %426 = vector.extract_strided_slice %421 {offsets = [0, 128], sizes = [32, 128], strides = [1, 1]} : vector<32x256xf32> to vector<32x128xf32>
    %c0_127 = arith.constant 0 : index
    %c0_128 = arith.constant 0 : index
    %c0_129 = arith.constant 0 : index
    %427 = vector.load %arg13[%c0_127, %c0_128, %c0_129] : memref<1x128x32xf32, #tpu.memory_space<vmem>>, vector<1x128x32xf32>
    %428 = vector.shape_cast %427 : vector<1x128x32xf32> to vector<128x32xf32>
    %429 = vector.extract_strided_slice %423 {offsets = [0, 0], sizes = [1, 96], strides = [1, 1]} : vector<8x256xf32> to vector<1x96xf32>
    %430 = vector.extract_strided_slice %423 {offsets = [0, 96], sizes = [1, 32], strides = [1, 1]} : vector<8x256xf32> to vector<1x32xf32>
    %431 = vector.extract_strided_slice %423 {offsets = [0, 128], sizes = [1, 128], strides = [1, 1]} : vector<8x256xf32> to vector<1x128xf32>
    %432 = vector.extract_strided_slice %423 {offsets = [1, 0], sizes = [1, 32], strides = [1, 1]} : vector<8x256xf32> to vector<1x32xf32>
    %433 = vector.extract_strided_slice %423 {offsets = [2, 0], sizes = [1, 32], strides = [1, 1]} : vector<8x256xf32> to vector<1x32xf32>
    %434 = vector.extract_strided_slice %423 {offsets = [3, 0], sizes = [1, 32], strides = [1, 1]} : vector<8x256xf32> to vector<1x32xf32>
    %435 = vector.extract_strided_slice %423 {offsets = [4, 0], sizes = [1, 32], strides = [1, 1]} : vector<8x256xf32> to vector<1x32xf32>
    %436 = vector.extract_strided_slice %423 {offsets = [5, 0], sizes = [1, 32], strides = [1, 1]} : vector<8x256xf32> to vector<1x32xf32>
    %cst_130 = arith.constant dense<0.000000e+00> : vector<17xf32>
    %437 = vector.multi_reduction <add>, %419, %cst_130 [1] : vector<17x32xf32> to vector<17xf32>
    %438 = vector.shape_cast %437 : vector<17xf32> to vector<17x1xf32>
    %cst_131 = arith.constant 3.200000e+01 : f32
    %439 = vector.broadcast %cst_131 : f32 to vector<17x1xf32>
    %440 = arith.divf %438, %439 : vector<17x1xf32>
    %441 = vector.broadcast %440 : vector<17x1xf32> to vector<17x32xf32>
    %442 = arith.subf %419, %441 : vector<17x32xf32>
    %443 = arith.mulf %442, %442 : vector<17x32xf32>
    %cst_132 = arith.constant dense<0.000000e+00> : vector<17xf32>
    %444 = vector.multi_reduction <add>, %443, %cst_132 [1] : vector<17x32xf32> to vector<17xf32>
    %445 = vector.shape_cast %444 : vector<17xf32> to vector<17x1xf32>
    %cst_133 = arith.constant 3.200000e+01 : f32
    %446 = vector.broadcast %cst_133 : f32 to vector<17x1xf32>
    %447 = arith.divf %445, %446 : vector<17x1xf32>
    %448 = vector.broadcast %440 : vector<17x1xf32> to vector<17x32xf32>
    %449 = arith.subf %419, %448 : vector<17x32xf32>
    %cst_134 = arith.constant 9.99999997E-7 : f32
    %450 = vector.broadcast %cst_134 : f32 to vector<17x1xf32>
    %451 = arith.addf %447, %450 : vector<17x1xf32>
    %452 = math.rsqrt %451 : vector<17x1xf32>
    %453 = vector.broadcast %452 : vector<17x1xf32> to vector<17x32xf32>
    %454 = arith.mulf %449, %453 : vector<17x32xf32>
    %455 = vector.broadcast %433 : vector<1x32xf32> to vector<17x32xf32>
    %456 = arith.mulf %454, %455 : vector<17x32xf32>
    %457 = vector.broadcast %434 : vector<1x32xf32> to vector<17x32xf32>
    %458 = arith.addf %456, %457 : vector<17x32xf32>
    %459 = arith.truncf %458 : vector<17x32xf32> to vector<17x32xbf16>
    %460 = arith.truncf %424 : vector<32x96xf32> to vector<32x96xbf16>
    %cst_135 = arith.constant dense<0.000000e+00> : vector<17x96xf32>
    %461 = tpu.matmul %459, %460, %cst_135 {dimension_numbers = #tpu.dot_dimension_numbers<[1], [0], [0], [1], [0, 0, 1, 1], [], []>} : vector<17x32xbf16>, vector<32x96xbf16>, vector<17x96xf32> -> vector<17x96xf32>
    %462 = vector.broadcast %429 : vector<1x96xf32> to vector<17x96xf32>
    %463 = arith.addf %461, %462 : vector<17x96xf32>
    %464 = vector.extract_strided_slice %463 {offsets = [0, 0], sizes = [17, 16], strides = [1, 1]} : vector<17x96xf32> to vector<17x16xf32>
    %cst_136 = arith.constant 2.500000e-01 : f32
    %465 = vector.broadcast %cst_136 : f32 to vector<17x16xf32>
    %466 = arith.mulf %464, %465 : vector<17x16xf32>
    %467 = vector.extract_strided_slice %463 {offsets = [0, 32], sizes = [17, 16], strides = [1, 1]} : vector<17x96xf32> to vector<17x16xf32>
    %468 = vector.extract_strided_slice %463 {offsets = [0, 64], sizes = [17, 16], strides = [1, 1]} : vector<17x96xf32> to vector<17x16xf32>
    %469 = arith.truncf %466 : vector<17x16xf32> to vector<17x16xbf16>
    %470 = arith.truncf %467 : vector<17x16xf32> to vector<17x16xbf16>
    %cst_137 = arith.constant dense<0.000000e+00> : vector<17x17xf32>
    %471 = tpu.matmul %469, %470, %cst_137 {dimension_numbers = #tpu.dot_dimension_numbers<[1], [1], [0], [0], [0, 0, 1, 0], [], []>} : vector<17x16xbf16>, vector<17x16xbf16>, vector<17x17xf32> -> vector<17x17xf32>
    %cst_138 = arith.constant dense<0xFF800000> : vector<17xf32>
    %472 = vector.multi_reduction <maximumf>, %471, %cst_138 [1] : vector<17x17xf32> to vector<17xf32>
    %473 = vector.shape_cast %472 : vector<17xf32> to vector<17x1xf32>
    %474 = vector.broadcast %473 : vector<17x1xf32> to vector<17x17xf32>
    %475 = arith.subf %471, %474 : vector<17x17xf32>
    %476 = math.exp %475 : vector<17x17xf32>
    %cst_139 = arith.constant dense<0.000000e+00> : vector<17xf32>
    %477 = vector.multi_reduction <add>, %476, %cst_139 [1] : vector<17x17xf32> to vector<17xf32>
    %478 = vector.shape_cast %477 : vector<17xf32> to vector<17x1xf32>
    %479 = tpu.reciprocal %478 {approx = true} : vector<17x1xf32> -> vector<17x1xf32>
    %480 = arith.truncf %476 : vector<17x17xf32> to vector<17x17xbf16>
    %481 = arith.truncf %468 : vector<17x16xf32> to vector<17x16xbf16>
    %cst_140 = arith.constant dense<0.000000e+00> : vector<17x16xf32>
    %482 = tpu.matmul %480, %481, %cst_140 {dimension_numbers = #tpu.dot_dimension_numbers<[1], [0], [0], [1], [0, 0, 1, 1], [], []>} : vector<17x17xbf16>, vector<17x16xbf16>, vector<17x16xf32> -> vector<17x16xf32>
    %483 = vector.broadcast %479 : vector<17x1xf32> to vector<17x16xf32>
    %484 = arith.mulf %482, %483 : vector<17x16xf32>
    %485 = vector.extract_strided_slice %425 {offsets = [0, 0], sizes = [16, 32], strides = [1, 1]} : vector<32x32xf32> to vector<16x32xf32>
    %486 = arith.truncf %484 : vector<17x16xf32> to vector<17x16xbf16>
    %487 = arith.truncf %485 : vector<16x32xf32> to vector<16x32xbf16>
    %cst_141 = arith.constant dense<0.000000e+00> : vector<17x32xf32>
    %488 = tpu.matmul %486, %487, %cst_141 {dimension_numbers = #tpu.dot_dimension_numbers<[1], [0], [0], [1], [0, 0, 1, 1], [], []>} : vector<17x16xbf16>, vector<16x32xbf16>, vector<17x32xf32> -> vector<17x32xf32>
    %489 = vector.broadcast %430 : vector<1x32xf32> to vector<17x32xf32>
    %490 = arith.addf %489, %488 : vector<17x32xf32>
    %491 = vector.extract_strided_slice %463 {offsets = [0, 16], sizes = [17, 16], strides = [1, 1]} : vector<17x96xf32> to vector<17x16xf32>
    %cst_142 = arith.constant 2.500000e-01 : f32
    %492 = vector.broadcast %cst_142 : f32 to vector<17x16xf32>
    %493 = arith.mulf %491, %492 : vector<17x16xf32>
    %494 = vector.extract_strided_slice %463 {offsets = [0, 48], sizes = [17, 16], strides = [1, 1]} : vector<17x96xf32> to vector<17x16xf32>
    %495 = vector.extract_strided_slice %463 {offsets = [0, 80], sizes = [17, 16], strides = [1, 1]} : vector<17x96xf32> to vector<17x16xf32>
    %496 = arith.truncf %493 : vector<17x16xf32> to vector<17x16xbf16>
    %497 = arith.truncf %494 : vector<17x16xf32> to vector<17x16xbf16>
    %cst_143 = arith.constant dense<0.000000e+00> : vector<17x17xf32>
    %498 = tpu.matmul %496, %497, %cst_143 {dimension_numbers = #tpu.dot_dimension_numbers<[1], [1], [0], [0], [0, 0, 1, 0], [], []>} : vector<17x16xbf16>, vector<17x16xbf16>, vector<17x17xf32> -> vector<17x17xf32>
    %cst_144 = arith.constant dense<0xFF800000> : vector<17xf32>
    %499 = vector.multi_reduction <maximumf>, %498, %cst_144 [1] : vector<17x17xf32> to vector<17xf32>
    %500 = vector.shape_cast %499 : vector<17xf32> to vector<17x1xf32>
    %501 = vector.broadcast %500 : vector<17x1xf32> to vector<17x17xf32>
    %502 = arith.subf %498, %501 : vector<17x17xf32>
    %503 = math.exp %502 : vector<17x17xf32>
    %cst_145 = arith.constant dense<0.000000e+00> : vector<17xf32>
    %504 = vector.multi_reduction <add>, %503, %cst_145 [1] : vector<17x17xf32> to vector<17xf32>
    %505 = vector.shape_cast %504 : vector<17xf32> to vector<17x1xf32>
    %506 = tpu.reciprocal %505 {approx = true} : vector<17x1xf32> -> vector<17x1xf32>
    %507 = arith.truncf %503 : vector<17x17xf32> to vector<17x17xbf16>
    %508 = arith.truncf %495 : vector<17x16xf32> to vector<17x16xbf16>
    %cst_146 = arith.constant dense<0.000000e+00> : vector<17x16xf32>
    %509 = tpu.matmul %507, %508, %cst_146 {dimension_numbers = #tpu.dot_dimension_numbers<[1], [0], [0], [1], [0, 0, 1, 1], [], []>} : vector<17x17xbf16>, vector<17x16xbf16>, vector<17x16xf32> -> vector<17x16xf32>
    %510 = vector.broadcast %506 : vector<17x1xf32> to vector<17x16xf32>
    %511 = arith.mulf %509, %510 : vector<17x16xf32>
    %512 = vector.extract_strided_slice %425 {offsets = [16, 0], sizes = [16, 32], strides = [1, 1]} : vector<32x32xf32> to vector<16x32xf32>
    %513 = arith.truncf %511 : vector<17x16xf32> to vector<17x16xbf16>
    %514 = arith.truncf %512 : vector<16x32xf32> to vector<16x32xbf16>
    %cst_147 = arith.constant dense<0.000000e+00> : vector<17x32xf32>
    %515 = tpu.matmul %513, %514, %cst_147 {dimension_numbers = #tpu.dot_dimension_numbers<[1], [0], [0], [1], [0, 0, 1, 1], [], []>} : vector<17x16xbf16>, vector<16x32xbf16>, vector<17x32xf32> -> vector<17x32xf32>
    %516 = arith.addf %490, %515 : vector<17x32xf32>
    %517 = arith.addf %419, %516 : vector<17x32xf32>
    %cst_148 = arith.constant dense<0.000000e+00> : vector<17xf32>
    %518 = vector.multi_reduction <add>, %517, %cst_148 [1] : vector<17x32xf32> to vector<17xf32>
    %519 = vector.shape_cast %518 : vector<17xf32> to vector<17x1xf32>
    %cst_149 = arith.constant 3.200000e+01 : f32
    %520 = vector.broadcast %cst_149 : f32 to vector<17x1xf32>
    %521 = arith.divf %519, %520 : vector<17x1xf32>
    %522 = vector.broadcast %521 : vector<17x1xf32> to vector<17x32xf32>
    %523 = arith.subf %517, %522 : vector<17x32xf32>
    %524 = arith.mulf %523, %523 : vector<17x32xf32>
    %cst_150 = arith.constant dense<0.000000e+00> : vector<17xf32>
    %525 = vector.multi_reduction <add>, %524, %cst_150 [1] : vector<17x32xf32> to vector<17xf32>
    %526 = vector.shape_cast %525 : vector<17xf32> to vector<17x1xf32>
    %cst_151 = arith.constant 3.200000e+01 : f32
    %527 = vector.broadcast %cst_151 : f32 to vector<17x1xf32>
    %528 = arith.divf %526, %527 : vector<17x1xf32>
    %529 = vector.broadcast %521 : vector<17x1xf32> to vector<17x32xf32>
    %530 = arith.subf %517, %529 : vector<17x32xf32>
    %cst_152 = arith.constant 9.99999997E-7 : f32
    %531 = vector.broadcast %cst_152 : f32 to vector<17x1xf32>
    %532 = arith.addf %528, %531 : vector<17x1xf32>
    %533 = math.rsqrt %532 : vector<17x1xf32>
    %534 = vector.broadcast %533 : vector<17x1xf32> to vector<17x32xf32>
    %535 = arith.mulf %530, %534 : vector<17x32xf32>
    %536 = vector.broadcast %435 : vector<1x32xf32> to vector<17x32xf32>
    %537 = arith.mulf %535, %536 : vector<17x32xf32>
    %538 = vector.broadcast %436 : vector<1x32xf32> to vector<17x32xf32>
    %539 = arith.addf %537, %538 : vector<17x32xf32>
    %540 = arith.truncf %539 : vector<17x32xf32> to vector<17x32xbf16>
    %541 = arith.truncf %426 : vector<32x128xf32> to vector<32x128xbf16>
    %cst_153 = arith.constant dense<0.000000e+00> : vector<17x128xf32>
    %542 = tpu.matmul %540, %541, %cst_153 {dimension_numbers = #tpu.dot_dimension_numbers<[1], [0], [0], [1], [0, 0, 1, 1], [], []>} : vector<17x32xbf16>, vector<32x128xbf16>, vector<17x128xf32> -> vector<17x128xf32>
    %543 = vector.broadcast %431 : vector<1x128xf32> to vector<17x128xf32>
    %544 = arith.addf %542, %543 : vector<17x128xf32>
    %545 = arith.mulf %544, %544 : vector<17x128xf32>
    %546 = arith.mulf %544, %545 : vector<17x128xf32>
    %cst_154 = arith.constant 4.471500e-02 : f32
    %547 = vector.broadcast %cst_154 : f32 to vector<17x128xf32>
    %548 = arith.mulf %547, %546 : vector<17x128xf32>
    %549 = arith.addf %544, %548 : vector<17x128xf32>
    %cst_155 = arith.constant 0.797884583 : f32
    %550 = vector.broadcast %cst_155 : f32 to vector<17x128xf32>
    %551 = arith.mulf %550, %549 : vector<17x128xf32>
    %552 = math.tanh %551 : vector<17x128xf32>
    %cst_156 = arith.constant 1.000000e+00 : f32
    %553 = vector.broadcast %cst_156 : f32 to vector<17x128xf32>
    %554 = arith.addf %553, %552 : vector<17x128xf32>
    %cst_157 = arith.constant 5.000000e-01 : f32
    %555 = vector.broadcast %cst_157 : f32 to vector<17x128xf32>
    %556 = arith.mulf %555, %554 : vector<17x128xf32>
    %557 = arith.mulf %544, %556 : vector<17x128xf32>
    %558 = arith.truncf %557 : vector<17x128xf32> to vector<17x128xbf16>
    %559 = arith.truncf %428 : vector<128x32xf32> to vector<128x32xbf16>
    %cst_158 = arith.constant dense<0.000000e+00> : vector<17x32xf32>
    %560 = tpu.matmul %558, %559, %cst_158 {dimension_numbers = #tpu.dot_dimension_numbers<[1], [0], [0], [1], [0, 0, 1, 1], [], []>} : vector<17x128xbf16>, vector<128x32xbf16>, vector<17x32xf32> -> vector<17x32xf32>
    %561 = arith.addf %517, %560 : vector<17x32xf32>
    %562 = vector.broadcast %432 : vector<1x32xf32> to vector<17x32xf32>
    %563 = arith.addf %561, %562 : vector<17x32xf32>
    %c0_159 = arith.constant 0 : index
    %c0_160 = arith.constant 0 : index
    %564 = vector.load %arg14[%c0_159, %c0_160] : memref<33x128xf32, #tpu.memory_space<vmem>>, vector<33x128xf32>
    %565 = vector.extract_strided_slice %563 {offsets = [1, 0], sizes = [16, 32], strides = [1, 1]} : vector<17x32xf32> to vector<16x32xf32>
    %566 = vector.extract_strided_slice %564 {offsets = [0, 0], sizes = [32, 128], strides = [1, 1]} : vector<33x128xf32> to vector<32x128xf32>
    %567 = arith.truncf %565 : vector<16x32xf32> to vector<16x32xbf16>
    %568 = arith.truncf %566 : vector<32x128xf32> to vector<32x128xbf16>
    %cst_161 = arith.constant dense<0.000000e+00> : vector<16x128xf32>
    %569 = tpu.matmul %567, %568, %cst_161 {dimension_numbers = #tpu.dot_dimension_numbers<[1], [0], [0], [1], [0, 0, 1, 1], [], []>} : vector<16x32xbf16>, vector<32x128xbf16>, vector<16x128xf32> -> vector<16x128xf32>
    %570 = vector.extract_strided_slice %564 {offsets = [32, 0], sizes = [1, 128], strides = [1, 1]} : vector<33x128xf32> to vector<1x128xf32>
    %571 = vector.broadcast %570 : vector<1x128xf32> to vector<16x128xf32>
    %572 = arith.addf %569, %571 : vector<16x128xf32>
    %c0_162 = arith.constant 0 : index
    %c0_163 = arith.constant 0 : index
    %c0_164 = arith.constant 0 : index
    %573 = vector.load %arg15[%c0_162, %c0_163, %c0_164] : memref<1x16x128xf32, #tpu.memory_space<vmem>>, vector<1x16x128xf32>
    %574 = vector.shape_cast %573 : vector<1x16x128xf32> to vector<16x128xf32>
    %575 = vector.shape_cast %572 : vector<16x128xf32> to vector<1x16x128xf32>
    tpu.vector_store %arg15[%c0_162, %c0_163, %c0_164], %575 {strides = array<i32>} : memref<1x16x128xf32, #tpu.memory_space<vmem>>, vector<1x16x128xf32>,
    return
  }
  func.func @transform_0(%arg0: i32, %arg1: memref<2x4xi32, #tpu.memory_space<smem>>, %arg2: memref<2x17xi32, #tpu.memory_space<smem>>) -> (i32, i32, i32) {
    %c0_i32 = arith.constant 0 : i32
    %c0_i32_0 = arith.constant 0 : i32
    %c0_i32_1 = arith.constant 0 : i32
    return %arg0, %c0_i32, %c0_i32_0 : i32, i32, i32
  }
  func.func @transform_1(%arg0: i32, %arg1: memref<2x4xi32, #tpu.memory_space<smem>>, %arg2: memref<2x17xi32, #tpu.memory_space<smem>>) -> (i32, i32) {
    %c0_i32 = arith.constant 0 : i32
    %c0_i32_0 = arith.constant 0 : i32
    %c0_i32_1 = arith.constant 0 : i32
    return %c0_i32, %c0_i32_0 : i32, i32
  }
  func.func @transform_2(%arg0: i32, %arg1: memref<2x4xi32, #tpu.memory_space<smem>>, %arg2: memref<2x17xi32, #tpu.memory_space<smem>>) -> (i32, i32) {
    %c0_i32 = arith.constant 0 : i32
    %c0_i32_0 = arith.constant 0 : i32
    %c0_i32_1 = arith.constant 0 : i32
    return %c0_i32, %c0_i32_0 : i32, i32
  }
  func.func @transform_3(%arg0: i32, %arg1: memref<2x4xi32, #tpu.memory_space<smem>>, %arg2: memref<2x17xi32, #tpu.memory_space<smem>>) -> (i32, i32) {
    %c0_i32 = arith.constant 0 : i32
    %c0_i32_0 = arith.constant 0 : i32
    %c0_i32_1 = arith.constant 0 : i32
    return %c0_i32, %c0_i32_0 : i32, i32
  }
  func.func @transform_4(%arg0: i32, %arg1: memref<2x4xi32, #tpu.memory_space<smem>>, %arg2: memref<2x17xi32, #tpu.memory_space<smem>>) -> (i32, i32, i32) {
    %c0_i32 = arith.constant 0 : i32
    %c0_i32_0 = arith.constant 0 : i32
    %c0_i32_1 = arith.constant 0 : i32
    %c0_i32_2 = arith.constant 0 : i32
    return %c0_i32, %c0_i32_0, %c0_i32_1 : i32, i32, i32
  }
  func.func @transform_5(%arg0: i32, %arg1: memref<2x4xi32, #tpu.memory_space<smem>>, %arg2: memref<2x17xi32, #tpu.memory_space<smem>>) -> (i32, i32, i32) {
    %c0_i32 = arith.constant 0 : i32
    %c0_i32_0 = arith.constant 0 : i32
    %c0_i32_1 = arith.constant 0 : i32
    %c0_i32_2 = arith.constant 0 : i32
    return %c0_i32, %c0_i32_0, %c0_i32_1 : i32, i32, i32
  }
  func.func @transform_6(%arg0: i32, %arg1: memref<2x4xi32, #tpu.memory_space<smem>>, %arg2: memref<2x17xi32, #tpu.memory_space<smem>>) -> (i32, i32, i32) {
    %c0_i32 = arith.constant 0 : i32
    %c0_i32_0 = arith.constant 0 : i32
    %c0_i32_1 = arith.constant 0 : i32
    %c0_i32_2 = arith.constant 0 : i32
    return %c0_i32, %c0_i32_0, %c0_i32_1 : i32, i32, i32
  }
  func.func @transform_7(%arg0: i32, %arg1: memref<2x4xi32, #tpu.memory_space<smem>>, %arg2: memref<2x17xi32, #tpu.memory_space<smem>>) -> (i32, i32) {
    %c0_i32 = arith.constant 0 : i32
    %c0_i32_0 = arith.constant 0 : i32
    %c0_i32_1 = arith.constant 0 : i32
    return %c0_i32, %c0_i32_0 : i32, i32
  }
  func.func @transform_8(%arg0: i32, %arg1: memref<2x4xi32, #tpu.memory_space<smem>>, %arg2: memref<2x17xi32, #tpu.memory_space<smem>>) -> (i32, i32, i32) {
    %c0_i32 = arith.constant 0 : i32
    %c0_i32_0 = arith.constant 0 : i32
    %c0_i32_1 = arith.constant 0 : i32
    %c0_i32_2 = arith.constant 0 : i32
    return %c0_i32, %c0_i32_0, %c0_i32_1 : i32, i32, i32
  }
  func.func @transform_9(%arg0: i32, %arg1: memref<2x4xi32, #tpu.memory_space<smem>>, %arg2: memref<2x17xi32, #tpu.memory_space<smem>>) -> (i32, i32, i32) {
    %c0_i32 = arith.constant 0 : i32
    %c0_i32_0 = arith.constant 0 : i32
    %c0_i32_1 = arith.constant 0 : i32
    %c0_i32_2 = arith.constant 0 : i32
    return %c0_i32, %c0_i32_0, %c0_i32_1 : i32, i32, i32
  }
  func.func @transform_10(%arg0: i32, %arg1: memref<2x4xi32, #tpu.memory_space<smem>>, %arg2: memref<2x17xi32, #tpu.memory_space<smem>>) -> (i32, i32, i32) {
    %c0_i32 = arith.constant 0 : i32
    %c0_i32_0 = arith.constant 0 : i32
    %c0_i32_1 = arith.constant 0 : i32
    %c0_i32_2 = arith.constant 0 : i32
    return %c0_i32, %c0_i32_0, %c0_i32_1 : i32, i32, i32
  }
  func.func @transform_11(%arg0: i32, %arg1: memref<2x4xi32, #tpu.memory_space<smem>>, %arg2: memref<2x17xi32, #tpu.memory_space<smem>>) -> (i32, i32) {
    %c0_i32 = arith.constant 0 : i32
    %c0_i32_0 = arith.constant 0 : i32
    %c0_i32_1 = arith.constant 0 : i32
    return %c0_i32, %c0_i32_0 : i32, i32
  }
  func.func @transform_12(%arg0: i32, %arg1: memref<2x4xi32, #tpu.memory_space<smem>>, %arg2: memref<2x17xi32, #tpu.memory_space<smem>>) -> (i32, i32, i32) {
    %c0_i32 = arith.constant 0 : i32
    %c0_i32_0 = arith.constant 0 : i32
    %c0_i32_1 = arith.constant 0 : i32
    return %arg0, %c0_i32, %c0_i32_0 : i32, i32, i32
  }
}

</mosaic_0001>

<bundles_post_ra>
// kernel: tpu_custom_call.1
= control target key start
LH: loop header
LB: loop body
LE: loop exit
PB: predicated region body
PF: predicated region fallthrough
CT: control target
= control target key end

     0   :  { %s4506_s0 = inlined_call_operand.vmem [shape: s32[2,4], index: 0, kind: input, shape index: {}]   ;;  %s4507_s2 = inlined_call_operand.vmem [shape: f32[2,16,48], index: 2, kind: input, shape index: {}]   ;;  %s4508_s3 = inlined_call_operand.vmem [shape: f32[48,32], index: 3, kind: input, shape index: {}]   ;;  %s4509_s4 = inlined_call_operand.vmem [shape: f32[16,32], index: 4, kind: input, shape index: {}]   ;;  %s4510_s5 = inlined_call_operand.vmem [shape: f32[8,32], index: 5, kind: input, shape index: {}]   ;;  %s4511_s6 = inlined_call_operand.vmem [shape: f32[2,32,256], index: 6, kind: input, shape index: {}]   ;;  %s4512_s7 = inlined_call_operand.vmem [shape: f32[2,8,256], index: 7, kind: input, shape index: {}]   ;;  %s4513_s8 = inlined_call_operand.vmem [shape: f32[2,128,32], index: 8, kind: input, shape index: {}]   ;;  %s4514_s9 = inlined_call_operand.vmem [shape: f32[17,32], index: 9, kind: input, shape index: {}]   ;;  %s4515_s10 = inlined_call_operand.vmem [shape: f32[1,32,256], index: 10, kind: input, shape index: {}]   ;;  %s4516_s11 = inlined_call_operand.vmem [shape: f32[1,8,256], index: 11, kind: input, shape index: {}]   ;;  %s4517_s12 = inlined_call_operand.vmem [shape: f32[1,128,32], index: 12, kind: input, shape index: {}]   ;;  %s4518_s13 = inlined_call_operand.vmem [shape: f32[33,128], index: 13, kind: input, shape index: {}]   ;;  %s4519_s14 = inlined_call_operand.hbm [shape: f32[2,16,128], index: 14, kind: output, shape index: {}]   ;;  %s4520_s1 = inlined_call_operand.vmem [shape: s32[2,17], index: 1, kind: input, shape index: {}]  }
   0x1   :  { %4549 = sst [smem:[#allocation20_spill]] %s4507_s2  ;;  %s19_s15 = sshll.u32 %s4506_s0, 4  ;;  %s20_s15 = int_to_ptr.vmem [resolvable:$true] %s19_s15 }
   0x2   :  { %4550 = sst [smem:[#allocation21_spill]] %s4508_s3  ;;  %s23_s18 = sshll.u32 %s4520_s1, 4  ;;  %s24_s18 = int_to_ptr.vmem [resolvable:$true] %s23_s18 }
   0x3   :  { %4551 = sst [smem:[#allocation22_spill]] %s4509_s4  ;;  %s3419_s19 = scalar_lea.vmem %s20_s15, 32 }
   0x4   :  { %4552 = sst [smem:[#allocation23_spill]] %s4510_s5  ;;  %p3420_p0 = scmp.ne.s32.totalorder %s20_s15, %s3419_s19 }
   0x5   :  { %4553 = sst [smem:[#allocation24_spill]] %s4511_s6  ;;  %p3424_p1 = scmp.lt.s32.totalorder %s20_s15, %s20_s15 }
   0x6   :  { %4554 = sst [smem:[#allocation25_spill]] %s4512_s7  ;;  %p3425_p2 = scmp.lt.s32.totalorder %s3419_s19, %s3419_s19 }
   0x7   :  { %4555 = sst [smem:[#allocation26_spill]] %s4513_s8 }
   0x8   :  { %4556 = sst [smem:[#allocation27_spill]] %s4517_s12  ;;  %p3426_p3 = por %p3425_p2, %p3424_p1 }
   0x9   :  { %4557 = sst [smem:[#allocation28_spill]] %s4518_s13 }
   0xa   :  { %4558 = sst [smem:[#allocation29_spill]] %s4519_s14  ;;  %p3427_p4 = pnand %p3426_p3, %p3420_p0 }
   0xc   :  { %3430 = shalt.err (!%p3427_p4)  }
   0xd   :  { %s3509_s20 = smov [#allocation5]   ;;  %s3431_s21 = scalar_lea.vmem %s24_s18, 32 }
   0xe   :  { %22 = dma.vmem_to_smem %s20_s15, 32, %s3509_s20, [#allocation4] }
   0xf   :  { %p3432_p5 = scmp.ne.s32.totalorder %s24_s18, %s3431_s21  ;;  %p3436_p6 = scmp.lt.s32.totalorder %s24_s18, %s24_s18 }
  0x10   :  { %p3437_p7 = scmp.lt.s32.totalorder %s3431_s21, %s3431_s21 }
  0x12   :  { %p3438_p8 = por %p3437_p7, %p3436_p6 }
  0x14   :  { %p3439_p9 = pnand %p3438_p8, %p3432_p5 }
  0x16   :  { %3442 = shalt.err (!%p3439_p9)  }
  0x17   :  { %s3510_s0 = smov [#allocation6]  }
  0x18   :  { %26 = dma.vmem_to_smem %s24_s18, 32, %s3510_s0, [#allocation4] }
  0x19   :  { %3487 = dma.done.wait [#allocation4], 64 }
  0x1a   :  { %3488 = vsyncadd [#allocation4], 4294967232 }
  0x1b   :  { %28 = sfence }
  0x1c   :  { %29 = vsyncpa [#allocation8], 0 }
  0x1d   :  { %31 = vsyncpa [#allocation8 + $0x1], 0  ;;  %s3605_s1 = smov 0   ;;  %s3607_s22 = smov 0  }
  0x1e   :  { %s3609_s23 = smov 0   ;;  %s3611_s24 = smov 0  }
  0x1f LB: > { %4559 = sst [smem:[#allocation11_spill]] %s3495_s1  ;;  %s3626_s25 = sadd.s32 4294967295, %s3507_s24   ;;  %s3507_s24 = sphi %s3611_s24, %s4598_s24   ;;  %s3503_s23 = sphi %s3609_s23, %s4601_s23   ;;  %s3499_s22 = sphi %s3607_s22, %s4600_s22   ;;  %s3495_s1 = sphi %s3605_s1, %s4599_s1  }
  0x20   : > { %4560 = sst [smem:[#allocation12_spill]] %s3499_s22  ;;  %s2870_s26 = sadd.s32 4294967294, %s3507_s24  }
  0x21   : > { %4561 = sst [smem:[#allocation13_spill]] %s3503_s23  ;;  %s3630_s27 = sadd.s32 1, %s3507_s24  }
  0x22   : > { %4562 = sst [smem:[#allocation14_spill]] %s3507_s24  ;;  %s301_s28 = sadd.s32 1, %s3503_s23 }
  0x23   : > { %4563 = sst [smem:[#allocation15_spill]] %s3626_s25  ;;  %s298_s29 = ssub.s32 %s3507_s24, %s3630_s27 }
  0x24   : > { %4564 = sst [smem:[#allocation16_spill]] %s3630_s27  ;;  %p311_p10 = scmp.ne.s32.totalorder %s3503_s23, %s3499_s22 }
  0x25   : > { %p299_p11 = scmp.eq.s32.totalorder %s298_s29, 0  ;;  %p312_p12 = scmp.eq.s32.totalorder %s3626_s25, 1 }
  0x26   : > { %p317_p13 = scmp.ne.s32.totalorder %s3499_s22, %s3495_s1  ;;  %p318_p0 = scmp.eq.s32.totalorder %s2870_s26, 1 }
  0x27   : > { %s3641_s30 = scalar_select %p299_p11, %s3503_s23, %s301_s28  }
  0x28   : > { %p3643_p1 = por %p312_p12, %p311_p10  ;;  %p3647_p2 = por %p318_p0, %p317_p13 }
  0x29   : > { %4565 = sst [smem:[#allocation17_spill]] %s3641_s30  ;;  %p2873_p3 = scmp.ge.s32.totalorder %s3507_s24, 1 }
  0x2a   : > { %s4566_s15 = scalar_select %p3643_p1, 1, 0 }
  0x2b   : > { %s4568_s16 = scalar_select %p3647_p2, 1, 0 }
  0x2c   : > { %4567 = sst [smem:[#allocation18_spill]] %s4566_s15  ;;  %p377_p4 = scmp.lt.s32.totalorder %s3507_s24, 3 }
  0x2d   : > { %4569 = sst [smem:[#allocation19_spill]] %s4568_s16 }
  0x2e   : > { %p378_p5 = pnand %p2873_p3, %p377_p4 }
  0x2f   : > { %s4570_s3 = sld [smem:[#allocation21_spill]] (!%p378_p5)  ;;  %p419_p6 = scmp.lt.s32.totalorder (!%p378_p5), %s3626_s25, 1  ;;  %v3511_v3 = vmov (!%p378_p5), 0.0   ;;  %vm3512_vm0 = vmmov (!%p378_p5), 0   ;;  %vm442_vm1 = vcmask (!%p378_p5), 392192   ;;  %v438_v13 = vlaneseq (!%p378_p5) }
  0x30   : > { %381 = sbr.rel (%p378_p5) target bundleno = 9301 (0x2455), region = 68  ;;  %3047 = vmatprep.subr.bf16.mxu1 (!%p378_p5), %v3511_v3  ;;  %3053 = vmatprep.mubr.msk.bf16.mxu1 (!%p378_p5), %vm3512_vm0, %v3511_v3  ;;  %s4571_s2 = sld [smem:[#allocation20_spill]] (!%p378_p5)  ;;  %vm1714_vm2 = vcmask (!%p378_p5), 253952   ;;  %vm491_vm3 = vcmask (!%p378_p5), 261120   ;;  %vm525_vm4 = vcmask (!%p378_p5), 1040384   ;;  %vm527_vm5 = vcmask (!%p378_p5), 1041408  }
  0x31   : > { %3071 = vmatprep.subr.bf16.mxu0 (!%p378_p5), %v3511_v3  ;;  %3073 = vmatprep.mubr.msk.bf16.mxu0 (!%p378_p5), %vm3512_vm0, %v3511_v3  ;;  %v3687_v14 = vshrl.u32 (!%p378_p5), %v438_v13, 7  ;;  %s4572_s5 = sld [smem:[#allocation23_spill]] (!%p378_p5)  ;;  %s3707_s18 = sshll.u32 (!%p378_p5), %s3626_s25, 7  ;;  %vm529_vm6 = vcmask (!%p378_p5), 1042432   ;;  %vm531_vm7 = vcmask (!%p378_p5), 1043456   ;;  %vm559_vm8 = vcmask (!%p378_p5), 258048  }
  0x32   : > { %s4573_s4 = sld [smem:[#allocation22_spill]] (!%p378_p5)  ;;  %s4522_s0 = sadd.s32 (!%p378_p5), 2, %s3707_s18  ;;  %vm640_vm9 = vcmask (!%p378_p5), 130048   ;;  %vm687_vm10 = vcmask (!%p378_p5), 36864   ;;  %vm701_vm11 = vcmask (!%p378_p5), 39936   ;;  %vm1710_vm12 = vcmask (!%p378_p5), 1044480  }
  0x33   : > { %v3690_v15 = vsub.s32 (!%p378_p5), 4, %v3687_v14  ;;  %v3703_v18 = vsub.s32 (!%p378_p5), 0, %v3687_v14  ;;  %s4521_s26 = sadd.s32 (!%p378_p5), 3, %s3707_s18  ;;  %s495_s17 = sld [smem:[#allocation5 + %s3707_s18]] (!%p378_p5)  ;;  %v3755_v58 = vsub.s32 (!%p378_p5), 2, %v3687_v14  ;;  %v3763_v60 = vsub.s32 (!%p378_p5), 3, %v3687_v14 }
  0x34   : > { %s507_s19 = sld [smem:[#allocation5 + %s4521_s26]] (!%p378_p5)  ;;  %s4579_s26 = smov (!%p378_p5), 32   ;;  %vm1827_vm13 = vcmask (!%p378_p5), 1045504   ;;  %vm1829_vm14 = vcmask (!%p378_p5), 1046528   ;;  %vm2065_vm15 = vcmask (!%p378_p5), 131072  }
  0x35   : > { %v428_v0 = vld [vmem:[%s4570_s3] sm:$0xff] (!%p378_p5)  ;;  %v429_v1 = vld [vmem:[%s4570_s3 + $0x8] sm:$0xff] (!%p378_p5)  ;;  %v430_v2 = vld [vmem:[%s4570_s3 + $0x10] sm:$0xff] (!%p378_p5)  ;;  %s4574_s6 = sld [smem:[#allocation24_spill]] (!%p378_p5)  ;;  %s4575_s7 = sld [smem:[#allocation25_spill]] (!%p378_p5) }
  0x36   : > { %v435_v4 = vpack.c.bf16 (!%p378_p5), %v429_v1, %v428_v0  ;;  %v431_v5 = vld [vmem:[%s4570_s3 + $0x18] sm:$0xff] (!%p378_p5)  ;;  %v432_v7 = vld [vmem:[%s4570_s3 + $0x20] sm:$0xff] (!%p378_p5)  ;;  %v433_v8 = vld [vmem:[%s4570_s3 + $0x28] sm:$0xff] (!%p378_p5)  ;;  %s503_s3 = sld [smem:[#allocation5 + %s4522_s0]] (!%p378_p5)  ;;  %s4578_s0 = smov (!%p378_p5), 64  }
  0x37   : > { %s420_s29 = scalar_select %p419_p6, %s3626_s25, 1  ;;  %v436_v6 = vpack.c.bf16 %v431_v5, %v430_v2  ;;  %v437_v9 = vpack.c.bf16 %v433_v8, %v432_v7  ;;  %v425_v16 = vld [vmem:[%s4572_s5] sm:$0xff] }
  0x38   : > { %3048 = vmatpush3.bf16.msra.mxu1 %v435_v4  ;;  %v3696_v17 = vrot.slane %v425_v16, %v3690_v15  ;;  %v441_v19 = vrot.slane %v425_v16, %v3703_v18  ;;  %v487_v21 = vld [vmem:[%s4573_s4] sm:$0xff]  ;;  %v488_v25 = vld [vmem:[%s4573_s4 + $0x8] sm:$0xff]  ;;  %v511_v30 = vrot.slane %v425_v16, 1  ;;  %v3517_v16 = vmov 65535   ;;  %s4576_s8 = sld [smem:[#allocation26_spill]]  ;;  %s1748_s23 = sadd.s32 9, %s3707_s18 }
  0x39   : > { %3049 = vmatprep.subr.bf16.mxu1 %v3511_v3  ;;  %s2944_s21 = sshll.u32 %s420_s29, 4  ;;  %s496_s20 = scalar_lea.vmem [#allocation2], %s495_s17 }
  0x3a   : > { %s423_s28 = scalar_lea.vmem %s4571_s2, %s2944_s21  ;;  %1713 = vst.msk [vmem:[#allocation3 + $0x8] sm:$0xff] %vm491_vm3, %v3696_v17  ;;  %s4523_s21 = sadd.s32 1, %s3707_s18 }
  0x3b   : > { %v426_v10 = vld [vmem:[%s423_s28] sm:$0xff]  ;;  %v427_v11 = vld [vmem:[%s423_s28 + $0x8] sm:$0xff]  ;;  %1715 = vst.msk [vmem:[#allocation3 + $0x10] sm:$0x1] %vm1714_vm2, %v3696_v17  ;;  %s499_s2 = sld [smem:[#allocation5 + %s4523_s21]]  ;;  %s508_s4 = scalar_lea.vmem [#allocation2], %s507_s19 }
  0x3c   : > { %3050 = vmatpush3.bf16.msra.mxu1 %v436_v6  ;;  %v434_v12 = vpack.c.bf16 %v427_v11, %v426_v10  ;;  %s504_s29 = scalar_lea.vmem [#allocation2], %s503_s3  ;;  %v533_v49 = vld [vmem:[%s4574_s6] sm:$0xff]  ;;  %v535_v50 = vld [vmem:[%s4574_s6 + $0x10] sm:$0xff]  ;;  %s4534_s17 = smov 96  }
  0x3d   : > { %3051 = vmatprep.subr.bf16.mxu1 %v3511_v3  ;;  %v585_v51 = vpack.c.bf16 %v535_v50, %v533_v49  ;;  %v537_v52 = vld [vmem:[%s4574_s6 + $0x20] sm:$0xff]  ;;  %v539_v53 = vld [vmem:[%s4574_s6 + $0x30] sm:$0xff]  ;;  %s4530_s19 = smov 80   ;;  %s4577_s21 = smov 80  }
  0x3e   : > { %v3749_v54 = vpack.c.bf16 %v539_v53, %v537_v52  ;;  %v3760_v59 = vld [vmem:[%s4575_s7] sm:$0xff]  ;;  %s4581_s3 = sadd.s32 1, %s3707_s18  ;;  %s1752_s27 = sadd.s32 10, %s3707_s18 }
  0x3f   : > { %v577_v61 = vrot.slane %v3760_v59, %v3755_v58  ;;  %v582_v0 = vrot.slane %v3760_v59, %v3763_v60  ;;  %v3774_v5 = vrot.slane %v3760_v59, %v3703_v18  ;;  %s4109_s30 = sld [smem:[#allocation6 + %s4581_s3]]  ;;  %s1736_s3 = sadd.s32 6, %s3707_s18 }
  0x40   : > { %3052 = vmatpush3.bf16.msra.mxu1 %v437_v9  ;;  %s1756_s1 = sadd.s32 11, %s3707_s18  ;;  %s4150_s24 = sld [smem:[#allocation6 + %s1752_s27]] }
  0x41   : > { %3057 = vmatprep.subr.bf16.mxu1 %v3511_v3  ;;  %s500_s28 = scalar_lea.vmem [#allocation2], %s499_s2  ;;  %s1728_s2 = sadd.s32 4, %s3707_s18 }
  0x42   : > { %s4153_s14 = sld [smem:[#allocation6 + %s1756_s1]]  ;;  %s1772_s25 = sadd.s32 15, %s3707_s18 }
  0x43   : > { %3054 = vmatmul.mubr.msk.bf16.vlgmr.msra.gmra.mrb[0].mxu1 %vm442_vm1, %v434_v12  ;;  %s1776_s27 = sadd.s32 16, %s3707_s18  ;;  %vm2058_vm1 = vcmask 138240  }
  0x44   : > { %3061 = vmatprep.mubr.msk.bf16.mxu1 %vm3512_vm0, %v3511_v3  ;;  %3058 = vmatpush3.bf16.msra.mxu1 %v585_v51 }
  0x45   : > { %3059 = vmatprep.subr.bf16.mxu1 %v3511_v3  ;;  %s1720_s12 = scalar_lea.vmem [#allocation3], %s4109_s30 }
  0x46   : > { %s1754_s30 = scalar_lea.vmem [#allocation3], %s4150_s24 }
  0x48   : > { %3060 = vmatpush3.bf16.msra.mxu1 %v3749_v54 }
  0x49   : > { %3065 = vmatprep.subr.bf16.mxu1 %v3511_v3 }
 0x116   : > { %v480_v20 = vpop.f32.mrb[0].mxu1 }
 0x117   : > { %v481_v22 = vadd.f32 %v480_v20, %v441_v19  ;;  %v3055_v23 = vpop.f32.mrb[1].mxu1 }
 0x118   : > { %v483_v24 = vpop.f32.mrb[2].mxu1 }
 0x119   : > { %v489_v26 = vadd.f32 %v487_v21, %v481_v22  ;;  %v484_v27 = vadd.f32 %v483_v24, %v441_v19  ;;  %v3056_v28 = vpop.f32.mrb[3].mxu1  ;;  %v705_v19 = vsel %vm527_vm5, 4294967295, %v3517_v16 }
 0x11a   : > { %v3788_v20 = vsel %vm529_vm6, %v705_v19, 0 }
 0x11b   : > { %492 = vst.msk [vmem:[#allocation2] sm:$0xff] %vm491_vm3, %v489_v26  ;;  %v490_v29 = vadd.f32 %v488_v25, %v484_v27 }
 0x11d   : > { %493 = vst.msk [vmem:[#allocation2 + $0x8] sm:$0xff] %vm491_vm3, %v490_v29 }
 0x124   : > { %v497_v31 = vld [vmem:[%s496_s20] sm:$0x1]  ;;  %s4532_s20 = smov 112  }
 0x125   : > { %v501_v32 = vld [vmem:[%s500_s28] sm:$0x1]  ;;  %v514_v35 = vrot.slane %v497_v31, 7  ;;  %s4526_s28 = smov 32  }
 0x126   : > { %v505_v33 = vld [vmem:[%s504_s29] sm:$0x1]  ;;  %v517_v36 = vrot.slane %v501_v32, 6  ;;  %s4524_s29 = smov 48  }
 0x127   : > { %v509_v34 = vld [vmem:[%s508_s4] sm:$0x1]  ;;  %v520_v37 = vrot.slane %v505_v33, 5  ;;  %v526_v38 = vsel %vm525_vm4, %v511_v30, %v514_v35  ;;  %s4528_s4 = smov 64  }
 0x128   : > { %v523_v39 = vrot.slane %v509_v34, 4  ;;  %v528_v40 = vsel %vm527_vm5, %v526_v38, %v517_v36 }
 0x129   : > { %v530_v41 = vsel %vm529_vm6, %v528_v40, %v520_v37 }
 0x12a   : > { %v3731_v42 = vsel %vm531_vm7, %v530_v41, %v523_v39 }
 0x12b   : > { %v560_v43 = vsel %vm559_vm8, %v3731_v42, 0.0 }
 0x12c   : > { %561 = vadd.xlane.f32.xlu0 %v560_v43 }
 0x1b9   : > { %v562_v44 = vpop.xlane.xlu0 %561 }
 0x1ba   : > { %v564_v45 = vmul.f32 0.03125, %v562_v44 }
 0x1bc   : > { %v565_v46 = vsub.f32 %v3731_v42, %v564_v45 }
 0x1be   : > { %v566_v47 = vmul.f32 %v565_v46, %v565_v46 }
 0x1c0   : > { %v567_v48 = vsel %vm559_vm8, %v566_v47, 0.0 }
 0x1c1   : > { %568 = vadd.xlane.f32.xlu0 %v567_v48 }
 0x24e   : > { %v569_v55 = vpop.xlane.xlu0 %568 }
 0x24f   : > { %v570_v56 = vmul.f32 0.03125, %v569_v55 }
 0x251   : > { %v571_v57 = vadd.f32 1e-06, %v570_v56 }
 0x253   : > { %3346 = vrsqrt.f32 %v571_v57 }
 0x25d   : > { %v3347_v62 = vpop.eup %3346 }
 0x25e   : > { %v573_v63 = vmul.f32 %v3347_v62, %v565_v46 }
 0x260   : > { %v578_v1 = vmul.f32 %v577_v61, %v573_v63 }
 0x262   : > { %v583_v2 = vadd.f32 %v582_v0, %v578_v1 }
 0x264   : > { %v584_v4 = vpack.c.bf16 %v583_v2, %v583_v2 }
 0x266   : > { %3062 = vmatmul.mubr.msk.bf16.vlgmr.msra.gmra.mrb[4].mxu1 %vm491_vm3, %v584_v4 }
 0x267   : > { %3067 = vmatprep.mubr.msk.bf16.mxu1 %vm3512_vm0, %v3511_v3 }
 0x339   : > { %v628_v6 = vpop.f32.mrb[4].mxu1 }
 0x33a   : > { %v629_v7 = vadd.f32 %v628_v6, %v3774_v5  ;;  %v3063_v8 = vpop.f32.mrb[5].mxu1 }
 0x33b   : > { %v631_v9 = vpop.f32.mrb[6].mxu1 }
 0x33c   : > { %v3777_v10 = vpack.c.bf16 %v629_v7, %v629_v7  ;;  %v3064_v11 = vpop.f32.mrb[7].mxu1  ;;  %v634_v12 = vmul.f32 0.25, %v629_v7 }
 0x33e   : > { %699 = vrot.lane.b32.xlu0 %v3777_v10, %s4528_s4  ;;  %638 = vrot.lane.b32.xlu1 %v3777_v10, %s4534_s17  ;;  %v635_v13 = vpack.c.bf16 %v634_v12, %v634_v12  ;;  %s4580_s4 = smov 48  }
 0x342   : > { %807 = vrot.lane.b32.xlu0 %v3777_v10, %s4530_s19  ;;  %s1740_s19 = sadd.s32 7, %s3707_s18 }
 0x343   : > { %s4140_s16 = sld [smem:[#allocation6 + %s1740_s19]]  ;;  %s1764_s19 = sadd.s32 13, %s3707_s18 }
 0x344   : > { %s4160_s22 = sld [smem:[#allocation6 + %s1764_s19]] }
 0x345   : > { %s4171_s19 = sld [smem:[#allocation6 + %s1776_s27]] }
 0x346   : > { %805 = vrot.lane.b32.xlu0 %v635_v13, %s4532_s20 }
 0x3b0   : > { %v700_v21 = vpop.permute.xlu0 %699  ;;  %v639_v22 = vpop.permute.xlu1 %638 }
 0x3b1   : > { %v708_v23 = vand.u32 %v3788_v20, %v700_v21  ;;  %v645_v24 = vsel %vm640_vm9, %v639_v22, 0 }
 0x3b2   : > { %3066 = vmatpush3.bf16.xpose.msra.mxu1 %v645_v24 }
 0x3b3   : > { %3072 = vmatpush3.bf16.msra.mxu0 %v708_v23  ;;  %3077 = vmatprep.subr.bf16.mxu1 %v3511_v3 }
 0x3b4   : > { %3083 = vmatprep.subr.bf16.mxu0 %v3511_v3  ;;  %v808_v34 = vpop.permute.xlu0 %807 }
 0x3b5   : > { %v813_v37 = vsel %vm640_vm9, %v808_v34, 0 }
 0x3b8   : > { %v806_v38 = vpop.permute.xlu0 %805 }
 0x3b9   : > { %3068 = vmatmul.mubr.msk.bf16.vlgmr.msra.gmra.mrb[8].mxu1 %vm640_vm9, %v635_v13 }
 0x3ba   : > { %3079 = vmatprep.mubr.msk.bf16.mxu1 %vm3512_vm0, %v3511_v3 }
 0x48c   : > { %v681_v25 = vpop.f32.mrb[8].mxu1 }
 0x48d   : > { %v3069_v26 = vpop.f32.mrb[9].mxu1  ;;  %v688_v27 = vsel %vm687_vm10, %v681_v25, -inf }
 0x48e   : > { %689 = vmax.xlane.f32.xlu1 %v688_v27  ;;  %v684_v28 = vpop.f32.mrb[10].mxu1 }
 0x48f   : > { %v3070_v29 = vpop.f32.mrb[11].mxu1 }
 0x49f   : > { %753 = vrot.lane.b32.xlu1 %v585_v51, %s4526_s28 }
 0x51b   : > { %v690_v30 = vpop.xlane.xlu1 %689 }
 0x51c   : > { %v691_v31 = vsub.f32 %v681_v25, %v690_v30 }
 0x51e   : > { %v692_v32 = vmul.f32 1.442695, %v691_v31 }
 0x51f   : > { %v754_v39 = vpop.permute.xlu1 %753 }
 0x520   : > { %3348 = vpow2.f32 %v692_v32  ;;  %3078 = vmatpush3.bf16.msra.mxu1 %v754_v39  ;;  %v540_v39 = vld [vmem:[%s4574_s6 + $0x38] sm:$0xff] }
 0x521   : > { %3089 = vmatprep.subr.bf16.mxu1 %v3511_v3 }
 0x52a   : > { %v3349_v33 = vpop.eup %3348 }
 0x52b   : > { %v694_v35 = vsel %vm687_vm10, %v3349_v33, 0.0  ;;  %v698_v36 = vpack.c.bf16 %v3349_v33, %v3349_v33 }
 0x52c   : > { %695 = vadd.xlane.f32.xlu0 %v694_v35 }
 0x52d   : > { %3074 = vmatmul.mubr.msk.bf16.vlgmr.msra.gmra.mrb[0].mxu0 %vm701_vm11, %v698_v36 }
 0x52e   : > { %3084 = vmatpush3.bf16.xpose.msra.mxu0 %v813_v37  ;;  %3085 = vmatprep.mubr.msk.bf16.mxu0 %vm3512_vm0, %v3511_v3 }
 0x52f   : > { %3095 = vmatprep.subr.bf16.mxu0 %v3511_v3 }
 0x535   : > { %3086 = vmatmul.mubr.msk.bf16.vlgmr.msra.gmra.mrb[4].mxu0 %vm640_vm9, %v806_v38  ;;  %v538_v38 = vld [vmem:[%s4574_s6 + $0x28] sm:$0xff] }
 0x536   : > { %3097 = vmatprep.mubr.msk.bf16.mxu0 %vm3512_vm0, %v3511_v3 }
 0x542   : > { %917 = vrot.lane.b32.xlu0 %v3749_v54, %s4526_s28 }
 0x5b9   : > { %v696_v40 = vpop.xlane.xlu0 %695 }
 0x5ba   : > { %3350 = vrcp.f32 %v696_v40  ;;  %v998_v40 = vpack.c.bf16 %v540_v39, %v538_v38  ;;  %v3925_v39 = vsub.s32 1, %v3687_v14 }
 0x5bd   : > { %v918_v1 = vpop.permute.xlu0 %917 }
 0x5be   : > { %3096 = vmatpush3.bf16.msra.mxu0 %v918_v1  ;;  %v549_v1 = vld [vmem:[%s4576_s8 + $0x30] sm:$0xff] }
 0x5bf   : > { %3109 = vmatprep.subr.bf16.mxu0 %v3511_v3 }
 0x5c4   : > { %v3351_v41 = vpop.eup %3350 }
 0x600   : > { %v744_v43 = vpop.f32.mrb[0].mxu0 }
 0x601   : > { %v750_v44 = vmul.f32 %v3351_v41, %v744_v43  ;;  %v3075_v45 = vpop.f32.mrb[1].mxu0 }
 0x602   : > { %v747_v46 = vpop.f32.mrb[2].mxu0  ;;  %v3853_v45 = vsub.s32 5, %v3687_v14 }
 0x603   : > { %v751_v47 = vpack.c.bf16 %v750_v44, %v750_v44  ;;  %v3076_v48 = vpop.f32.mrb[3].mxu0  ;;  %v989_v46 = vrot.slane %v3760_v59, %v3690_v15 }
 0x605   : > { %3080 = vmatmul.mubr.msk.bf16.vlgmr.msra.gmra.mrb[12].mxu1 %vm640_vm9, %v751_v47 }
 0x606   : > { %3091 = vmatprep.mubr.msk.bf16.mxu1 %vm3512_vm0, %v3511_v3 }
 0x608   : > { %v849_v49 = vpop.f32.mrb[4].mxu0 }
 0x609   : > { %v3087_v50 = vpop.f32.mrb[5].mxu0  ;;  %v855_v51 = vsel %vm687_vm10, %v849_v49, -inf }
 0x60a   : > { %856 = vmax.xlane.f32.xlu1 %v855_v51  ;;  %v852_v52 = vpop.f32.mrb[6].mxu0 }
 0x60b   : > { %v3088_v53 = vpop.f32.mrb[7].mxu0 }
 0x60c   : > { %v543_v53 = vld [vmem:[%s4576_s8] sm:$0xff] }
 0x61b   : > { %866 = vrot.lane.b32.xlu1 %v3777_v10, %s4524_s29 }
 0x697   : > { %v857_v54 = vpop.xlane.xlu1 %856 }
 0x698   : > { %v858_v55 = vsub.f32 %v849_v49, %v857_v54  ;;  %v994_v49 = vrot.slane %v3760_v59, %v3853_v45  ;;  %v544_v54 = vld [vmem:[%s4576_s8 + $0x8] sm:$0xff] }
 0x69a   : > { %v859_v56 = vmul.f32 1.442695, %v858_v55  ;;  %v1056_v55 = vpack.c.bf16 %v544_v54, %v543_v53 }
 0x69b   : > { %v867_v57 = vpop.permute.xlu1 %866 }
 0x69c   : > { %3352 = vpow2.f32 %v859_v56  ;;  %v872_v61 = vand.u32 %v867_v57, %v3788_v20  ;;  %v545_v56 = vld [vmem:[%s4576_s8 + $0x10] sm:$0xff]  ;;  %v546_v57 = vld [vmem:[%s4576_s8 + $0x18] sm:$0xff] }
 0x69e   : > { %3090 = vmatpush3.bf16.msra.mxu1 %v872_v61  ;;  %v1057_v61 = vpack.c.bf16 %v546_v57, %v545_v56  ;;  %v2893_v56 = vld [vmem:[%s4574_s6 + $0x70] sm:$0xff] }
 0x69f   : > { %3101 = vmatprep.subr.bf16.mxu1 %v3511_v3 }
 0x6a6   : > { %v3353_v62 = vpop.eup %3352 }
 0x6a7   : > { %v861_v63 = vsel %vm687_vm10, %v3353_v62, 0.0  ;;  %v865_v0 = vpack.c.bf16 %v3353_v62, %v3353_v62  ;;  %v547_v62 = vld [vmem:[%s4576_s8 + $0x20] sm:$0xff] }
 0x6a8   : > { %862 = vadd.xlane.f32.xlu1 %v861_v63  ;;  %v548_v63 = vld [vmem:[%s4576_s8 + $0x28] sm:$0xff] }
 0x6a9   : > { %3092 = vmatmul.mubr.msk.bf16.vlgmr.msra.gmra.mrb[16].mxu1 %vm701_vm11, %v865_v0  ;;  %v1058_v0 = vpack.c.bf16 %v548_v63, %v547_v62 }
 0x6aa   : > { %3105 = vmatprep.mubr.msk.bf16.mxu1 %vm3512_vm0, %v3511_v3 }
 0x6d8   : > { %v793_v2 = vpop.f32.mrb[12].mxu1 }
 0x6d9   : > { %800 = vrot.lane.b32.xlu0 %v793_v2, %s4534_s17  ;;  %v3081_v4 = vpop.f32.mrb[13].mxu1  ;;  %v550_v2 = vld [vmem:[%s4576_s8 + $0x38] sm:$0xff] }
 0x6da   : > { %v796_v6 = vpop.f32.mrb[14].mxu1  ;;  %v1059_v4 = vpack.c.bf16 %v550_v2, %v549_v1 }
 0x6db   : > { %v3082_v7 = vpop.f32.mrb[15].mxu1  ;;  %v551_v6 = vld [vmem:[%s4576_s8 + $0x40] sm:$0xff] }
 0x6dc   : > { %v552_v7 = vld [vmem:[%s4576_s8 + $0x48] sm:$0xff] }
 0x735   : > { %v863_v8 = vpop.xlane.xlu1 %862 }
 0x736   : > { %3354 = vrcp.f32 %v863_v8  ;;  %v1060_v8 = vpack.c.bf16 %v552_v7, %v551_v6 }
 0x740   : > { %v3355_v9 = vpop.eup %3354 }
 0x74b   : > { %v801_v25 = vpop.permute.xlu0 %800 }
 0x74c   : > { %v803_v26 = vadd.f32 %v801_v25, %v3774_v5  ;;  %v534_v5 = vld [vmem:[%s4574_s6 + $0x8] sm:$0xff] }
 0x77c   : > { %v908_v10 = vpop.f32.mrb[16].mxu1 }
 0x77d   : > { %v914_v11 = vmul.f32 %v3355_v9, %v908_v10  ;;  %v3093_v12 = vpop.f32.mrb[17].mxu1  ;;  %v553_v9 = vld [vmem:[%s4576_s8 + $0x50] sm:$0xff]  ;;  %v554_v10 = vld [vmem:[%s4576_s8 + $0x58] sm:$0xff] }
 0x77e   : > { %v911_v13 = vpop.f32.mrb[18].mxu1  ;;  %v555_v12 = vld [vmem:[%s4576_s8 + $0x60] sm:$0xff] }
 0x77f   : > { %v915_v16 = vpack.c.bf16 %v914_v11, %v914_v11  ;;  %v3094_v19 = vpop.f32.mrb[19].mxu1  ;;  %v1061_v11 = vpack.c.bf16 %v554_v10, %v553_v9  ;;  %v556_v13 = vld [vmem:[%s4576_s8 + $0x68] sm:$0xff] }
 0x780   : > { %v557_v19 = vld [vmem:[%s4576_s8 + $0x70] sm:$0xff] }
 0x781   : > { %3098 = vmatmul.mubr.msk.bf16.vlgmr.msra.gmra.mrb[8].mxu0 %vm640_vm9, %v915_v16  ;;  %v1062_v16 = vpack.c.bf16 %v556_v13, %v555_v12 }
 0x782   : > { %3125 = vmatprep.mubr.msk.bf16.mxu0 %vm3512_vm0, %v3511_v3  ;;  %3110 = vmatpush3.bf16.msra.mxu0 %v1056_v55  ;;  %v2891_v55 = vld [vmem:[%s4574_s6 + $0x60] sm:$0xff] }
 0x783   : > { %3111 = vmatprep.subr.bf16.mxu0 %v3511_v3  ;;  %v3951_v57 = vpack.c.bf16 %v2893_v56, %v2891_v55 }
 0x786   : > { %3112 = vmatpush3.bf16.msra.mxu0 %v1057_v61 }
 0x787   : > { %3113 = vmatprep.subr.bf16.mxu0 %v3511_v3 }
 0x78a   : > { %3114 = vmatpush3.bf16.msra.mxu0 %v1058_v0  ;;  %v3959_v0 = vld [vmem:[%s4575_s7 + $0x10] sm:$0xff] }
 0x78b   : > { %3115 = vmatprep.subr.bf16.mxu0 %v3511_v3  ;;  %v1155_v1 = vrot.slane %v3959_v0, %v3755_v58  ;;  %v1160_v6 = vrot.slane %v3959_v0, %v3763_v60  ;;  %v3970_v10 = vrot.slane %v3959_v0, %v3703_v18 }
 0x78e   : > { %3116 = vmatpush3.bf16.msra.mxu0 %v1059_v4 }
 0x78f   : > { %3117 = vmatprep.subr.bf16.mxu0 %v3511_v3 }
 0x792   : > { %3118 = vmatpush3.bf16.msra.mxu0 %v1060_v8 }
 0x793   : > { %3119 = vmatprep.subr.bf16.mxu0 %v3511_v3 }
 0x796   : > { %3120 = vmatpush3.bf16.msra.mxu0 %v1061_v11 }
 0x797   : > { %3121 = vmatprep.subr.bf16.mxu0 %v3511_v3 }
 0x79a   : > { %3122 = vmatpush3.bf16.msra.mxu0 %v1062_v16 }
 0x79b   : > { %3123 = vmatprep.subr.bf16.mxu0 %v3511_v3 }
 0x854   : > { %v957_v21 = vpop.f32.mrb[8].mxu0 }
 0x855   : > { %964 = vrot.lane.b32.xlu0 %v957_v21, %s4534_s17  ;;  %v3099_v22 = vpop.f32.mrb[9].mxu0  ;;  %v558_v21 = vld [vmem:[%s4576_s8 + $0x78] sm:$0xff] }
 0x856   : > { %v960_v23 = vpop.f32.mrb[10].mxu0  ;;  %v1063_v22 = vpack.c.bf16 %v558_v21, %v557_v19 }
 0x857   : > { %v3100_v24 = vpop.f32.mrb[11].mxu0  ;;  %v542_v23 = vld [vmem:[%s4575_s7 + $0x8] sm:$0xff] }
 0x858   : > { %3124 = vmatpush3.bf16.msra.mxu0 %v1063_v22  ;;  %v1002_v24 = vrot.slane %v542_v23, %v3703_v18 }
 0x859   : > { %3155 = vmatprep.subr.bf16.mxu0 %v3511_v3 }
 0x8c7   : > { %v965_v27 = vpop.permute.xlu0 %964 }
 0x8c8   : > { %v967_v28 = vadd.f32 %v965_v27, %v803_v26 }
 0x8ca   : > { %969 = vrot.lane.b32.xlu0 %v967_v28, %s4526_s28  ;;  %s4583_s28 = sadd.s32 3, %s3707_s18 }
 0x8cb   : > { %s4117_s29 = sld [smem:[#allocation6 + %s4583_s28]] }
 0x8cc   : > { %s4130_s28 = sld [smem:[#allocation6 + %s1728_s2]] }
 0x93c   : > { %v970_v29 = vpop.permute.xlu0 %969 }
 0x93d   : > { %v3832_v30 = vadd.f32 %v970_v29, %v3731_v42  ;;  %v536_v42 = vld [vmem:[%s4574_s6 + $0x18] sm:$0xff] }
 0x93e   : > { %v997_v37 = vpack.c.bf16 %v536_v42, %v534_v5 }
 0x93f   : > { %v973_v31 = vsel %vm559_vm8, %v3832_v30, 0.0 }
 0x940   : > { %974 = vadd.xlane.f32.xlu1 %v973_v31  ;;  %3102 = vmatpush3.bf16.msra.mxu1 %v997_v37 }
 0x941   : > { %3103 = vmatprep.subr.bf16.mxu1 %v3511_v3 }
 0x944   : > { %3104 = vmatpush3.bf16.msra.mxu1 %v998_v40  ;;  %v1108_v40 = vrot.slane %v3760_v59, %v3925_v39  ;;  %v2887_v59 = vld [vmem:[%s4574_s6 + $0x40] sm:$0xff] }
 0x945   : > { %3129 = vmatprep.subr.bf16.mxu1 %v3511_v3 }
 0x9cd   : > { %v975_v32 = vpop.xlane.xlu1 %974 }
 0x9ce   : > { %v976_v33 = vmul.f32 0.03125, %v975_v32 }
 0x9d0   : > { %v977_v34 = vsub.f32 %v3832_v30, %v976_v33 }
 0x9d2   : > { %v978_v35 = vmul.f32 %v977_v34, %v977_v34 }
 0x9d4   : > { %v979_v36 = vsel %vm559_vm8, %v978_v35, 0.0 }
 0x9d5   : > { %980 = vadd.xlane.f32.xlu0 %v979_v36 }
 0xa62   : > { %v981_v41 = vpop.xlane.xlu0 %980 }
 0xa63   : > { %v982_v43 = vmul.f32 0.03125, %v981_v41 }
 0xa65   : > { %v983_v44 = vadd.f32 1e-06, %v982_v43 }
 0xa67   : > { %3356 = vrsqrt.f32 %v983_v44 }
 0xa71   : > { %v3357_v47 = vpop.eup %3356 }
 0xa72   : > { %v985_v48 = vmul.f32 %v3357_v47, %v977_v34 }
 0xa74   : > { %v990_v50 = vmul.f32 %v989_v46, %v985_v48 }
 0xa76   : > { %v995_v51 = vadd.f32 %v994_v49, %v990_v50 }
 0xa78   : > { %v996_v52 = vpack.c.bf16 %v995_v51, %v995_v51 }
 0xa7a   : > { %3106 = vmatmul.mubr.msk.bf16.vlgmr.msra.gmra.mrb[20].mxu1 %vm491_vm3, %v996_v52 }
 0xa7b   : > { %3133 = vmatprep.mubr.msk.bf16.mxu1 %vm3512_vm0, %v3511_v3 }
 0xb4d   : > { %v1040_v25 = vpop.f32.mrb[20].mxu1 }
 0xb4e   : > { %v1041_v26 = vadd.f32 %v1040_v25, %v1002_v24  ;;  %v3107_v27 = vpop.f32.mrb[21].mxu1 }
 0xb4f   : > { %v1043_v28 = vpop.f32.mrb[22].mxu1 }
 0xb50   : > { %v1046_v29 = vmul.f32 %v1041_v26, %v1041_v26  ;;  %v3108_v31 = vpop.f32.mrb[23].mxu1 }
 0xb52   : > { %v1047_v32 = vmul.f32 %v1046_v29, %v1041_v26 }
 0xb54   : > { %v1048_v33 = vmul.f32 0.044715, %v1047_v32 }
 0xb56   : > { %v1049_v34 = vadd.f32 %v1048_v33, %v1041_v26 }
 0xb58   : > { %v1050_v35 = vmul.f32 0.7978846, %v1049_v34 }
 0xb5a   : > { %3358 = vtanh.f32 %v1050_v35 }
 0xb64   : > { %v3359_v36 = vpop.eup %3358 }
 0xb65   : > { %v1052_v5 = vadd.f32 1.0, %v3359_v36 }
 0xb67   : > { %v1053_v42 = vmul.f32 0.5, %v1052_v5 }
 0xb69   : > { %v1054_v37 = vmul.f32 %v1053_v42, %v1041_v26 }
 0xb6b   : > { %v1055_v38 = vpack.c.bf16 %v1054_v37, %v1054_v37 }
 0xb6d   : > { %3126 = vmatmul.mubr.bf16.vlgmr.msra.gmra.mrb[12].mxu0 %v1055_v38 }
 0xb6e   : > { %3157 = vmatprep.mubr.msk.bf16.mxu0 %vm3512_vm0, %v3511_v3 }
 0xc40   : > { %v1098_v41 = vpop.f32.mrb[12].mxu0 }
 0xc41   : > { %v1104_v43 = vadd.f32 %v1098_v41, %v3832_v30  ;;  %v3127_v44 = vpop.f32.mrb[13].mxu0  ;;  %v2889_v30 = vld [vmem:[%s4574_s6 + $0x50] sm:$0xff] }
 0xc42   : > { %v1101_v46 = vpop.f32.mrb[14].mxu0  ;;  %v3942_v54 = vpack.c.bf16 %v2889_v30, %v2887_v59 }
 0xc43   : > { %v3930_v47 = vadd.f32 %v1108_v40, %v1104_v43  ;;  %v3128_v48 = vpop.f32.mrb[15].mxu0 }
 0xc44   : > { %3130 = vmatpush3.bf16.msra.mxu1 %v3942_v54 }
 0xc45   : > { %v1139_v49 = vsel %vm559_vm8, %v3930_v47, 0.0  ;;  %3131 = vmatprep.subr.bf16.mxu1 %v3511_v3 }
 0xc46   : > { %1140 = vadd.xlane.f32.xlu1 %v1139_v49 }
 0xc48   : > { %3132 = vmatpush3.bf16.msra.mxu1 %v3951_v57 }
 0xc49   : > { %3137 = vmatprep.subr.bf16.mxu1 %v3511_v3 }
 0xcd3   : > { %v1141_v50 = vpop.xlane.xlu1 %1140 }
 0xcd4   : > { %v1142_v51 = vmul.f32 0.03125, %v1141_v50 }
 0xcd6   : > { %v1143_v14 = vsub.f32 %v3930_v47, %v1142_v51 }
 0xcd8   : > { %v1144_v52 = vmul.f32 %v1143_v14, %v1143_v14 }
 0xcda   : > { %v1145_v53 = vsel %vm559_vm8, %v1144_v52, 0.0 }
 0xcdb   : > { %1146 = vadd.xlane.f32.xlu1 %v1145_v53 }
 0xd68   : > { %v1147_v61 = vpop.xlane.xlu1 %1146 }
 0xd69   : > { %v1148_v62 = vmul.f32 0.03125, %v1147_v61 }
 0xd6b   : > { %v1149_v63 = vadd.f32 1e-06, %v1148_v62 }
 0xd6d   : > { %3360 = vrsqrt.f32 %v1149_v63 }
 0xd77   : > { %v3361_v2 = vpop.eup %3360 }
 0xd78   : > { %v1151_v4 = vmul.f32 %v3361_v2, %v1143_v14 }
 0xd7a   : > { %v1156_v7 = vmul.f32 %v1155_v1, %v1151_v4 }
 0xd7c   : > { %v1161_v8 = vadd.f32 %v1160_v6, %v1156_v7 }
 0xd7e   : > { %v1162_v9 = vpack.c.bf16 %v1161_v8, %v1161_v8 }
 0xd80   : > { %3134 = vmatmul.mubr.msk.bf16.vlgmr.msra.gmra.mrb[24].mxu1 %vm491_vm3, %v1162_v9 }
 0xd81   : > { %3139 = vmatprep.mubr.msk.bf16.mxu1 %vm3512_vm0, %v3511_v3 }
 0xe53   : > { %v1206_v11 = vpop.f32.mrb[24].mxu1 }
 0xe54   : > { %v1207_v12 = vadd.f32 %v1206_v11, %v3970_v10  ;;  %v3135_v13 = vpop.f32.mrb[25].mxu1 }
 0xe55   : > { %v1209_v16 = vpop.f32.mrb[26].mxu1 }
 0xe56   : > { %v1212_v19 = vmul.f32 0.25, %v1207_v12  ;;  %v1214_v21 = vpack.c.bf16 %v1207_v12, %v1207_v12  ;;  %v3136_v22 = vpop.f32.mrb[27].mxu1 }
 0xe58   : > { %v1213_v23 = vpack.c.bf16 %v1212_v19, %v1212_v19  ;;  %1216 = vrot.lane.b32.xlu1 %v1214_v21, %s4534_s17 }
 0xe5a   : > { %1378 = vrot.lane.b32.xlu0 %v1213_v23, %s4532_s20 }
 0xe5c   : > { %1380 = vrot.lane.b32.xlu1 %v1214_v21, %s4577_s21 }
 0xe5e   : > { %1275 = vrot.lane.b32.xlu0 %v1214_v21, %s4578_s0 }
 0xeca   : > { %v1217_v24 = vpop.permute.xlu1 %1216 }
 0xecb   : > { %v1222_v25 = vsel %vm640_vm9, %v1217_v24, 0 }
 0xecc   : > { %3138 = vmatpush3.bf16.xpose.msra.mxu1 %v1222_v25  ;;  %v1379_v26 = vpop.permute.xlu0 %1378 }
 0xecd   : > { %3143 = vmatprep.subr.bf16.mxu1 %v3511_v3 }
 0xece   : > { %v1381_v27 = vpop.permute.xlu1 %1380 }
 0xecf   : > { %v1386_v28 = vsel %vm640_vm9, %v1381_v27, 0 }
 0xed0   : > { %3156 = vmatpush3.bf16.xpose.msra.mxu0 %v1386_v28  ;;  %v1276_v29 = vpop.permute.xlu0 %1275 }
 0xed1   : > { %v1281_v31 = vand.u32 %v1276_v29, %v3788_v20  ;;  %3167 = vmatprep.subr.bf16.mxu0 %v3511_v3 }
 0xed3   : > { %3140 = vmatmul.mubr.msk.bf16.vlgmr.msra.gmra.mrb[28].mxu1 %vm640_vm9, %v1213_v23 }
 0xed4   : > { %3144 = vmatpush3.bf16.msra.mxu1 %v1281_v31  ;;  %3145 = vmatprep.mubr.msk.bf16.mxu1 %vm3512_vm0, %v3511_v3 }
 0xed5   : > { %3149 = vmatprep.subr.bf16.mxu1 %v3511_v3 }
 0xed7   : > { %3158 = vmatmul.mubr.msk.bf16.vlgmr.msra.gmra.mrb[16].mxu0 %vm640_vm9, %v1379_v26 }
 0xed8   : > { %3169 = vmatprep.mubr.msk.bf16.mxu0 %vm3512_vm0, %v3511_v3 }
 0xfa6   : > { %v1258_v32 = vpop.f32.mrb[28].mxu1 }
 0xfa7   : > { %v3141_v33 = vpop.f32.mrb[29].mxu1  ;;  %v1264_v34 = vsel %vm687_vm10, %v1258_v32, -inf }
 0xfa8   : > { %1265 = vmax.xlane.f32.xlu1 %v1264_v34  ;;  %v1261_v35 = vpop.f32.mrb[30].mxu1 }
 0xfa9   : > { %v3142_v36 = vpop.f32.mrb[31].mxu1 }
 0xfaa   : > { %v1422_v5 = vpop.f32.mrb[16].mxu0 }
 0xfab   : > { %v3159_v42 = vpop.f32.mrb[17].mxu0  ;;  %v1428_v37 = vsel %vm687_vm10, %v1422_v5, -inf }
 0xfac   : > { %v1425_v38 = vpop.f32.mrb[18].mxu0  ;;  %1429 = vmax.xlane.f32.xlu1 %v1428_v37 }
 0xfad   : > { %v3160_v40 = vpop.f32.mrb[19].mxu0 }
 0xfbd   : > { %1326 = vrot.lane.b32.xlu1 %v3942_v54, %s4579_s26 }
0x1035   : > { %v1266_v41 = vpop.xlane.xlu1 %1265 }
0x1036   : > { %v1267_v43 = vsub.f32 %v1258_v32, %v1266_v41  ;;  %v2892_v41 = vld [vmem:[%s4574_s6 + $0x68] sm:$0xff] }
0x1038   : > { %v1268_v44 = vmul.f32 1.442695, %v1267_v43  ;;  %v2894_v43 = vld [vmem:[%s4574_s6 + $0x78] sm:$0xff] }
0x1039   : > { %v1430_v46 = vpop.xlane.xlu1 %1429 }
0x103a   : > { %3362 = vpow2.f32 %v1268_v44  ;;  %v1431_v48 = vsub.f32 %v1422_v5, %v1430_v46  ;;  %v1571_v44 = vpack.c.bf16 %v2894_v43, %v2892_v41  ;;  %v1681_v41 = vrot.slane %v3959_v0, %v3925_v39 }
0x103c   : > { %v1432_v49 = vmul.f32 1.442695, %v1431_v48 }
0x103d   : > { %v1327_v59 = vpop.permute.xlu1 %1326 }
0x103e   : > { %3364 = vpow2.f32 %v1432_v49 }
0x1044   : > { %v3363_v50 = vpop.eup %3362 }
0x1045   : > { %v1270_v51 = vsel %vm687_vm10, %v3363_v50, 0.0  ;;  %v1274_v14 = vpack.c.bf16 %v3363_v50, %v3363_v50  ;;  %v1562_v50 = vrot.slane %v3959_v0, %v3690_v15 }
0x1046   : > { %1271 = vadd.xlane.f32.xlu0 %v1270_v51 }
0x1047   : > { %3146 = vmatmul.mubr.msk.bf16.vlgmr.msra.gmra.mrb[32].mxu1 %vm701_vm11, %v1274_v14 }
0x1048   : > { %v3365_v52 = vpop.eup %3364  ;;  %3151 = vmatprep.mubr.msk.bf16.mxu1 %vm3512_vm0, %v3511_v3  ;;  %3150 = vmatpush3.bf16.msra.mxu1 %v1327_v59 }
0x1049   : > { %v1434_v53 = vsel %vm687_vm10, %v3365_v52, 0.0  ;;  %3161 = vmatprep.subr.bf16.mxu1 %v3511_v3 }
0x104a   : > { %1435 = vadd.xlane.f32.xlu1 %v1434_v53 }
0x105c   : > { %1439 = vrot.lane.b32.xlu0 %v1214_v21, %s4580_s4  ;;  %s1726_s4 = scalar_lea.vmem [#allocation3], %s4117_s29  ;;  %s1758_s29 = scalar_lea.vmem [#allocation3], %s4153_s14 }
0x1060   : > { %1490 = vrot.lane.b32.xlu0 %v3951_v57, %s4579_s26  ;;  %v1438_v57 = vpack.c.bf16 %v3365_v52, %v3365_v52  ;;  %v1567_v52 = vrot.slane %v3959_v0, %v3853_v45 }
0x10d3   : > { %v1272_v30 = vpop.xlane.xlu0 %1271 }
0x10d4   : > { %3366 = vrcp.f32 %v1272_v30 }
0x10d7   : > { %v1440_v56 = vpop.permute.xlu0 %1439  ;;  %v1436_v7 = vpop.xlane.xlu1 %1435 }
0x10d8   : > { %v1445_v4 = vand.u32 %v1440_v56, %v3788_v20  ;;  %3368 = vrcp.f32 %v1436_v7 }
0x10db   : > { %v1491_v6 = vpop.permute.xlu0 %1490 }
0x10dc   : > { %3168 = vmatpush3.bf16.msra.mxu0 %v1491_v6  ;;  %v2904_v6 = vld [vmem:[%s4576_s8 + $0xb8] sm:$0xff] }
0x10dd   : > { %3181 = vmatprep.subr.bf16.mxu0 %v3511_v3 }
0x10de   : > { %v3367_v54 = vpop.eup %3366 }
0x10e2   : > { %v3369_v12 = vpop.eup %3368 }
0x111a   : > { %v1317_v55 = vpop.f32.mrb[32].mxu1 }
0x111b   : > { %v1323_v61 = vmul.f32 %v3367_v54, %v1317_v55  ;;  %v3147_v62 = vpop.f32.mrb[33].mxu1  ;;  %v2897_v54 = vld [vmem:[%s4576_s8 + $0x80] sm:$0xff]  ;;  %v2898_v55 = vld [vmem:[%s4576_s8 + $0x88] sm:$0xff] }
0x111c   : > { %v1320_v63 = vpop.f32.mrb[34].mxu1  ;;  %v1629_v56 = vpack.c.bf16 %v2898_v55, %v2897_v54  ;;  %v2900_v62 = vld [vmem:[%s4576_s8 + $0x98] sm:$0xff]  ;;  %v3418_v55 = vld [vmem:[%s4572_s5] sm:$0xff]  ;;  %s1744_s5 = sadd.s32 8, %s3707_s18 }
0x111d   : > { %v1324_v1 = vpack.c.bf16 %v1323_v61, %v1323_v61  ;;  %v3148_v2 = vpop.f32.mrb[35].mxu1  ;;  %v2899_v61 = vld [vmem:[%s4576_s8 + $0x90] sm:$0xff]  ;;  %s4143_s2 = sld [smem:[#allocation6 + %s1744_s5]]  ;;  %s1768_s5 = sadd.s32 14, %s3707_s18 }
0x111e   : > { %v1630_v63 = vpack.c.bf16 %v2900_v62, %v2899_v61  ;;  %v2902_v2 = vld [vmem:[%s4576_s8 + $0xa8] sm:$0xff]  ;;  %v1704_v62 = vrot.slane %v3418_v55, %v3763_v60  ;;  %s4162_s13 = sld [smem:[#allocation6 + %s1768_s5]] }
0x111f   : > { %3152 = vmatmul.mubr.msk.bf16.vlgmr.msra.gmra.mrb[36].mxu1 %vm640_vm9, %v1324_v1  ;;  %v2901_v1 = vld [vmem:[%s4576_s8 + $0xa0] sm:$0xff] }
0x1120   : > { %3162 = vmatpush3.bf16.msra.mxu1 %v1445_v4  ;;  %3163 = vmatprep.mubr.msk.bf16.mxu1 %vm3512_vm0, %v3511_v3  ;;  %v1631_v4 = vpack.c.bf16 %v2902_v2, %v2901_v1 }
0x1121   : > { %3173 = vmatprep.subr.bf16.mxu1 %v3511_v3 }
0x1123   : > { %s1746_s24 = scalar_lea.vmem [#allocation3], %s4143_s2 }
0x1127   : > { %3164 = vmatmul.mubr.msk.bf16.vlgmr.msra.gmra.mrb[40].mxu1 %vm701_vm11, %v1438_v57  ;;  %v2903_v57 = vld [vmem:[%s4576_s8 + $0xb0] sm:$0xff] }
0x1128   : > { %3177 = vmatprep.mubr.msk.bf16.mxu1 %vm3512_vm0, %v3511_v3  ;;  %v1632_v7 = vpack.c.bf16 %v2904_v6, %v2903_v57 }
0x11f2   : > { %v1366_v20 = vpop.f32.mrb[36].mxu1 }
0x11f3   : > { %1373 = vrot.lane.b32.xlu0 %v1366_v20, %s4534_s17  ;;  %v3153_v8 = vpop.f32.mrb[37].mxu1  ;;  %v2905_v20 = vld [vmem:[%s4576_s8 + $0xc0] sm:$0xff] }
0x11f4   : > { %v1369_v9 = vpop.f32.mrb[38].mxu1  ;;  %v2906_v8 = vld [vmem:[%s4576_s8 + $0xc8] sm:$0xff] }
0x11f5   : > { %v3154_v11 = vpop.f32.mrb[39].mxu1  ;;  %v1633_v9 = vpack.c.bf16 %v2906_v8, %v2905_v20 }
0x11f6   : > { %v2907_v11 = vld [vmem:[%s4576_s8 + $0xd0] sm:$0xff] }
0x11fa   : > { %v1481_v13 = vpop.f32.mrb[40].mxu1 }
0x11fb   : > { %v1487_v16 = vmul.f32 %v3369_v12, %v1481_v13  ;;  %v3165_v19 = vpop.f32.mrb[41].mxu1  ;;  %v2908_v12 = vld [vmem:[%s4576_s8 + $0xd8] sm:$0xff] }
0x11fc   : > { %v1484_v21 = vpop.f32.mrb[42].mxu1  ;;  %v1634_v13 = vpack.c.bf16 %v2908_v12, %v2907_v11  ;;  %v2910_v19 = vld [vmem:[%s4576_s8 + $0xe8] sm:$0xff] }
0x11fd   : > { %v1488_v22 = vpack.c.bf16 %v1487_v16, %v1487_v16  ;;  %v3166_v23 = vpop.f32.mrb[43].mxu1  ;;  %v2909_v16 = vld [vmem:[%s4576_s8 + $0xe0] sm:$0xff] }
0x11fe   : > { %v1635_v21 = vpack.c.bf16 %v2910_v19, %v2909_v16  ;;  %v2912_v23 = vld [vmem:[%s4576_s8 + $0xf8] sm:$0xff] }
0x11ff   : > { %3170 = vmatmul.mubr.msk.bf16.vlgmr.msra.gmra.mrb[20].mxu0 %vm640_vm9, %v1488_v22  ;;  %v2911_v22 = vld [vmem:[%s4576_s8 + $0xf0] sm:$0xff] }
0x1200   : > { %3197 = vmatprep.mubr.msk.bf16.mxu0 %vm3512_vm0, %v3511_v3  ;;  %3182 = vmatpush3.bf16.msra.mxu0 %v1629_v56  ;;  %v1699_v56 = vrot.slane %v3418_v55, %v3755_v58  ;;  %v1840_v55 = vld [vmem:[%s4514_s9 + $0x10] sm:$0x1] }
0x1201   : > { %3183 = vmatprep.subr.bf16.mxu0 %v3511_v3 }
0x1204   : > { %3184 = vmatpush3.bf16.msra.mxu0 %v1630_v63 }
0x1205   : > { %3185 = vmatprep.subr.bf16.mxu0 %v3511_v3 }
0x1208   : > { %3186 = vmatpush3.bf16.msra.mxu0 %v1631_v4 }
0x1209   : > { %3187 = vmatprep.subr.bf16.mxu0 %v3511_v3 }
0x120c   : > { %3188 = vmatpush3.bf16.msra.mxu0 %v1632_v7 }
0x120d   : > { %3189 = vmatprep.subr.bf16.mxu0 %v3511_v3 }
0x1210   : > { %3190 = vmatpush3.bf16.msra.mxu0 %v1633_v9 }
0x1211   : > { %3191 = vmatprep.subr.bf16.mxu0 %v3511_v3 }
0x1214   : > { %3192 = vmatpush3.bf16.msra.mxu0 %v1634_v13 }
0x1215   : > { %3193 = vmatprep.subr.bf16.mxu0 %v3511_v3 }
0x1218   : > { %3194 = vmatpush3.bf16.msra.mxu0 %v1635_v21 }
0x1219   : > { %3195 = vmatprep.subr.bf16.mxu0 %v3511_v3 }
0x1265   : > { %v1374_v28 = vpop.permute.xlu0 %1373 }
0x1266   : > { %v1376_v29 = vadd.f32 %v1374_v28, %v3970_v10  ;;  %v2888_v10 = vld [vmem:[%s4574_s6 + $0x48] sm:$0xff] }
0x12d2   : > { %v1530_v24 = vpop.f32.mrb[20].mxu0 }
0x12d3   : > { %1537 = vrot.lane.b32.xlu0 %v1530_v24, %s4534_s17  ;;  %v3171_v25 = vpop.f32.mrb[21].mxu0  ;;  %v1636_v24 = vpack.c.bf16 %v2912_v23, %v2911_v22  ;;  %s4582_s17 = sadd.s32 2, %s3707_s18 }
0x12d4   : > { %v1533_v26 = vpop.f32.mrb[22].mxu0  ;;  %v2896_v25 = vld [vmem:[%s4575_s7 + $0x18] sm:$0xff]  ;;  %s4113_s20 = sld [smem:[#allocation6 + %s4582_s17]]  ;;  %s1732_s7 = sadd.s32 5, %s3707_s18 }
0x12d5   : > { %v3172_v27 = vpop.f32.mrb[23].mxu0  ;;  %3196 = vmatpush3.bf16.msra.mxu0 %v1636_v24  ;;  %v1575_v26 = vrot.slane %v2896_v25, %v3703_v18  ;;  %s4128_s17 = sld [smem:[#allocation6 + %s3707_s18]] }
0x12d6   : > { %s4132_s8 = sld [smem:[#allocation6 + %s1732_s7]]  ;;  %s1760_s7 = sadd.s32 12, %s3707_s18 }
0x12d7   : > { %s4156_s15 = sld [smem:[#allocation6 + %s1760_s7]]  ;;  %s1730_s7 = scalar_lea.vmem [#allocation3], %s4130_s28 }
0x12da   : > { %s1723_s1 = scalar_lea.vmem [#allocation3], %s4113_s20  ;;  %s1742_s20 = scalar_lea.vmem [#allocation3], %s4140_s16 }
0x12db   : > { %s1766_s16 = scalar_lea.vmem [#allocation3], %s4160_s22  ;;  %s4593_s22 = sld [smem:[#allocation29_spill]] }
0x12dc   : > { %s1734_s18 = scalar_lea.vmem [#allocation3], %s4132_s8 }
0x12dd   : > { %s1762_s8 = scalar_lea.vmem [#allocation3], %s4156_s15  ;;  %s1770_s15 = scalar_lea.vmem [#allocation3], %s4162_s13 }
0x12de   : > { %s4587_s13 = sld [smem:[#allocation27_spill]] }
0x1345   : > { %v1538_v31 = vpop.permute.xlu0 %1537 }
0x1346   : > { %v1540_v32 = vadd.f32 %v1538_v31, %v1376_v29 }
0x1348   : > { %1542 = vrot.lane.b32.xlu0 %v1540_v32, %s4579_s26 }
0x13ba   : > { %v1543_v33 = vpop.permute.xlu0 %1542 }
0x13bb   : > { %v4019_v34 = vadd.f32 %v1543_v33, %v3930_v47  ;;  %v2890_v47 = vld [vmem:[%s4574_s6 + $0x58] sm:$0xff]  ;;  %s4135_s6 = sld [smem:[#allocation6 + %s1736_s3]] }
0x13bc   : > { %v1570_v40 = vpack.c.bf16 %v2890_v47, %v2888_v10  ;;  %s4148_s3 = sld [smem:[#allocation6 + %s1748_s23]] }
0x13bd   : > { %v1546_v35 = vsel %vm559_vm8, %v4019_v34, 0.0  ;;  %s4164_s23 = sld [smem:[#allocation6 + %s1772_s25]]  ;;  %s1717_s25 = scalar_lea.vmem [#allocation3], %s4128_s17 }
0x13be   : > { %1547 = vadd.xlane.f32.xlu1 %v1546_v35  ;;  %3174 = vmatpush3.bf16.msra.mxu1 %v1570_v40 }
0x13bf   : > { %3175 = vmatprep.subr.bf16.mxu1 %v3511_v3 }
0x13c2   : > { %3176 = vmatpush3.bf16.msra.mxu1 %v1571_v44 }
0x13c3   : > { %s1774_s28 = scalar_lea.vmem [#allocation3], %s4164_s23  ;;  %s3521_s23 = smov [#allocation7]  }
0x13c4   : > { %s3447_s27 = sshll.u32 %s3521_s23, 4  ;;  %s3448_s27 = int_to_ptr.vmem [resolvable:$false] %s3447_s27 }
0x144b   : > { %v1548_v36 = vpop.xlane.xlu1 %1547 }
0x144c   : > { %v1549_v5 = vmul.f32 0.03125, %v1548_v36 }
0x144e   : > { %v1550_v42 = vsub.f32 %v4019_v34, %v1549_v5 }
0x1450   : > { %v1551_v37 = vmul.f32 %v1550_v42, %v1550_v42 }
0x1452   : > { %v1552_v38 = vsel %vm559_vm8, %v1551_v37, 0.0 }
0x1453   : > { %1553 = vadd.xlane.f32.xlu0 %v1552_v38 }
0x14e0   : > { %v1554_v46 = vpop.xlane.xlu0 %1553 }
0x14e1   : > { %v1555_v48 = vmul.f32 0.03125, %v1554_v46 }
0x14e3   : > { %v1556_v49 = vadd.f32 1e-06, %v1555_v48 }
0x14e5   : > { %3370 = vrsqrt.f32 %v1556_v49 }
0x14ef   : > { %v3371_v51 = vpop.eup %3370 }
0x14f0   : > { %v1558_v14 = vmul.f32 %v3371_v51, %v1550_v42 }
0x14f2   : > { %v1563_v53 = vmul.f32 %v1562_v50, %v1558_v14 }
0x14f4   : > { %v1568_v59 = vadd.f32 %v1567_v52, %v1563_v53 }
0x14f6   : > { %v1569_v30 = vpack.c.bf16 %v1568_v59, %v1568_v59 }
0x14f8   : > { %3178 = vmatmul.mubr.msk.bf16.vlgmr.msra.gmra.mrb[44].mxu1 %vm491_vm3, %v1569_v30 }
0x15cb   : > { %v1613_v27 = vpop.f32.mrb[44].mxu1 }
0x15cc   : > { %v1614_v28 = vadd.f32 %v1613_v27, %v1575_v26  ;;  %v3179_v29 = vpop.f32.mrb[45].mxu1 }
0x15cd   : > { %v1616_v31 = vpop.f32.mrb[46].mxu1 }
0x15ce   : > { %v1619_v32 = vmul.f32 %v1614_v28, %v1614_v28  ;;  %v3180_v33 = vpop.f32.mrb[47].mxu1 }
0x15d0   : > { %v1620_v35 = vmul.f32 %v1619_v32, %v1614_v28 }
0x15d2   : > { %v1621_v36 = vmul.f32 0.044715, %v1620_v35 }
0x15d4   : > { %v1622_v5 = vadd.f32 %v1621_v36, %v1614_v28 }
0x15d6   : > { %v1623_v42 = vmul.f32 0.7978846, %v1622_v5 }
0x15d8   : > { %3372 = vtanh.f32 %v1623_v42 }
0x15e2   : > { %v3373_v37 = vpop.eup %3372 }
0x15e3   : > { %v1625_v38 = vadd.f32 1.0, %v3373_v37  ;;  %v1838_v37 = vld [vmem:[%s4514_s9] sm:$0xff] }
0x15e5   : > { %v1626_v10 = vmul.f32 0.5, %v1625_v38 }
0x15e7   : > { %v1627_v47 = vmul.f32 %v1626_v10, %v1614_v28 }
0x15e9   : > { %v1628_v40 = vpack.c.bf16 %v1627_v47, %v1627_v47 }
0x15eb   : > { %3198 = vmatmul.mubr.bf16.vlgmr.msra.gmra.mrb[24].mxu0 %v1628_v40 }
0x16be   : > { %v1671_v43 = vpop.f32.mrb[24].mxu0 }
0x16bf   : > { %v1677_v44 = vadd.f32 %v1671_v43, %v4019_v34  ;;  %v3199_v46 = vpop.f32.mrb[25].mxu0 }
0x16c0   : > { %v1674_v48 = vpop.f32.mrb[26].mxu0 }
0x16c1   : > { %v3200_v49 = vpop.f32.mrb[27].mxu0  ;;  %v1682_v50 = vadd.f32 %v1681_v41, %v1677_v44 }
0x16c3   : > { %v1683_v51 = vsel %vm559_vm8, %v1682_v50, 0.0 }
0x16c4   : > { %1684 = vadd.xlane.f32.xlu1 %v1683_v51 }
0x1751   : > { %v1685_v14 = vpop.xlane.xlu1 %1684 }
0x1752   : > { %v1686_v52 = vmul.f32 0.03125, %v1685_v14 }
0x1754   : > { %v1687_v53 = vsub.f32 %v1682_v50, %v1686_v52 }
0x1756   : > { %v1688_v0 = vmul.f32 %v1687_v53, %v1687_v53 }
0x1758   : > { %v1689_v59 = vsel %vm559_vm8, %v1688_v0, 0.0  ;;  %v1839_v0 = vld [vmem:[%s4514_s9 + $0x8] sm:$0xff] }
0x1759   : > { %1690 = vadd.xlane.f32.xlu1 %v1689_v59 }
0x17e6   : > { %v1691_v34 = vpop.xlane.xlu1 %1690 }
0x17e7   : > { %v1692_v30 = vmul.f32 0.03125, %v1691_v34 }
0x17e9   : > { %v1693_v54 = vadd.f32 1e-05, %v1692_v30 }
0x17eb   : > { %3374 = vrsqrt.f32 %v1693_v54 }
0x17f5   : > { %v3375_v61 = vpop.eup %3374 }
0x17f6   : > { %v1695_v63 = vmul.f32 %v3375_v61, %v1687_v53 }
0x17f8   : > { %v1700_v1 = vmul.f32 %v1699_v56, %v1695_v63 }
0x17fa   : > { %v1705_v2 = vadd.f32 %v1704_v62, %v1700_v1 }
0x17fc   : > { %v1711_v4 = vsel %vm1710_vm12, %v1705_v2, %v3696_v17 }
0x17fd   : > { %1712 = vst.msk [vmem:[#allocation3] sm:$0xff] %vm491_vm3, %v1711_v4 }
0x1804   : > { %v1721_v17 = vld [vmem:[%s1720_s12] sm:$0x1]  ;;  %s1738_s12 = scalar_lea.vmem [#allocation3], %s4135_s6  ;;  %s1778_s6 = scalar_lea.vmem [#allocation3], %s4171_s19 }
0x1805   : > { %v1724_v57 = vld [vmem:[%s1723_s1] sm:$0x1]  ;;  %v1781_v20 = vrot.slane %v1721_v17, 7  ;;  %s4588_s1 = sld [smem:[#allocation28_spill]] }
0x1806   : > { %v1727_v6 = vld [vmem:[%s1726_s4] sm:$0x1]  ;;  %v1784_v8 = vrot.slane %v1724_v57, 6  ;;  %s1750_s4 = scalar_lea.vmem [#allocation3], %s4148_s3 }
0x1807   : > { %v1731_v7 = vld [vmem:[%s1730_s7] sm:$0x1]  ;;  %v1787_v13 = vrot.slane %v1727_v6, 5 }
0x1808   : > { %v1718_v9 = vld [vmem:[%s1717_s25] sm:$0x1]  ;;  %v1790_v23 = vrot.slane %v1731_v7, 4 }
0x1809   : > { %v1735_v11 = vld [vmem:[%s1734_s18] sm:$0x1]  ;;  %v1822_v16 = vsel %vm525_vm4, %v1718_v9, %v1781_v20 }
0x180a   : > { %v1739_v12 = vld [vmem:[%s1738_s12] sm:$0x1]  ;;  %v1823_v24 = vsel %vm527_vm5, %v1822_v16, %v1784_v8  ;;  %v1793_v26 = vrot.slane %v1735_v11, 3 }
0x180b   : > { %v1751_v19 = vld [vmem:[%s1750_s4] sm:$0x1]  ;;  %v1824_v27 = vsel %vm529_vm6, %v1823_v24, %v1787_v13  ;;  %v1796_v32 = vrot.slane %v1739_v12, 2  ;;  %s4589_s7 = smov %s4588_s1 }
0x180c   : > { %v1755_v21 = vld [vmem:[%s1754_s30] sm:$0x1]  ;;  %v1802_v29 = vrot.slane %v1751_v19, 7  ;;  %v1825_v33 = vsel %vm531_vm7, %v1824_v27, %v1790_v23  ;;  %s4584_s30 = smov 96  }
0x180d   : > { %v1743_v22 = vld [vmem:[%s1742_s20] sm:$0x1]  ;;  %v1805_v31 = vrot.slane %v1755_v21, 6  ;;  %v1826_v42 = vsel %vm1710_vm12, %v1825_v33, %v1793_v26  ;;  %s4585_s20 = smov 112  }
0x180e   : > { %v1759_v25 = vld [vmem:[%s1758_s29] sm:$0x1]  ;;  %v1799_v5 = vrot.slane %v1743_v22, 1  ;;  %v1828_v40 = vsel %vm1827_vm13, %v1826_v42, %v1796_v32  ;;  %v1846_v22 = vld [vmem:[%s4515_s10 + $0x10] sm:$0xff] }
0x180f   : > { %v1763_v28 = vld [vmem:[%s1762_s8] sm:$0x1]  ;;  %v1808_v10 = vrot.slane %v1759_v25, 5  ;;  %v1850_v25 = vld [vmem:[%s4515_s10 + $0x30] sm:$0xff] }
0x1810   : > { %v1747_v35 = vld [vmem:[%s1746_s24] sm:$0x1]  ;;  %v1811_v43 = vrot.slane %v1763_v28, 4  ;;  %v1830_v46 = vsel %vm1829_vm14, %v1828_v40, %v1799_v5 }
0x1811   : > { %v1767_v36 = vld [vmem:[%s1766_s16] sm:$0x1]  ;;  %v1831_v47 = vsel %vm525_vm4, %v1747_v35, %v1802_v29  ;;  %v4198_v50 = vadd.f32 %v1838_v37, %v1830_v46 }
0x1812   : > { %v1771_v38 = vld [vmem:[%s1770_s15] sm:$0x1]  ;;  %v1832_v44 = vsel %vm527_vm5, %v1831_v47, %v1805_v31  ;;  %v1814_v48 = vrot.slane %v1767_v36, 3 }
0x1813   : > { %v1775_v41 = vld [vmem:[%s1774_s28] sm:$0x1]  ;;  %v1833_v49 = vsel %vm529_vm6, %v1832_v44, %v1808_v10  ;;  %v1817_v51 = vrot.slane %v1771_v38, 2  ;;  %v1870_v59 = vsel %vm491_vm3, %v4198_v50, 0.0 }
0x1814   : > { %v1834_v14 = vsel %vm531_vm7, %v1833_v49, %v1811_v43  ;;  %v1820_v52 = vrot.slane %v1775_v41, 1  ;;  %1871 = vadd.xlane.f32.xlu1 %v1870_v59  ;;  %v1779_v54 = vld [vmem:[%s1778_s6] sm:$0x1]  ;;  %s4594_s6 = smov %s4593_s22 }
0x1815   : > { %v1835_v53 = vsel %vm1710_vm12, %v1834_v14, %v1814_v48  ;;  %v4217_v62 = vadd.f32 %v1840_v55, %v1779_v54  ;;  %v1844_v21 = vld [vmem:[%s4515_s10] sm:$0xff] }
0x1816   : > { %v1836_v34 = vsel %vm1827_vm13, %v1835_v53, %v1817_v51  ;;  %v1848_v23 = vld [vmem:[%s4515_s10 + $0x20] sm:$0xff]  ;;  %v4236_v24 = vpack.c.bf16 %v1846_v22, %v1844_v21 }
0x1817   : > { %v1837_v30 = vsel %vm1829_vm14, %v1836_v34, %v1820_v52  ;;  %v1876_v63 = vsel %vm1714_vm2, %v4217_v62, 0.0  ;;  %v4241_v26 = vpack.c.bf16 %v1850_v25, %v1848_v23  ;;  %v4250_v42 = vld [vmem:[%s4516_s11] sm:$0xff] }
0x1818   : > { %v4213_v56 = vadd.f32 %v1839_v0, %v1837_v30  ;;  %3201 = vmatprep.subr.bf16.mxu1 %v4236_v24  ;;  %v1912_v10 = vrot.slane %v4250_v42, %v3755_v58  ;;  %v1919_v43 = vrot.slane %v4250_v42, %v3763_v60  ;;  %v4260_v58 = vrot.slane %v4250_v42, %v3703_v18 }
0x1819   : > { %3202 = vmatpush3.bf16.msra.mxu1 %v4236_v24 }
0x181a   : > { %v1873_v61 = vsel %vm491_vm3, %v4213_v56, 0.0  ;;  %3203 = vmatprep.subr.bf16.mxu1 %v4241_v26 }
0x181b   : > { %1874 = vadd.xlane.f32.xlu1 %v1873_v61 }
0x181d   : > { %3204 = vmatpush3.bf16.msra.mxu1 %v4241_v26 }
0x181f   : > { %1877 = vadd.xlane.f32.xlu1 %v1876_v63 }
0x18a1   : > { %v1872_v1 = vpop.xlane.xlu1 %1871 }
0x18a2   : > { %v1879_v2 = vmul.f32 0.03125, %v1872_v1 }
0x18a4   : > { %v1882_v4 = vsub.f32 %v4198_v50, %v1879_v2 }
0x18a6   : > { %v1885_v6 = vmul.f32 %v1882_v4, %v1882_v4 }
0x18a8   : > { %v1875_v17 = vpop.xlane.xlu1 %1874  ;;  %v1888_v20 = vsel %vm491_vm3, %v1885_v6, 0.0 }
0x18a9   : > { %v1880_v57 = vmul.f32 0.03125, %v1875_v17  ;;  %1889 = vadd.xlane.f32.xlu1 %v1888_v20 }
0x18ab   : > { %v1883_v7 = vsub.f32 %v4213_v56, %v1880_v57 }
0x18ac   : > { %v1878_v8 = vpop.xlane.xlu1 %1877 }
0x18ad   : > { %v1881_v9 = vmul.f32 0.03125, %v1878_v8  ;;  %v1886_v11 = vmul.f32 %v1883_v7, %v1883_v7 }
0x18af   : > { %v1884_v12 = vsub.f32 %v4217_v62, %v1881_v9  ;;  %v1891_v13 = vsel %vm491_vm3, %v1886_v11, 0.0 }
0x18b0   : > { %1892 = vadd.xlane.f32.xlu1 %v1891_v13 }
0x18b1   : > { %v1887_v16 = vmul.f32 %v1884_v12, %v1884_v12 }
0x18b3   : > { %v1894_v19 = vsel %vm1714_vm2, %v1887_v16, 0.0 }
0x18b4   : > { %1895 = vadd.xlane.f32.xlu1 %v1894_v19 }
0x1936   : > { %v1890_v27 = vpop.xlane.xlu1 %1889 }
0x1937   : > { %v1897_v28 = vmul.f32 0.03125, %v1890_v27 }
0x1939   : > { %v1900_v29 = vadd.f32 1e-06, %v1897_v28 }
0x193b   : > { %3376 = vrsqrt.f32 %v1900_v29 }
0x193d   : > { %v1893_v31 = vpop.xlane.xlu1 %1892 }
0x193e   : > { %v1898_v32 = vmul.f32 0.03125, %v1893_v31 }
0x1940   : > { %v1901_v33 = vadd.f32 1e-06, %v1898_v32 }
0x1941   : > { %v1896_v35 = vpop.xlane.xlu1 %1895 }
0x1942   : > { %3378 = vrsqrt.f32 %v1901_v33  ;;  %v1899_v36 = vmul.f32 0.03125, %v1896_v35 }
0x1944   : > { %v1902_v5 = vadd.f32 1e-06, %v1899_v36 }
0x1945   : > { %v3377_v37 = vpop.eup %3376 }
0x1946   : > { %3380 = vrsqrt.f32 %v1902_v5  ;;  %v1906_v38 = vmul.f32 %v3377_v37, %v1882_v4  ;;  %v3520_v5 = vmov 0  }
0x1947   : > { %v4295_v37 = vsel %vm525_vm4, 65535, %v3520_v5 }
0x1948   : > { %v1913_v41 = vmul.f32 %v1912_v10, %v1906_v38 }
0x194a   : > { %v1920_v49 = vadd.f32 %v1919_v43, %v1913_v41 }
0x194c   : > { %v3379_v47 = vpop.eup %3378 }
0x194d   : > { %v1907_v40 = vmul.f32 %v3379_v47, %v1883_v7 }
0x194f   : > { %v1914_v44 = vmul.f32 %v1912_v10, %v1907_v40 }
0x1950   : > { %v3381_v46 = vpop.eup %3380 }
0x1951   : > { %v1908_v48 = vmul.f32 %v3381_v46, %v1884_v12  ;;  %v1921_v51 = vadd.f32 %v1919_v43, %v1914_v44 }
0x1953   : > { %v1923_v14 = vpack.c.bf16 %v1921_v51, %v1920_v49  ;;  %v1915_v52 = vmul.f32 %v1912_v10, %v1908_v48 }
0x1955   : > { %3205 = vmatprep.mubr.msk.bf16.mxu1 %vm491_vm3, %v1923_v14  ;;  %v1922_v53 = vadd.f32 %v1919_v43, %v1915_v52 }
0x1957   : > { %v1924_v0 = vpack.c.bf16 %v1922_v53, %v1922_v53 }
0x1959   : > { %3206 = vmatmul.mubr.msk.bf16.vlgmr.msra.gmra.mrb[48].mxu1 %vm491_vm3, %v1924_v0 }
0x1a2c   : > { %v3207_v59 = vpop.f32.mrb[48].mxu1 }
0x1a2d   : > { %v1980_v60 = vadd.f32 %v3207_v59, %v4260_v58  ;;  %v1971_v34 = vpop.f32.mrb[49].mxu1 }
0x1a2e   : > { %v1972_v30 = vadd.f32 %v1971_v34, %v4260_v58  ;;  %v3208_v54 = vpop.f32.mrb[50].mxu1 }
0x1a2f   : > { %v4264_v55 = vpack.c.bf16 %v1980_v60, %v1980_v60  ;;  %v1974_v61 = vpop.f32.mrb[51].mxu1  ;;  %v1987_v9 = vmul.f32 0.25, %v1980_v60 }
0x1a30   : > { %v1975_v63 = vadd.f32 %v1974_v61, %v4260_v58  ;;  %v1985_v1 = vmul.f32 0.25, %v1972_v30 }
0x1a31   : > { %1996 = vrot.lane.b32.xlu1 %v4264_v55, %s4584_s30  ;;  %v1989_v11 = vpack.c.bf16 %v1987_v9, %v1987_v9 }
0x1a32   : > { %v1986_v2 = vmul.f32 0.25, %v1975_v63  ;;  %v4269_v4 = vpack.c.bf16 %v1975_v63, %v1972_v30 }
0x1a34   : > { %v1988_v17 = vpack.c.bf16 %v1986_v2, %v1985_v1  ;;  %1994 = vrot.lane.b32.xlu0 %v4269_v4, %s4584_s30 }
0x1a35   : > { %2092 = vrot.lane.b32.xlu1 %v4269_v4, %s4578_s0 }
0x1a36   : > { %3213 = vmatprep.mubr.msk.bf16.mxu1 %vm640_vm9, %v1988_v17 }
0x1aa3   : > { %v1997_v7 = vpop.permute.xlu1 %1996 }
0x1aa4   : > { %v2008_v20 = vsel %vm640_vm9, %v1997_v7, 0 }
0x1aa6   : > { %v1995_v57 = vpop.permute.xlu0 %1994 }
0x1aa7   : > { %v2005_v6 = vsel %vm640_vm9, %v1995_v57, 0  ;;  %3289 = vmatprep.subr.msk.bf16.mxu1 %vm640_vm9, %v1995_v57  ;;  %v2093_v8 = vpop.permute.xlu1 %2092 }
0x1aa8   : > { %3210 = vmatpush3.bf16.xpose.msra.mxu1 %v2005_v6 }
0x1aa9   : > { %3290 = vmatprep.subr.msk.bf16.mxu1 %vm640_vm9, %v1997_v7 }
0x1ab0   : > { %3212 = vmatpush3.bf16.xpose.msra.mxu1 %v2008_v20 }
0x1ab1   : > { %3217 = vmatprep.subr.bf16.mxu1 %v2093_v8 }
0x1ab7   : > { %3214 = vmatmul.mubr.msk.bf16.vlgmr.msra.gmra.mrb[52].mxu1 %vm640_vm9, %v1989_v11 }
0x1ab8   : > { %3218 = vmatpush3.bf16.msra.mxu1 %v2093_v8 }
0x1b8a   : > { %v3215_v12 = vpop.f32.mrb[52].mxu1 }
0x1b8b   : > { %v2044_v13 = vpop.f32.mrb[53].mxu1  ;;  %v2066_v16 = vsel %vm2065_vm15, %v3215_v12, -inf }
0x1b8c   : > { %2067 = vmax.xlane.f32.xlu0 %v2066_v16  ;;  %v3216_v19 = vpop.f32.mrb[54].mxu1  ;;  %v2059_v21 = vsel %vm2058_vm1, %v2044_v13, -inf }
0x1b8d   : > { %2060 = vmax.xlane.f32.xlu1 %v2059_v21  ;;  %v2047_v22 = vpop.f32.mrb[55].mxu1 }
0x1b8e   : > { %v2062_v23 = vsel %vm2058_vm1, %v2047_v22, -inf }
0x1b90   : > { %2063 = vmax.xlane.f32.xlu0 %v2062_v23 }
0x1b9e   : > { %2240 = vrot.lane.b32.xlu1 %v4269_v4, %s4577_s21 }
0x1ba2   : > { %2242 = vrot.lane.b32.xlu1 %v4264_v55, %s4577_s21  ;;  %s4586_s21 = smov 48  }
0x1ba6   : > { %2238 = vrot.lane.b32.xlu1 %v1989_v11, %s4585_s20  ;;  %2094 = vrot.lane.b32.xlu0 %v4264_v55, %s4578_s0 }
0x1baa   : > { %2236 = vrot.lane.b32.xlu0 %v1988_v17, %s4585_s20  ;;  %2162 = vrot.lane.b32.xlu1 %v4236_v24, %s4579_s26  ;;  %s4590_s20 = sld [smem:[#allocation12_spill]] }
0x1bb0   : > { %s416_s0 = sand.u32 1, %s4590_s20  }
0x1bb1   : > { %s4465_s3 = scalar_lea.sflag [#allocation8], %s416_s0 }
0x1c19   : > { %v2068_v25 = vpop.xlane.xlu0 %2067 }
0x1c1a   : > { %v2071_v27 = vsub.f32 %v3215_v12, %v2068_v25  ;;  %v2061_v28 = vpop.xlane.xlu1 %2060 }
0x1c1b   : > { %v2069_v29 = vsub.f32 %v2044_v13, %v2061_v28 }
0x1c1c   : > { %v2076_v31 = vmul.f32 1.442695, %v2071_v27 }
0x1c1d   : > { %v2072_v32 = vmul.f32 1.442695, %v2069_v29  ;;  %v2064_v33 = vpop.xlane.xlu0 %2063 }
0x1c1e   : > { %3382 = vpow2.f32 %v2076_v31  ;;  %v2070_v35 = vsub.f32 %v2047_v22, %v2064_v33  ;;  %v2241_v36 = vpop.permute.xlu1 %2240 }
0x1c1f   : > { %3384 = vpow2.f32 %v2072_v32  ;;  %v2251_v53 = vsel %vm640_vm9, %v2241_v36, 0 }
0x1c20   : > { %v2074_v38 = vmul.f32 1.442695, %v2070_v35 }
0x1c21   : > { %v2095_v10 = vpop.permute.xlu0 %2094 }
0x1c22   : > { %3386 = vpow2.f32 %v2074_v38  ;;  %v2106_v24 = vand.u32 %v4295_v37, %v2095_v10  ;;  %v2243_v47 = vpop.permute.xlu1 %2242 }
0x1c23   : > { %v2254_v59 = vsel %vm640_vm9, %v2243_v47, 0 }
0x1c24   : > { %3219 = vmatprep.subr.bf16.mxu1 %v2106_v24 }
0x1c25   : > { %3220 = vmatpush3.bf16.msra.mxu1 %v2106_v24  ;;  %v2237_v0 = vpop.permute.xlu0 %2236 }
0x1c26   : > { %v2239_v40 = vpop.permute.xlu1 %2238  ;;  %3291 = vmatprep.subr.msk.bf16.mxu1 %vm640_vm9, %v2241_v36 }
0x1c28   : > { %v3383_v41 = vpop.eup %3382 }
0x1c29   : > { %v2084_v43 = vsel %vm2065_vm15, %v3383_v41, 0.0  ;;  %v3385_v44 = vpop.eup %3384  ;;  %v2091_v52 = vpack.c.bf16 %v3383_v41, %v3383_v41 }
0x1c2a   : > { %2085 = vadd.xlane.f32.xlu0 %v2084_v43  ;;  %v2163_v46 = vpop.permute.xlu1 %2162  ;;  %v2078_v49 = vsel %vm2058_vm1, %v3385_v44, 0.0 }
0x1c2b   : > { %3225 = vmatprep.subr.bf16.mxu0 %v2163_v46 }
0x1c2c   : > { %v3387_v48 = vpop.eup %3386  ;;  %3226 = vmatpush3.bf16.msra.mxu0 %v2163_v46 }
0x1c2d   : > { %v2081_v51 = vsel %vm2058_vm1, %v3387_v48, 0.0  ;;  %v2090_v14 = vpack.c.bf16 %v3387_v48, %v3385_v44 }
0x1c2e   : > { %2079 = vadd.xlane.f32.xlu0 %v2078_v49  ;;  %2082 = vadd.xlane.f32.xlu1 %v2081_v51 }
0x1c2f   : > { %3221 = vmatprep.mubr.msk.bf16.mxu1 %vm2058_vm1, %v2090_v14 }
0x1c30   : > { %3222 = vmatmul.mubr.msk.bf16.vlgmr.msra.gmra.mrb[56].mxu1 %vm2058_vm1, %v2091_v52 }
0x1c31   : > { %3232 = vmatpush3.bf16.xpose.msra.mxu1 %v2251_v53  ;;  %3235 = vmatprep.mubr.msk.bf16.mxu1 %vm640_vm9, %v2237_v0 }
0x1c32   : > { %3292 = vmatprep.subr.msk.bf16.mxu1 %vm640_vm9, %v2243_v47 }
0x1c39   : > { %3234 = vmatpush3.bf16.xpose.msra.mxu1 %v2254_v59 }
0x1c40   : > { %3236 = vmatmul.mubr.msk.bf16.vlgmr.msra.gmra.mrb[60].mxu1 %vm640_vm9, %v2239_v40 }
0x1cb7   : > { %v2086_v60 = vpop.xlane.xlu0 %2085 }
0x1cb8   : > { %3388 = vrcp.f32 %v2086_v60 }
0x1cbb   : > { %v2083_v34 = vpop.xlane.xlu1 %2082  ;;  %v2080_v30 = vpop.xlane.xlu0 %2079 }
0x1cbc   : > { %3390 = vrcp.f32 %v2083_v34 }
0x1cbd   : > { %3392 = vrcp.f32 %v2080_v30 }
0x1cc2   : > { %v3389_v61 = vpop.eup %3388 }
0x1cc6   : > { %v3391_v1 = vpop.eup %3390 }
0x1cc7   : > { %v3393_v17 = vpop.eup %3392 }
0x1d03   : > { %v3223_v54 = vpop.f32.mrb[56].mxu1 }
0x1d04   : > { %v2142_v63 = vpop.f32.mrb[57].mxu1  ;;  %v2158_v57 = vmul.f32 %v3389_v61, %v3223_v54 }
0x1d05   : > { %v3224_v2 = vpop.f32.mrb[58].mxu1  ;;  %v2156_v7 = vmul.f32 %v3393_v17, %v2142_v63 }
0x1d06   : > { %v2145_v6 = vpop.f32.mrb[59].mxu1  ;;  %v2160_v9 = vpack.c.bf16 %v2158_v57, %v2158_v57 }
0x1d07   : > { %v2157_v20 = vmul.f32 %v3391_v1, %v2145_v6 }
0x1d09   : > { %v2159_v8 = vpack.c.bf16 %v2157_v20, %v2156_v7 }
0x1d0b   : > { %3227 = vmatprep.mubr.msk.bf16.mxu0 %vm640_vm9, %v2159_v8 }
0x1d0c   : > { %3228 = vmatmul.mubr.msk.bf16.vlgmr.msra.gmra.mrb[28].mxu0 %vm640_vm9, %v2160_v9 }
0x1d13   : > { %v3237_v11 = vpop.f32.mrb[60].mxu1 }
0x1d14   : > { %v2290_v12 = vpop.f32.mrb[61].mxu1  ;;  %v2310_v13 = vsel %vm2065_vm15, %v3237_v11, -inf }
0x1d15   : > { %2311 = vmax.xlane.f32.xlu0 %v2310_v13  ;;  %v3238_v16 = vpop.f32.mrb[62].mxu1  ;;  %v2304_v22 = vsel %vm2058_vm1, %v2290_v12, -inf }
0x1d16   : > { %v2293_v19 = vpop.f32.mrb[63].mxu1 }
0x1d17   : > { %v2307_v21 = vsel %vm2058_vm1, %v2293_v19, -inf }
0x1d18   : > { %2308 = vmax.xlane.f32.xlu1 %v2307_v21 }
0x1d19   : > { %2305 = vmax.xlane.f32.xlu0 %v2304_v22 }
0x1d29   : > { %2338 = vrot.lane.b32.xlu1 %v4264_v55, %s4586_s21 }
0x1d2f   : > { %2336 = vrot.lane.b32.xlu0 %v4269_v4, %s4586_s21  ;;  %s4591_s21 = sld [smem:[#allocation15_spill]] }
0x1d35   : > { %s2945_s17 = sshll.u32 %s4591_s21, 8 }
0x1d36   : > { %s4463_s2 = scalar_lea.hbm %s4593_s22, %s2945_s17 }
0x1da2   : > { %v2312_v23 = vpop.xlane.xlu0 %2311 }
0x1da3   : > { %v2315_v25 = vsub.f32 %v3237_v11, %v2312_v23 }
0x1da5   : > { %v2320_v27 = vmul.f32 1.442695, %v2315_v25  ;;  %v2309_v28 = vpop.xlane.xlu1 %2308 }
0x1da6   : > { %v2314_v29 = vsub.f32 %v2293_v19, %v2309_v28  ;;  %v2306_v31 = vpop.xlane.xlu0 %2305 }
0x1da7   : > { %v2313_v32 = vsub.f32 %v2290_v12, %v2306_v31  ;;  %3394 = vpow2.f32 %v2320_v27 }
0x1da8   : > { %v2318_v33 = vmul.f32 1.442695, %v2314_v29 }
0x1da9   : > { %v2316_v35 = vmul.f32 1.442695, %v2313_v32  ;;  %v2339_v36 = vpop.permute.xlu1 %2338 }
0x1daa   : > { %3396 = vpow2.f32 %v2318_v33  ;;  %v2348_v5 = vand.u32 %v2339_v36, %v4295_v37  ;;  %v2337_v38 = vpop.permute.xlu0 %2336 }
0x1dab   : > { %3398 = vpow2.f32 %v2316_v35  ;;  %3239 = vmatprep.subr.bf16.mxu0 %v2337_v38 }
0x1dac   : > { %3240 = vmatpush3.bf16.msra.mxu0 %v2337_v38 }
0x1dad   : > { %3241 = vmatprep.subr.bf16.mxu0 %v2348_v5 }
0x1db0   : > { %3242 = vmatpush3.bf16.msra.mxu0 %v2348_v5 }
0x1db1   : > { %v3395_v55 = vpop.eup %3394 }
0x1db2   : > { %v2335_v41 = vpack.c.bf16 %v3395_v55, %v3395_v55  ;;  %v2328_v37 = vsel %vm2065_vm15, %v3395_v55, 0.0 }
0x1db4   : > { %v3397_v4 = vpop.eup %3396 }
0x1db5   : > { %v3399_v10 = vpop.eup %3398  ;;  %v2325_v24 = vsel %vm2058_vm1, %v3397_v4, 0.0 }
0x1db6   : > { %2326 = vadd.xlane.f32.xlu0 %v2325_v24  ;;  %v2322_v47 = vsel %vm2058_vm1, %v3399_v10, 0.0  ;;  %v2334_v40 = vpack.c.bf16 %v3397_v4, %v3399_v10 }
0x1db7   : > { %2323 = vadd.xlane.f32.xlu1 %v2322_v47 }
0x1db8   : > { %3243 = vmatprep.mubr.msk.bf16.mxu0 %vm2058_vm1, %v2334_v40 }
0x1db9   : > { %3244 = vmatmul.mubr.msk.bf16.vlgmr.msra.gmra.mrb[32].mxu0 %vm2058_vm1, %v2335_v41 }
0x1dba   : > { %2329 = vadd.xlane.f32.xlu0 %v2328_v37 }
0x1dc8   : > { %2404 = vrot.lane.b32.xlu1 %v4241_v26, %s4579_s26 }
0x1ddf   : > { %v3229_v43 = vpop.f32.mrb[28].mxu0 }
0x1de0   : > { %v2205_v44 = vpop.f32.mrb[29].mxu0  ;;  %2226 = vrot.lane.b32.xlu1 %v3229_v43, %s4584_s30 }
0x1de1   : > { %v3230_v46 = vpop.f32.mrb[30].mxu0  ;;  %2222 = vrot.lane.b32.xlu0 %v2205_v44, %s4584_s30 }
0x1de2   : > { %v2208_v48 = vpop.f32.mrb[31].mxu0  ;;  %v1845_v46 = vld [vmem:[%s4515_s10 + $0x8] sm:$0xff] }
0x1de4   : > { %2224 = vrot.lane.b32.xlu1 %v2208_v48, %s4584_s30  ;;  %v1847_v48 = vld [vmem:[%s4515_s10 + $0x18] sm:$0xff] }
0x1e43   : > { %v2327_v14 = vpop.xlane.xlu0 %2326 }
0x1e44   : > { %v2324_v49 = vpop.xlane.xlu1 %2323 }
0x1e45   : > { %3400 = vrcp.f32 %v2324_v49  ;;  %v1849_v49 = vld [vmem:[%s4515_s10 + $0x28] sm:$0xff] }
0x1e47   : > { %v2330_v52 = vpop.xlane.xlu0 %2329 }
0x1e48   : > { %v2405_v51 = vpop.permute.xlu1 %2404  ;;  %3402 = vrcp.f32 %v2330_v52 }
0x1e49   : > { %3247 = vmatprep.subr.bf16.mxu0 %v2405_v51  ;;  %3404 = vrcp.f32 %v2327_v14  ;;  %v1851_v14 = vld [vmem:[%s4515_s10 + $0x38] sm:$0xff] }
0x1e4a   : > { %3248 = vmatpush3.bf16.msra.mxu0 %v2405_v51  ;;  %v2546_v51 = vpack.c.bf16 %v1847_v48, %v1845_v46  ;;  %v2547_v52 = vpack.c.bf16 %v1851_v14, %v1849_v49 }
0x1e4c   : > { %3253 = vmatprep.subr.bf16.mxu1 %v2546_v51 }
0x1e4d   : > { %3254 = vmatpush3.bf16.msra.mxu1 %v2546_v51 }
0x1e4e   : > { %3255 = vmatprep.subr.bf16.mxu1 %v2547_v52 }
0x1e4f   : > { %v3401_v53 = vpop.eup %3400 }
0x1e51   : > { %3256 = vmatpush3.bf16.msra.mxu1 %v2547_v52 }
0x1e52   : > { %v3403_v59 = vpop.eup %3402  ;;  %v2227_v20 = vpop.permute.xlu1 %2226  ;;  %3281 = vmatprep.subr.bf16.mxu1 %v3511_v3 }
0x1e53   : > { %v3405_v30 = vpop.eup %3404  ;;  %v2223_v8 = vpop.permute.xlu0 %2222  ;;  %v2233_v21 = vadd.f32 %v2227_v20, %v4260_v58 }
0x1e54   : > { %v2231_v11 = vadd.f32 %v2223_v8, %v4260_v58 }
0x1e56   : > { %v2225_v9 = vpop.permute.xlu1 %2224 }
0x1e57   : > { %v2232_v13 = vadd.f32 %v2225_v9, %v4260_v58 }
0x1e8c   : > { %v3245_v26 = vpop.f32.mrb[32].mxu0 }
0x1e8d   : > { %v2384_v0 = vpop.f32.mrb[33].mxu0  ;;  %v2400_v54 = vmul.f32 %v3403_v59, %v3245_v26 }
0x1e8e   : > { %v2398_v60 = vmul.f32 %v3401_v53, %v2384_v0  ;;  %v3246_v34 = vpop.f32.mrb[34].mxu0 }
0x1e8f   : > { %v2387_v61 = vpop.f32.mrb[35].mxu0  ;;  %v2402_v2 = vpack.c.bf16 %v2400_v54, %v2400_v54 }
0x1e90   : > { %v2399_v63 = vmul.f32 %v3405_v30, %v2387_v61 }
0x1e92   : > { %v2401_v1 = vpack.c.bf16 %v2399_v63, %v2398_v60  ;;  %v2533_v63 = vrot.slane %v4250_v42, %v3690_v15  ;;  %v1854_v15 = vld [vmem:[%s4587_s13] sm:$0xff] }
0x1e94   : > { %3249 = vmatprep.mubr.msk.bf16.mxu0 %vm640_vm9, %v2401_v1 }
0x1e95   : > { %3250 = vmatmul.mubr.msk.bf16.vlgmr.msra.gmra.mrb[36].mxu0 %vm640_vm9, %v2402_v2 }
0x1f68   : > { %v3251_v17 = vpop.f32.mrb[36].mxu0 }
0x1f69   : > { %v2447_v57 = vpop.f32.mrb[37].mxu0 }
0x1f6a   : > { %2464 = vrot.lane.b32.xlu0 %v2447_v57, %s4584_s30  ;;  %v3252_v6 = vpop.f32.mrb[38].mxu0 }
0x1f6b   : > { %v2450_v7 = vpop.f32.mrb[39].mxu0 }
0x1f6c   : > { %2466 = vrot.lane.b32.xlu1 %v2450_v7, %s4584_s30  ;;  %v2540_v7 = vrot.slane %v4250_v42, %v3853_v45  ;;  %v1855_v45 = vld [vmem:[%s4587_s13 + $0x8] sm:$0xff] }
0x1f6e   : > { %2468 = vrot.lane.b32.xlu0 %v3251_v17, %s4584_s30 }
0x1fdc   : > { %v2465_v12 = vpop.permute.xlu0 %2464 }
0x1fdd   : > { %v2473_v16 = vadd.f32 %v2465_v12, %v2231_v11 }
0x1fde   : > { %v2467_v19 = vpop.permute.xlu1 %2466 }
0x1fdf   : > { %v2474_v22 = vadd.f32 %v2467_v19, %v2232_v13  ;;  %2479 = vrot.lane.b32.xlu1 %v2473_v16, %s4579_s26 }
0x1fe0   : > { %v2469_v23 = vpop.permute.xlu0 %2468 }
0x1fe1   : > { %v2475_v25 = vadd.f32 %v2469_v23, %v2233_v21  ;;  %2481 = vrot.lane.b32.xlu0 %v2474_v22, %s4579_s26  ;;  %v2635_v22 = vpack.c.bf16 %v1855_v45, %v1854_v15  ;;  %v1856_v23 = vld [vmem:[%s4587_s13 + $0x10] sm:$0xff] }
0x1fe3   : > { %2483 = vrot.lane.b32.xlu1 %v2475_v25, %s4579_s26  ;;  %3261 = vmatprep.subr.bf16.mxu0 %v2635_v22  ;;  %v1857_v25 = vld [vmem:[%s4587_s13 + $0x18] sm:$0xff]  ;;  %s2874_s26 = sshll.u32 %s416_s0, 4 }
0x1fe4   : > { %3262 = vmatpush3.bf16.msra.mxu0 %v2635_v22  ;;  %s418_s24 = scalar_lea.vmem [#allocation7], %s2874_s26 }
0x1fe5   : > { %s2787_s14 = sshll.u32 %s418_s24, 4  ;;  %s4458_s14 = int_to_ptr.vmem [resolvable:$true] %s2787_s14 }
0x1fe6   : > { %s3443_s5 = scalar_lea.vmem %s4458_s14, 256  ;;  %p3450_p10 = scmp.lt.s32.totalorder %s4458_s14, %s3448_s27 }
0x1fe7   : > { %p3444_p7 = scmp.ne.s32.totalorder %s4458_s14, %s3443_s5 }
0x1fe9   : > { %p3445_p8 = pnand %p3444_p7, %p3643_p1 }
0x1feb   : > { %p3446_p9 = pneg %p3445_p8 }
0x2051   : > { %v2480_v27 = vpop.permute.xlu1 %2479 }
0x2052   : > { %v4341_v28 = vadd.f32 %v2480_v27, %v4198_v50  ;;  %v2636_v27 = vpack.c.bf16 %v1857_v25, %v1856_v23  ;;  %v2701_v25 = vld [vmem:[%s4588_s1] sm:$0xff]  ;;  %s3449_s1 = scalar_lea.vmem %s3448_s27, 512 }
0x2053   : > { %v2482_v29 = vpop.permute.xlu0 %2481  ;;  %p3451_p11 = scmp.lt.s32.totalorder %s3449_s1, %s3443_s5 }
0x2054   : > { %v4344_v31 = vadd.f32 %v2482_v29, %v4213_v56  ;;  %v2491_v58 = vsel %vm491_vm3, %v4341_v28, 0.0  ;;  %3263 = vmatprep.subr.bf16.mxu0 %v2636_v27  ;;  %v1858_v29 = vld [vmem:[%s4587_s13 + $0x20] sm:$0xff] }
0x2055   : > { %2492 = vadd.xlane.f32.xlu0 %v2491_v58  ;;  %v2484_v32 = vpop.permute.xlu1 %2483  ;;  %3264 = vmatpush3.bf16.msra.mxu0 %v2636_v27  ;;  %v1859_v58 = vld [vmem:[%s4587_s13 + $0x28] sm:$0xff]  ;;  %p3452_p12 = por %p3451_p11, %p3450_p10 }
0x2056   : > { %v4349_v33 = vadd.f32 %v2484_v32, %v4217_v62  ;;  %v2494_v35 = vsel %vm491_vm3, %v4344_v31, 0.0  ;;  %v2637_v32 = vpack.c.bf16 %v1859_v58, %v1858_v29  ;;  %v2702_v27 = vld [vmem:[%s4589_s7 + $0x8] sm:$0xff]  ;;  %v2703_v58 = vld [vmem:[%s4589_s7 + $0x10] sm:$0xff] }
0x2057   : > { %2495 = vadd.xlane.f32.xlu1 %v2494_v35  ;;  %v1860_v35 = vld [vmem:[%s4587_s13 + $0x30] sm:$0xff]  ;;  %v2708_v29 = vpack.c.bf16 %v2702_v27, %v2701_v25  ;;  %p3453_p13 = pnand %p3452_p12, %p3446_p9 }
0x2058   : > { %v2497_v50 = vsel %vm1714_vm2, %v4349_v33, 0.0  ;;  %3265 = vmatprep.subr.bf16.mxu0 %v2637_v32 }
0x2059   : > { %2498 = vadd.xlane.f32.xlu0 %v2497_v50  ;;  %v1861_v50 = vld [vmem:[%s4587_s13 + $0x38] sm:$0xff]  ;;  %3266 = vmatpush3.bf16.msra.mxu0 %v2637_v32 }
0x205a   : > { %v2704_v32 = vld [vmem:[%s4589_s7 + $0x18] sm:$0xff] }
0x20e2   : > { %v2493_v36 = vpop.xlane.xlu0 %2492 }
0x20e3   : > { %v2500_v5 = vmul.f32 0.03125, %v2493_v36  ;;  %v2638_v36 = vpack.c.bf16 %v1861_v50, %v1860_v35  ;;  %v2709_v35 = vpack.c.bf16 %v2704_v32, %v2703_v58  ;;  %v2697_v50 = vrot.slane %v4250_v42, %v3925_v39 }
0x20e4   : > { %v2496_v56 = vpop.xlane.xlu1 %2495 }
0x20e5   : > { %v2503_v38 = vsub.f32 %v4341_v28, %v2500_v5  ;;  %v2501_v55 = vmul.f32 0.03125, %v2496_v56  ;;  %v1862_v5 = vld [vmem:[%s4587_s13 + $0x40] sm:$0xff]  ;;  %v1863_v56 = vld [vmem:[%s4587_s13 + $0x48] sm:$0xff]  ;;  %3267 = vmatprep.subr.bf16.mxu0 %v2638_v36 }
0x20e6   : > { %v2499_v4 = vpop.xlane.xlu0 %2498  ;;  %3268 = vmatpush3.bf16.msra.mxu0 %v2638_v36 }
0x20e7   : > { %v2504_v10 = vsub.f32 %v4344_v31, %v2501_v55  ;;  %v2502_v24 = vmul.f32 0.03125, %v2499_v4  ;;  %v2506_v62 = vmul.f32 %v2503_v38, %v2503_v38  ;;  %v1864_v55 = vld [vmem:[%s4587_s13 + $0x50] sm:$0xff]  ;;  %v1865_v4 = vld [vmem:[%s4587_s13 + $0x58] sm:$0xff] }
0x20e9   : > { %v2505_v47 = vsub.f32 %v4349_v33, %v2502_v24  ;;  %v2509_v40 = vsel %vm491_vm3, %v2506_v62, 0.0  ;;  %v2507_v41 = vmul.f32 %v2504_v10, %v2504_v10  ;;  %v1866_v24 = vld [vmem:[%s4587_s13 + $0x60] sm:$0xff]  ;;  %v1867_v62 = vld [vmem:[%s4587_s13 + $0x68] sm:$0xff] }
0x20ea   : > { %2510 = vadd.xlane.f32.xlu0 %v2509_v40  ;;  %v1868_v40 = vld [vmem:[%s4587_s13 + $0x70] sm:$0xff] }
0x20eb   : > { %v2512_v37 = vsel %vm491_vm3, %v2507_v41, 0.0  ;;  %v2508_v43 = vmul.f32 %v2505_v47, %v2505_v47  ;;  %v1869_v41 = vld [vmem:[%s4587_s13 + $0x78] sm:$0xff] }
0x20ec   : > { %2513 = vadd.xlane.f32.xlu1 %v2512_v37  ;;  %v2642_v37 = vpack.c.bf16 %v1869_v41, %v1868_v40 }
0x20ed   : > { %v2515_v44 = vsel %vm1714_vm2, %v2508_v43, 0.0  ;;  %v1853_v43 = vld [vmem:[%s4516_s11 + $0x8] sm:$0xff] }
0x20ee   : > { %2516 = vadd.xlane.f32.xlu0 %v2515_v44  ;;  %v2551_v44 = vrot.slane %v1853_v43, %v3703_v18 }
0x2177   : > { %v2511_v26 = vpop.xlane.xlu0 %2510 }
0x2178   : > { %v2518_v53 = vmul.f32 0.03125, %v2511_v26 }
0x2179   : > { %v2514_v0 = vpop.xlane.xlu1 %2513 }
0x217a   : > { %v2521_v59 = vadd.f32 1e-06, %v2518_v53  ;;  %v2519_v60 = vmul.f32 0.03125, %v2514_v0 }
0x217b   : > { %v2517_v34 = vpop.xlane.xlu0 %2516 }
0x217c   : > { %3406 = vrsqrt.f32 %v2521_v59  ;;  %v2522_v30 = vadd.f32 1e-06, %v2519_v60  ;;  %v2520_v54 = vmul.f32 0.03125, %v2517_v34 }
0x217e   : > { %3408 = vrsqrt.f32 %v2522_v30  ;;  %v2523_v61 = vadd.f32 1e-06, %v2520_v54 }
0x2180   : > { %3410 = vrsqrt.f32 %v2523_v61 }
0x2186   : > { %v3407_v1 = vpop.eup %3406 }
0x2187   : > { %v2527_v2 = vmul.f32 %v3407_v1, %v2503_v38  ;;  %v2639_v38 = vpack.c.bf16 %v1863_v56, %v1862_v5 }
0x2188   : > { %v3409_v17 = vpop.eup %3408 }
0x2189   : > { %v2528_v57 = vmul.f32 %v3409_v17, %v2504_v10  ;;  %v2534_v6 = vmul.f32 %v2533_v63, %v2527_v2  ;;  %3269 = vmatprep.subr.bf16.mxu0 %v2639_v38  ;;  %v2640_v10 = vpack.c.bf16 %v1865_v4, %v1864_v55 }
0x218a   : > { %v3411_v20 = vpop.eup %3410  ;;  %3270 = vmatpush3.bf16.msra.mxu0 %v2639_v38 }
0x218b   : > { %v2529_v8 = vmul.f32 %v3411_v20, %v2505_v47  ;;  %v2535_v9 = vmul.f32 %v2533_v63, %v2528_v57  ;;  %v2541_v12 = vadd.f32 %v2540_v7, %v2534_v6  ;;  %3271 = vmatprep.subr.bf16.mxu0 %v2640_v10  ;;  %v2641_v47 = vpack.c.bf16 %v1867_v62, %v1866_v24 }
0x218d   : > { %v2536_v11 = vmul.f32 %v2533_v63, %v2529_v8  ;;  %v2542_v13 = vadd.f32 %v2540_v7, %v2535_v9 }
0x218e   : > { %3272 = vmatpush3.bf16.msra.mxu0 %v2640_v10 }
0x218f   : > { %v2544_v16 = vpack.c.bf16 %v2542_v13, %v2541_v12  ;;  %v2543_v19 = vadd.f32 %v2540_v7, %v2536_v11  ;;  %3273 = vmatprep.subr.bf16.mxu0 %v2641_v47 }
0x2191   : > { %3257 = vmatprep.mubr.msk.bf16.mxu1 %vm491_vm3, %v2544_v16  ;;  %v2545_v21 = vpack.c.bf16 %v2543_v19, %v2543_v19 }
0x2192   : > { %3274 = vmatpush3.bf16.msra.mxu0 %v2641_v47 }
0x2193   : > { %3258 = vmatmul.mubr.msk.bf16.vlgmr.msra.gmra.mrb[64].mxu1 %vm491_vm3, %v2545_v21  ;;  %3275 = vmatprep.subr.bf16.mxu0 %v2642_v37 }
0x2194   : > { %3285 = vmatprep.mubr.msk.bf16.mxu1 %vm3512_vm0, %v3511_v3  ;;  %3282 = vmatpush3.bf16.msra.mxu1 %v2708_v29  ;;  %vm2714_vm0 = vsmask.f32 7424 }
0x2195   : > { %3283 = vmatprep.subr.bf16.mxu1 %v3511_v3 }
0x2196   : > { %3276 = vmatpush3.bf16.msra.mxu0 %v2642_v37 }
0x2198   : > { %3284 = vmatpush3.bf16.msra.mxu1 %v2709_v35 }
0x2266   : > { %v3259_v46 = vpop.f32.mrb[64].mxu1 }
0x2267   : > { %v2601_v48 = vadd.f32 %v3259_v46, %v2551_v44  ;;  %v2592_v49 = vpop.f32.mrb[65].mxu1 }
0x2268   : > { %v2593_v51 = vadd.f32 %v2592_v49, %v2551_v44  ;;  %v3260_v14 = vpop.f32.mrb[66].mxu1 }
0x2269   : > { %v2608_v52 = vmul.f32 %v2601_v48, %v2601_v48  ;;  %v2595_v26 = vpop.f32.mrb[67].mxu1 }
0x226a   : > { %v2606_v53 = vmul.f32 %v2593_v51, %v2593_v51  ;;  %v2596_v0 = vadd.f32 %v2595_v26, %v2551_v44 }
0x226b   : > { %v2611_v59 = vmul.f32 %v2608_v52, %v2601_v48 }
0x226c   : > { %v2609_v60 = vmul.f32 %v2606_v53, %v2593_v51  ;;  %v2607_v34 = vmul.f32 %v2596_v0, %v2596_v0 }
0x226d   : > { %v2614_v30 = vmul.f32 0.044715, %v2611_v59 }
0x226e   : > { %v2612_v54 = vmul.f32 0.044715, %v2609_v60  ;;  %v2610_v61 = vmul.f32 %v2607_v34, %v2596_v0 }
0x226f   : > { %v2617_v63 = vadd.f32 %v2614_v30, %v2601_v48 }
0x2270   : > { %v2615_v1 = vadd.f32 %v2612_v54, %v2593_v51  ;;  %v2613_v2 = vmul.f32 0.044715, %v2610_v61 }
0x2271   : > { %v2620_v17 = vmul.f32 0.7978846, %v2617_v63 }
0x2272   : > { %v2618_v18 = vmul.f32 0.7978846, %v2615_v1  ;;  %v2616_v57 = vadd.f32 %v2613_v2, %v2596_v0 }
0x2273   : > { %3412 = vtanh.f32 %v2620_v17 }
0x2274   : > { %3414 = vtanh.f32 %v2618_v18  ;;  %v2619_v6 = vmul.f32 0.7978846, %v2616_v57 }
0x2276   : > { %3416 = vtanh.f32 %v2619_v6 }
0x227d   : > { %v3413_v7 = vpop.eup %3412 }
0x227e   : > { %v3415_v20 = vpop.eup %3414  ;;  %v2626_v8 = vadd.f32 1.0, %v3413_v7 }
0x227f   : > { %v2624_v9 = vadd.f32 1.0, %v3415_v20 }
0x2280   : > { %v3417_v11 = vpop.eup %3416  ;;  %v2629_v12 = vmul.f32 0.5, %v2626_v8 }
0x2281   : > { %v2625_v13 = vadd.f32 1.0, %v3417_v11  ;;  %v2627_v16 = vmul.f32 0.5, %v2624_v9 }
0x2282   : > { %v2632_v21 = vmul.f32 %v2629_v12, %v2601_v48 }
0x2283   : > { %v2628_v19 = vmul.f32 0.5, %v2625_v13  ;;  %v2630_v15 = vmul.f32 %v2627_v16, %v2593_v51 }
0x2284   : > { %v2634_v23 = vpack.c.bf16 %v2632_v21, %v2632_v21 }
0x2285   : > { %v2631_v45 = vmul.f32 %v2628_v19, %v2596_v0 }
0x2287   : > { %v2633_v22 = vpack.c.bf16 %v2631_v45, %v2630_v15 }
0x2289   : > { %3277 = vmatprep.mubr.bf16.mxu0 %v2633_v22 }
0x228a   : > { %3278 = vmatmul.mubr.bf16.vlgmr.msra.gmra.mrb[40].mxu0 %v2634_v23 }
0x235d   : > { %v3279_v36 = vpop.f32.mrb[40].mxu0 }
0x235e   : > { %v2693_v5 = vadd.f32 %v3279_v36, %v4349_v33  ;;  %v2677_v56 = vpop.f32.mrb[41].mxu0 }
0x235f   : > { %v2691_v38 = vadd.f32 %v2677_v56, %v4341_v28  ;;  %v3280_v55 = vpop.f32.mrb[42].mxu0  ;;  %v2937_v28 = vld [vmem:[%s4589_s7 + $0x20] ss:$0 sm:$0xff] }
0x2360   : > { %v2700_v4 = vadd.f32 %v2697_v50, %v2693_v5  ;;  %v2680_v10 = vpop.f32.mrb[43].mxu0 }
0x2361   : > { %v2692_v24 = vadd.f32 %v2680_v10, %v4344_v31  ;;  %v2698_v47 = vadd.f32 %v2697_v50, %v2691_v38 }
0x2362   : > { %v2707_v62 = vpack.c.bf16 %v2700_v4, %v2700_v4 }
0x2363   : > { %v2699_v40 = vadd.f32 %v2697_v50, %v2692_v24 }
0x2364   : > { %v2723_v41 = vshll.u32 %v2707_v62, 16 }
0x2365   : > { %v2706_v3 = vpack.c.bf16 %v2699_v40, %v2698_v47 }
0x2366   : > { %v2725_v33 = vrot.slane %v2723_v41, 1 }
0x2367   : > { %v2718_v37 = vshll.u32 %v2706_v3, 16  ;;  %v2716_v39 = vshrl.u32 %v2706_v3, 16 }
0x2369   : > { %v2720_v42 = vrot.slane %v2718_v37, 1 }
0x236b   : > { %v2721_v43 = vor.u32 %v2720_v42, %v2716_v39 }
0x236d   : > { %v2726_v44 = vsel %vm2714_vm0, %v2721_v43, %v2725_v33 }
0x236e   : > { %3286 = vmatmul.mubr.msk.bf16.vlgmr.msra.gmra.mrb[68].mxu1 %vm491_vm3, %v2726_v44 }
0x2441   : > { %v2764_v31 = vpop.f32.mrb[68].mxu1 }
0x2442   : > { %v2765_v46 = vadd.f32 %v2937_v28, %v2764_v31  ;;  %v3287_v48 = vpop.f32.mrb[69].mxu1 }
0x2443   : > { %v2767_v49 = vpop.f32.mrb[70].mxu1 }
0x2444   : > { %2771 = vst [vmem:[%s418_s24] sm:$0xff] %v2765_v46  ;;  %v2768_v51 = vadd.f32 %v2937_v28, %v2767_v49  ;;  %v3288_v14 = vpop.f32.mrb[71].mxu1 }
0x2446   : > { %2772 = vst [vmem:[%s418_s24 + $0x8] sm:$0xff] %v2768_v51 }
0x2447   : > { %3456 = shalt.err (!%p3453_p13)
}
0x2448   : > { %s3457_s19 = scalar_lea.hbm %s4463_s2, 256  ;;  %s3461_s12 = scalar_lea.hbm %s4594_s6, 512 }
0x2449   : > { %p3458_p0 = scmp.ne.s32.totalorder %s4463_s2, %s3457_s19  ;;  %p3462_p5 = scmp.lt.u32.totalorder %s4463_s2, %s4594_s6 }
0x244a   : > { %p3463_p6 = scmp.lt.u32.totalorder %s3461_s12, %s3457_s19  ;;  %p3465_p8 = scmp.lt.u32.totalorder %s3457_s19, %s4463_s2 }
0x244b   : > { %p3459_p3 = pnand %p3458_p0, %p3643_p1 }
0x244c   : > { %p3464_p7 = por %p3463_p6, %p3462_p5 }
0x244d   : > { %p3460_p4 = pneg %p3459_p3 }
0x244e   : > { %p3466_p9 = por %p3465_p8, %p3464_p7 }
0x2450   : > { %p3467_p10 = pnand %p3466_p9, %p3460_p4 }
0x2452   : > { %3470 = shalt.err (!%p3467_p10)
}
0x2453   : > { %s3522_s20 = smov 128   ;;  %s3523_s21 = smov 8  }
0x2454   : > { %3293 = dma.vmem_to_hbm [thread:$0]  (%p3643_p1), %s4458_s14, 256, %s4463_s2, %s4465_s3, %s3522_s20, %s3522_s20, %s3523_s21  }
0x2455 PF: > { %s4595_s0 = sld [smem:[#allocation14_spill]]  ;;  %s4596_s26 = sld [smem:[#allocation11_spill]] }
0x245b   : > { %p3299_p11 = scmp.ge.s32.totalorder %s4595_s0, 2  ;;  %s2802_s8 = sand.u32 1, %s4596_s26  }
0x245c   : > { %s2803_s24 = scalar_lea.sflag [#allocation8], %s2802_s8 }
0x245d   : > { %p3296_p12 = pnand %p3299_p11, %p3647_p2 }
0x245f   : > { %3490 = dma.done.wait (!%p3296_p12), %s2803_s24, 256  }
0x2460   : > { %3492 = vsyncadd (!%p3296_p12), %s2803_s24, 4294967040  ;;  %s4598_s24 = sld [smem:[#allocation16_spill]]  ;;  %s4599_s1 = sld [smem:[#allocation12_spill]] }
0x2461   : > { %s4600_s22 = sld [smem:[#allocation13_spill]]  ;;  %s4601_s23 = sld [smem:[#allocation17_spill]] }
0x2466   : > { %p34_p13 = scmp.ge.s32.totalorder %s4598_s24, 4  }
0x2468   :  { %36 = sbr.rel (!%p34_p13) target bundleno = 31 (0x1f), region = 127 }
0x246f   :  { %2808 = vsyncpa [#allocation8], 1 }
0x2470   :  { %2810 = vsyncpa [#allocation8 + $0x1], 1 }

</bundles_post_ra>
